<compile_context>
chip_gen: v6e
topology: v6e:2x2x1
jax: 0.10.0
libtpu: 0.0.40
codegen_flags: <defaults>
</compile_context>

<pallas_src>
import numpy as np
import jax
import jax.numpy as jnp
from jax import lax
from jax.experimental import pallas as pl
from jax.experimental.pallas import tpu as pltpu

_BN_EPS = 1e-5


def _round_up(x, m):
    return (x + m - 1) // m * m


# ----------------------------------------------------------------------------
# Pallas kernel 1: tiled (patches @ weight) with fused BN scale/shift + act.
# bf16 MXU operands, f32 accumulation directly in the resident output block.
# ----------------------------------------------------------------------------
def _make_mm_kernel(activation):
    def kernel(x_ref, w_ref, s_ref, b_ref, o_ref):
        k = pl.program_id(1)

        @pl.when(k == 0)
        def _():
            o_ref[...] = jnp.zeros_like(o_ref)

        o_ref[...] += jnp.dot(x_ref[...], w_ref[...],
                              preferred_element_type=jnp.float32)

        @pl.when(k == pl.num_programs(1) - 1)
        def _():
            y = o_ref[...] * s_ref[...] + b_ref[...]
            if activation == 'relu':
                y = jnp.maximum(y, 0.0)
            elif activation == 'tanh':
                y = jnp.tanh(y)
            o_ref[...] = y

    return kernel


def matmul_fused(x, w, scale, shift, activation='none'):
    """out = act((x @ w) * scale + shift); bf16 inputs, f32 accumulate/epilogue."""
    M, K = x.shape
    _, O = w.shape
    TM = 128
    Mp = _round_up(M, TM)
    Kp = _round_up(K, 128)
    TK = 512 if Kp % 512 == 0 else (256 if Kp % 256 == 0 else 128)
    Op = _round_up(O, 128)

    xp = jnp.pad(x.astype(jnp.bfloat16), ((0, Mp - M), (0, Kp - K)))
    wp = jnp.pad(w.astype(jnp.bfloat16), ((0, Kp - K), (0, Op - O)))
    sp = jnp.pad(scale.astype(jnp.float32), (0, Op - O)).reshape(1, Op)
    bp = jnp.pad(shift.astype(jnp.float32), (0, Op - O)).reshape(1, Op)

    out = pl.pallas_call(
        _make_mm_kernel(activation),
        out_shape=jax.ShapeDtypeStruct((Mp, Op), jnp.float32),
        grid_spec=pltpu.PrefetchScalarGridSpec(
            num_scalar_prefetch=0,
            grid=(Mp // TM, Kp // TK),
            in_specs=[pl.BlockSpec((TM, TK), lambda i, k: (i, k)),
                      pl.BlockSpec((TK, Op), lambda i, k: (k, 0)),
                      pl.BlockSpec((1, Op), lambda i, k: (0, 0)),
                      pl.BlockSpec((1, Op), lambda i, k: (0, 0))],
            out_specs=pl.BlockSpec((TM, Op), lambda i, k: (i, 0))),
        compiler_params=pltpu.CompilerParams(
            dimension_semantics=("parallel", "arbitrary")),
    )(xp, wp, sp, bp)
    return out[:M, :O]


# ----------------------------------------------------------------------------
# Pallas kernel 2: fully fused residual block (BasicBlock / ResnetBlock).
# Both 3x3 convs are 9 tap matmuls: (P_t @ x) @ W_t, with P_t a 0/1 shift matrix
# that also encodes the zero/reflect padding. Everything stays in VMEM.
# ----------------------------------------------------------------------------
def _make_resblock_kernel(n_taps, relu_out):
    def kernel(x_ref, p_ref, w1_ref, s1_ref, b1_ref, w2_ref, s2_ref, b2_ref, o_ref):
        x = x_ref[...]                                  # (M, C) f32
        xb = x.astype(jnp.bfloat16)

        acc1 = jnp.zeros(x.shape, jnp.float32)
        for t in range(n_taps):
            xs = jnp.dot(p_ref[t], xb,
                         preferred_element_type=jnp.float32).astype(jnp.bfloat16)
            acc1 += jnp.dot(xs, w1_ref[t], preferred_element_type=jnp.float32)
        y1 = jnp.maximum(acc1 * s1_ref[...] + b1_ref[...], 0.0).astype(jnp.bfloat16)

        acc2 = jnp.zeros(x.shape, jnp.float32)
        for t in range(n_taps):
            ys = jnp.dot(p_ref[t], y1,
                         preferred_element_type=jnp.float32).astype(jnp.bfloat16)
            acc2 += jnp.dot(ys, w2_ref[t], preferred_element_type=jnp.float32)
        y2 = acc2 * s2_ref[...] + b2_ref[...] + x        # residual add in f32
        if relu_out:
            y2 = jnp.maximum(y2, 0.0)
        o_ref[...] = y2

    return kernel


def fused_residual_block(x_nhwc, pmats, w1, s1, b1, w2, s2, b2, relu_out):
    N, H, W, C = x_nhwc.shape
    M = N * H * W
    x2d = x_nhwc.reshape(M, C).astype(jnp.float32)
    out = pl.pallas_call(
        _make_resblock_kernel(pmats.shape[0], relu_out),
        out_shape=jax.ShapeDtypeStruct((M, C), jnp.float32),
    )(x2d, pmats, w1, s1.reshape(1, C), b1.reshape(1, C),
      w2, s2.reshape(1, C), b2.reshape(1, C))
    return out.reshape(N, H, W, C)


def _shift_matrices(N, H, W, reflect):
    """P_t (t = 3*di+dj) s.t. P_t @ x_flat is x shifted by (di-1, dj-1) with zero or
    reflect(1) boundary handling; x_flat rows ordered ((n*H)+i)*W + j. Trace-time consts."""
    M = N * H * W
    mats = np.zeros((9, M, M), np.float32)
    for di in range(3):
        for dj in range(3):
            t = 3 * di + dj
            for n in range(N):
                for i in range(H):
                    for j in range(W):
                        si, sj = i + di - 1, j + dj - 1
                        if reflect:
                            si = -si if si < 0 else (2 * (H - 1) - si if si >= H else si)
                            sj = -sj if sj < 0 else (2 * (W - 1) - sj if sj >= W else sj)
                        elif not (0 <= si < H and 0 <= sj < W):
                            continue
                        mats[t, (n * H + i) * W + j, (n * H + si) * W + sj] = 1.0
    return jnp.asarray(mats, dtype=jnp.bfloat16)


def _tap_weights(w_oihw):
    O, I, KH, KW = w_oihw.shape
    return jnp.transpose(w_oihw, (2, 3, 1, 0)).reshape(KH * KW, I, O).astype(jnp.bfloat16)


# ----------------------------------------------------------------------------
# Conv helpers for the two non-residual layers (stem conv, sub-pixel deconv).
# im2col here is tiny (<=0.5 MB) after the sub-pixel decomposition.
# ----------------------------------------------------------------------------
def _im2col(x, kh, kw, stride, pad):
    if pad > 0:
        x = jnp.pad(x, ((0, 0), (pad, pad), (pad, pad), (0, 0)))
    N, H, W, C = x.shape
    oh = (H - kh) // stride + 1
    ow = (W - kw) // stride + 1
    cols = [x[:, i:i + stride * oh:stride, j:j + stride * ow:stride, :]
            for i in range(kh) for j in range(kw)]
    patches = jnp.stack(cols, axis=3)                      # (N, oh, ow, kh*kw, C)
    return patches.reshape(N * oh * ow, kh * kw * C), (N, oh, ow)


def conv2d(x, w_oihw, stride=1, pad=0, scale=None, shift=None, activation='none'):
    O, I, KH, KW = w_oihw.shape
    patches, (N, oh, ow) = _im2col(x, KH, KW, stride, pad)
    wmat = jnp.transpose(w_oihw, (2, 3, 1, 0)).reshape(KH * KW * I, O)
    if scale is None:
        scale = jnp.ones((O,), jnp.float32)
    if shift is None:
        shift = jnp.zeros((O,), jnp.float32)
    out = matmul_fused(patches, wmat, scale, shift, activation)
    return out.reshape(N, oh, ow, O)


# Sub-pixel decomposition of ConvTranspose2d(C, 3, k=7, s=2, p=3, output_padding=1):
# output phase r (mod-2 row/col) sees kernel taps ky = (3 + r) - 2*dy for input offsets
# dy = tap - 1; missing taps are zero.
_TAPS = {0: (5, 3, 1, None), 1: (6, 4, 2, 0)}


def _subpixel_deconv_weight(w_iohw):
    I, O, KH, KW = w_iohw.shape
    zero = jnp.zeros((I, O), w_iohw.dtype)
    phases = []
    for ry in (0, 1):
        for rx in (0, 1):
            rows = []
            for ty in range(4):
                cols = []
                for tx in range(4):
                    ky, kx = _TAPS[ry][ty], _TAPS[rx][tx]
                    cols.append(zero if (ky is None or kx is None)
                                else w_iohw[:, :, ky, kx])
                rows.append(jnp.stack(cols, axis=0))       # (4, I, O)
            phases.append(jnp.stack(rows, axis=0))         # (4, 4, I, O)
    wk = jnp.concatenate(phases, axis=-1)                  # (4, 4, I, 4*O)
    return jnp.transpose(wk, (3, 2, 0, 1))                 # OIHW: (4*O, I, 4, 4)


def conv_transpose_7x7_s2(x, w_iohw):
    """ConvTranspose2d(C,3,7,2,3,output_padding=1,bias=False) + Tanh via 4-phase
    sub-pixel decomposition: one stride-1 4x4 conv on the undilated input + shuffle."""
    N, H, W, C = x.shape
    O = w_iohw.shape[1]
    w_conv = _subpixel_deconv_weight(w_iohw)
    xp = jnp.pad(x, ((0, 0), (1, 2), (1, 2), (0, 0)))      # asymmetric zero pad
    y = conv2d(xp, w_conv, stride=1, pad=0, activation='tanh')   # (N, H, W, 4*O)
    y = y.reshape(N, H, W, 2, 2, O)
    y = jnp.transpose(y, (0, 1, 3, 2, 4, 5)).reshape(N, 2 * H, 2 * W, O)
    return y


def bn_fold(p, name):
    # Eval-mode BatchNorm folded from real running stats (matches module.eval()).
    scale = p[f'{name}_g'] * lax.rsqrt(p[f'{name}_v'] + _BN_EPS)
    return scale, p[f'{name}_b'] - p[f'{name}_m'] * scale


# ----------------------------------------------------------------------------
# Model (encoder = resnet18[:5], decoder for num_encoder_layers == 5)
# ----------------------------------------------------------------------------
def encoder(x, p):
    s, b = bn_fold(p, 'bn1')
    x = conv2d(x, p['conv1_w'], stride=2, pad=3, scale=s, shift=b, activation='relu')
    # TODO(synk): MaxPool2d(3, stride=2, padding=1) stays as plain-XLA reduce_window glue.
    x = lax.reduce_window(x, -jnp.inf, lax.max,
                          (1, 3, 3, 1), (1, 2, 2, 1),
                          ((0, 0), (1, 1), (1, 1), (0, 0)))
    N, H, W, C = x.shape
    pmats = _shift_matrices(N, H, W, reflect=False)        # zero-pad 3x3 shifts
    for blk in ('l1b1', 'l1b2'):
        s1, b1 = bn_fold(p, f'{blk}_c1')
        s2, b2 = bn_fold(p, f'{blk}_c2')
        x = fused_residual_block(
            x, pmats,
            _tap_weights(p[f'{blk}_c1_w']), s1, b1,
            _tap_weights(p[f'{blk}_c2_w']), s2, b2, relu_out=True)
    return x


def decoder(x, p):
    N, H, W, C = x.shape
    pmats = _shift_matrices(N, H, W, reflect=True)         # ReflectionPad2d(1) shifts
    for r in range(3):
        s1, b1 = bn_fold(p, f'dec{r}_c1')
        s2, b2 = bn_fold(p, f'dec{r}_c2')
        x = fused_residual_block(
            x, pmats,
            _tap_weights(p[f'dec{r}_c1_w']), s1, b1,
            _tap_weights(p[f'dec{r}_c2_w']), s2, b2, relu_out=False)
    x = jnp.repeat(jnp.repeat(x, 2, axis=1), 2, axis=2)    # UpsamplingNearest2d(2)
    return conv_transpose_7x7_s2(x, p['deconv_w'])


def catted_generator_forward(params, x1_nchw, x2_nchw):
    n = x1_nchw.shape[0]
    x = jnp.concatenate([x1_nchw, x2_nchw], axis=0)        # single batched encoder pass
    x = jnp.transpose(x, (0, 2, 3, 1))                     # NCHW -> NHWC
    feats = encoder(x, params)                             # (2n, 4, 4, 64)
    f1, f2 = feats[:n], feats[n:]
    cat = jnp.concatenate([f1, f2], axis=-1)               # torch.cat(dim=1)
    out = decoder(cat, params)
    return (jnp.transpose(out, (0, 3, 1, 2)),              # back to NCHW
            jnp.transpose(f2, (0, 3, 1, 2)))


# ----------------------------------------------------------------------------
# Deterministic parameter init (synthetic; shapes from the module's __init__)
# ----------------------------------------------------------------------------
def init_params(key):
    keys = iter(jax.random.split(key, 96))

    def nrm(shape, s=0.05):
        return s * jax.random.normal(next(keys), shape, jnp.float32)

    def bn(d, name, c):
        d[f'{name}_g'] = 1.0 + 0.1 * jax.random.normal(next(keys), (c,), jnp.float32)
        d[f'{name}_b'] = 0.1 * jax.random.normal(next(keys), (c,), jnp.float32)
        d[f'{name}_m'] = 0.05 * jax.random.normal(next(keys), (c,), jnp.float32)
        d[f'{name}_v'] = 1.0 + 0.2 * jax.random.uniform(next(keys), (c,), jnp.float32)

    p = {}
    # --- encoder: resnet18[:5] ---
    p['conv1_w'] = nrm((64, 3, 7, 7))
    bn(p, 'bn1', 64)
    for blk in ('l1b1', 'l1b2'):
        for cid in ('c1', 'c2'):
            p[f'{blk}_{cid}_w'] = nrm((64, 64, 3, 3))
            bn(p, f'{blk}_{cid}', 64)
    # --- decoder: 3x ResnetBlock(128), upsample, ConvTranspose2d(128,3,7,2,3,1), tanh ---
    for r in range(3):
        for cid in ('c1', 'c2'):
            p[f'dec{r}_{cid}_w'] = nrm((128, 128, 3, 3))
            bn(p, f'dec{r}_{cid}', 128)
    p['deconv_w'] = nrm((128, 3, 7, 7))                    # ConvTranspose2d: (in, out, kh, kw)
    return p


if __name__ == "__main__":
    key = jax.random.PRNGKey(0)
    kp, k1, k2 = jax.random.split(key, 3)
    params = init_params(kp)

    x1 = jax.random.normal(k1, (2, 3, 16, 16), jnp.float32)
    x2 = jax.random.normal(k2, (2, 3, 16, 16), jnp.float32)

    fwd = jax.jit(catted_generator_forward)
    out, feat2 = fwd(params, x1, x2)
    jax.block_until_ready((out, feat2))

    assert out.shape == (2, 3, 16, 16), out.shape          # tanh image output
    assert feat2.shape == (2, 64, 4, 4), feat2.shape       # encoder(x2) features
    print("KERNEL_OK")
</pallas_src>

<mosaic_0001>
module attributes {stable_mosaic.version = 11 : i64} {
  func.func @kernel(%arg0: i32, %arg1: i32, %arg2: memref<128x256xbf16, #tpu.memory_space<vmem>>, %arg3: memref<256x128xbf16, #tpu.memory_space<vmem>>, %arg4: memref<1x128xf32, #tpu.memory_space<vmem>>, %arg5: memref<1x128xf32, #tpu.memory_space<vmem>>, %arg6: memref<128x128xf32, #tpu.memory_space<vmem>>) attributes {dimension_semantics = [#tpu.dimension_semantics<parallel>, #tpu.dimension_semantics<arbitrary>], iteration_bounds = array<i64: 2, 1>, scalar_prefetch = 0 : i64, scratch_operands = 0 : i64, tpu.core_type = #tpu.core_type<tc>, window_params = [{transform_indices = @transform_0, window_bounds = array<i64: 128, 256>}, {transform_indices = @transform_1, window_bounds = array<i64: 256, 128>}, {pipeline_mode = #tpu.pipeline_mode<synchronous>, transform_indices = @transform_2, window_bounds = array<i64: 1, 128>}, {pipeline_mode = #tpu.pipeline_mode<synchronous>, transform_indices = @transform_3, window_bounds = array<i64: 1, 128>}, {transform_indices = @transform_4, window_bounds = array<i64: 128, 128>}]} {
    %c0_i32 = arith.constant 0 : i32
    %0 = arith.cmpi eq, %arg1, %c0_i32 : i32
    %1 = arith.extui %0 : i1 to i32
    %c0_i32_0 = arith.constant 0 : i32
    %2 = arith.cmpi ne, %1, %c0_i32_0 : i32
    scf.if %2 {
      %cst_10 = arith.constant 0.000000e+00 : f32
      %12 = vector.broadcast %cst_10 : f32 to vector<128x128xf32>
      %c0_11 = arith.constant 0 : index
      %c0_12 = arith.constant 0 : index
      %13 = vector.load %arg6[%c0_11, %c0_12] : memref<128x128xf32, #tpu.memory_space<vmem>>, vector<128x128xf32>
      tpu.vector_store %arg6[%c0_11, %c0_12], %12 {strides = array<i32>} : memref<128x128xf32, #tpu.memory_space<vmem>>, vector<128x128xf32>,
    } else {
    }
    %c0 = arith.constant 0 : index
    %c0_1 = arith.constant 0 : index
    %3 = vector.load %arg6[%c0, %c0_1] : memref<128x128xf32, #tpu.memory_space<vmem>>, vector<128x128xf32>
    %c0_2 = arith.constant 0 : index
    %c0_3 = arith.constant 0 : index
    %4 = vector.load %arg2[%c0_2, %c0_3] : memref<128x256xbf16, #tpu.memory_space<vmem>>, vector<128x256xbf16>
    %c0_4 = arith.constant 0 : index
    %c0_5 = arith.constant 0 : index
    %5 = vector.load %arg3[%c0_4, %c0_5] : memref<256x128xbf16, #tpu.memory_space<vmem>>, vector<256x128xbf16>
    %cst = arith.constant dense<0.000000e+00> : vector<128x128xf32>
    %6 = tpu.matmul %4, %5, %cst {dimension_numbers = #tpu.dot_dimension_numbers<[1], [0], [0], [1], [0, 0, 1, 1], [], []>} : vector<128x256xbf16>, vector<256x128xbf16>, vector<128x128xf32> -> vector<128x128xf32>
    %7 = arith.addf %3, %6 : vector<128x128xf32>
    %c0_6 = arith.constant 0 : index
    %c0_7 = arith.constant 0 : index
    %8 = vector.load %arg6[%c0_6, %c0_7] : memref<128x128xf32, #tpu.memory_space<vmem>>, vector<128x128xf32>
    tpu.vector_store %arg6[%c0_6, %c0_7], %7 {strides = array<i32>} : memref<128x128xf32, #tpu.memory_space<vmem>>, vector<128x128xf32>,
    %c0_i32_8 = arith.constant 0 : i32
    %9 = arith.cmpi eq, %arg1, %c0_i32_8 : i32
    %10 = arith.extui %9 : i1 to i32
    %c0_i32_9 = arith.constant 0 : i32
    %11 = arith.cmpi ne, %10, %c0_i32_9 : i32
    scf.if %11 {
      %c0_10 = arith.constant 0 : index
      %c0_11 = arith.constant 0 : index
      %12 = vector.load %arg6[%c0_10, %c0_11] : memref<128x128xf32, #tpu.memory_space<vmem>>, vector<128x128xf32>
      %c0_12 = arith.constant 0 : index
      %c0_13 = arith.constant 0 : index
      %13 = vector.load %arg4[%c0_12, %c0_13] : memref<1x128xf32, #tpu.memory_space<vmem>>, vector<1x128xf32>
      %14 = vector.broadcast %13 : vector<1x128xf32> to vector<128x128xf32>
      %15 = arith.mulf %12, %14 : vector<128x128xf32>
      %c0_14 = arith.constant 0 : index
      %c0_15 = arith.constant 0 : index
      %16 = vector.load %arg5[%c0_14, %c0_15] : memref<1x128xf32, #tpu.memory_space<vmem>>, vector<1x128xf32>
      %17 = vector.broadcast %16 : vector<1x128xf32> to vector<128x128xf32>
      %18 = arith.addf %15, %17 : vector<128x128xf32>
      %cst_16 = arith.constant 0.000000e+00 : f32
      %19 = vector.broadcast %cst_16 : f32 to vector<128x128xf32>
      %20 = arith.maximumf %18, %19 : vector<128x128xf32>
      %c0_17 = arith.constant 0 : index
      %c0_18 = arith.constant 0 : index
      %21 = vector.load %arg6[%c0_17, %c0_18] : memref<128x128xf32, #tpu.memory_space<vmem>>, vector<128x128xf32>
      tpu.vector_store %arg6[%c0_17, %c0_18], %20 {strides = array<i32>} : memref<128x128xf32, #tpu.memory_space<vmem>>, vector<128x128xf32>,
    } else {
    }
    return
  }
  func.func @transform_0(%arg0: i32, %arg1: i32) -> (i32, i32) {
    %c0_i32 = arith.constant 0 : i32
    return %arg0, %arg1 : i32, i32
  }
  func.func @transform_1(%arg0: i32, %arg1: i32) -> (i32, i32) {
    %c0_i32 = arith.constant 0 : i32
    %c0_i32_0 = arith.constant 0 : i32
    return %arg1, %c0_i32 : i32, i32
  }
  func.func @transform_2(%arg0: i32, %arg1: i32) -> (i32, i32) {
    %c0_i32 = arith.constant 0 : i32
    %c0_i32_0 = arith.constant 0 : i32
    %c0_i32_1 = arith.constant 0 : i32
    return %c0_i32, %c0_i32_0 : i32, i32
  }
  func.func @transform_3(%arg0: i32, %arg1: i32) -> (i32, i32) {
    %c0_i32 = arith.constant 0 : i32
    %c0_i32_0 = arith.constant 0 : i32
    %c0_i32_1 = arith.constant 0 : i32
    return %c0_i32, %c0_i32_0 : i32, i32
  }
  func.func @transform_4(%arg0: i32, %arg1: i32) -> (i32, i32) {
    %c0_i32 = arith.constant 0 : i32
    %c0_i32_0 = arith.constant 0 : i32
    return %arg0, %c0_i32 : i32, i32
  }
}

module attributes {stable_mosaic.version = 11 : i64} {
  func.func @kernel(%arg0: memref<64x64xf32, #tpu.memory_space<vmem>>, %arg1: memref<9x64x64xbf16, #tpu.memory_space<vmem>>, %arg2: memref<9x64x64xbf16, #tpu.memory_space<vmem>>, %arg3: memref<1x64xf32, #tpu.memory_space<vmem>>, %arg4: memref<1x64xf32, #tpu.memory_space<vmem>>, %arg5: memref<9x64x64xbf16, #tpu.memory_space<vmem>>, %arg6: memref<1x64xf32, #tpu.memory_space<vmem>>, %arg7: memref<1x64xf32, #tpu.memory_space<vmem>>, %arg8: memref<64x64xf32, #tpu.memory_space<vmem>>) attributes {dimension_semantics = [], scalar_prefetch = 0 : i64, scratch_operands = 0 : i64, tpu.core_type = #tpu.core_type<tc>} {
    %c0 = arith.constant 0 : index
    %c0_0 = arith.constant 0 : index
    %0 = vector.load %arg0[%c0, %c0_0] : memref<64x64xf32, #tpu.memory_space<vmem>>, vector<64x64xf32>
    %1 = arith.truncf %0 : vector<64x64xf32> to vector<64x64xbf16>
    %cst = arith.constant 0.000000e+00 : f32
    %2 = vector.broadcast %cst : f32 to vector<64x64xf32>
    %c0_1 = arith.constant 0 : index
    %c0_2 = arith.constant 0 : index
    %c0_3 = arith.constant 0 : index
    %3 = vector.load %arg1[%c0_1, %c0_2, %c0_3] : memref<9x64x64xbf16, #tpu.memory_space<vmem>>, vector<1x64x64xbf16>
    %4 = vector.shape_cast %3 : vector<1x64x64xbf16> to vector<64x64xbf16>
    %cst_4 = arith.constant dense<0.000000e+00> : vector<64x64xf32>
    %5 = tpu.matmul %4, %1, %cst_4 {dimension_numbers = #tpu.dot_dimension_numbers<[1], [0], [0], [1], [0, 0, 1, 1], [], []>} : vector<64x64xbf16>, vector<64x64xbf16>, vector<64x64xf32> -> vector<64x64xf32>
    %6 = arith.truncf %5 : vector<64x64xf32> to vector<64x64xbf16>
    %c0_5 = arith.constant 0 : index
    %c0_6 = arith.constant 0 : index
    %c0_7 = arith.constant 0 : index
    %7 = vector.load %arg2[%c0_5, %c0_6, %c0_7] : memref<9x64x64xbf16, #tpu.memory_space<vmem>>, vector<1x64x64xbf16>
    %8 = vector.shape_cast %7 : vector<1x64x64xbf16> to vector<64x64xbf16>
    %cst_8 = arith.constant dense<0.000000e+00> : vector<64x64xf32>
    %9 = tpu.matmul %6, %8, %cst_8 {dimension_numbers = #tpu.dot_dimension_numbers<[1], [0], [0], [1], [0, 0, 1, 1], [], []>} : vector<64x64xbf16>, vector<64x64xbf16>, vector<64x64xf32> -> vector<64x64xf32>
    %10 = arith.addf %2, %9 : vector<64x64xf32>
    %c1 = arith.constant 1 : index
    %c0_9 = arith.constant 0 : index
    %c0_10 = arith.constant 0 : index
    %11 = vector.load %arg1[%c1, %c0_9, %c0_10] : memref<9x64x64xbf16, #tpu.memory_space<vmem>>, vector<1x64x64xbf16>
    %12 = vector.shape_cast %11 : vector<1x64x64xbf16> to vector<64x64xbf16>
    %cst_11 = arith.constant dense<0.000000e+00> : vector<64x64xf32>
    %13 = tpu.matmul %12, %1, %cst_11 {dimension_numbers = #tpu.dot_dimension_numbers<[1], [0], [0], [1], [0, 0, 1, 1], [], []>} : vector<64x64xbf16>, vector<64x64xbf16>, vector<64x64xf32> -> vector<64x64xf32>
    %14 = arith.truncf %13 : vector<64x64xf32> to vector<64x64xbf16>
    %c1_12 = arith.constant 1 : index
    %c0_13 = arith.constant 0 : index
    %c0_14 = arith.constant 0 : index
    %15 = vector.load %arg2[%c1_12, %c0_13, %c0_14] : memref<9x64x64xbf16, #tpu.memory_space<vmem>>, vector<1x64x64xbf16>
    %16 = vector.shape_cast %15 : vector<1x64x64xbf16> to vector<64x64xbf16>
    %cst_15 = arith.constant dense<0.000000e+00> : vector<64x64xf32>
    %17 = tpu.matmul %14, %16, %cst_15 {dimension_numbers = #tpu.dot_dimension_numbers<[1], [0], [0], [1], [0, 0, 1, 1], [], []>} : vector<64x64xbf16>, vector<64x64xbf16>, vector<64x64xf32> -> vector<64x64xf32>
    %18 = arith.addf %10, %17 : vector<64x64xf32>
    %c2 = arith.constant 2 : index
    %c0_16 = arith.constant 0 : index
    %c0_17 = arith.constant 0 : index
    %19 = vector.load %arg1[%c2, %c0_16, %c0_17] : memref<9x64x64xbf16, #tpu.memory_space<vmem>>, vector<1x64x64xbf16>
    %20 = vector.shape_cast %19 : vector<1x64x64xbf16> to vector<64x64xbf16>
    %cst_18 = arith.constant dense<0.000000e+00> : vector<64x64xf32>
    %21 = tpu.matmul %20, %1, %cst_18 {dimension_numbers = #tpu.dot_dimension_numbers<[1], [0], [0], [1], [0, 0, 1, 1], [], []>} : vector<64x64xbf16>, vector<64x64xbf16>, vector<64x64xf32> -> vector<64x64xf32>
    %22 = arith.truncf %21 : vector<64x64xf32> to vector<64x64xbf16>
    %c2_19 = arith.constant 2 : index
    %c0_20 = arith.constant 0 : index
    %c0_21 = arith.constant 0 : index
    %23 = vector.load %arg2[%c2_19, %c0_20, %c0_21] : memref<9x64x64xbf16, #tpu.memory_space<vmem>>, vector<1x64x64xbf16>
    %24 = vector.shape_cast %23 : vector<1x64x64xbf16> to vector<64x64xbf16>
    %cst_22 = arith.constant dense<0.000000e+00> : vector<64x64xf32>
    %25 = tpu.matmul %22, %24, %cst_22 {dimension_numbers = #tpu.dot_dimension_numbers<[1], [0], [0], [1], [0, 0, 1, 1], [], []>} : vector<64x64xbf16>, vector<64x64xbf16>, vector<64x64xf32> -> vector<64x64xf32>
    %26 = arith.addf %18, %25 : vector<64x64xf32>
    %c3 = arith.constant 3 : index
    %c0_23 = arith.constant 0 : index
    %c0_24 = arith.constant 0 : index
    %27 = vector.load %arg1[%c3, %c0_23, %c0_24] : memref<9x64x64xbf16, #tpu.memory_space<vmem>>, vector<1x64x64xbf16>
    %28 = vector.shape_cast %27 : vector<1x64x64xbf16> to vector<64x64xbf16>
    %cst_25 = arith.constant dense<0.000000e+00> : vector<64x64xf32>
    %29 = tpu.matmul %28, %1, %cst_25 {dimension_numbers = #tpu.dot_dimension_numbers<[1], [0], [0], [1], [0, 0, 1, 1], [], []>} : vector<64x64xbf16>, vector<64x64xbf16>, vector<64x64xf32> -> vector<64x64xf32>
    %30 = arith.truncf %29 : vector<64x64xf32> to vector<64x64xbf16>
    %c3_26 = arith.constant 3 : index
    %c0_27 = arith.constant 0 : index
    %c0_28 = arith.constant 0 : index
    %31 = vector.load %arg2[%c3_26, %c0_27, %c0_28] : memref<9x64x64xbf16, #tpu.memory_space<vmem>>, vector<1x64x64xbf16>
    %32 = vector.shape_cast %31 : vector<1x64x64xbf16> to vector<64x64xbf16>
    %cst_29 = arith.constant dense<0.000000e+00> : vector<64x64xf32>
    %33 = tpu.matmul %30, %32, %cst_29 {dimension_numbers = #tpu.dot_dimension_numbers<[1], [0], [0], [1], [0, 0, 1, 1], [], []>} : vector<64x64xbf16>, vector<64x64xbf16>, vector<64x64xf32> -> vector<64x64xf32>
    %34 = arith.addf %26, %33 : vector<64x64xf32>
    %c4 = arith.constant 4 : index
    %c0_30 = arith.constant 0 : index
    %c0_31 = arith.constant 0 : index
    %35 = vector.load %arg1[%c4, %c0_30, %c0_31] : memref<9x64x64xbf16, #tpu.memory_space<vmem>>, vector<1x64x64xbf16>
    %36 = vector.shape_cast %35 : vector<1x64x64xbf16> to vector<64x64xbf16>
    %cst_32 = arith.constant dense<0.000000e+00> : vector<64x64xf32>
    %37 = tpu.matmul %36, %1, %cst_32 {dimension_numbers = #tpu.dot_dimension_numbers<[1], [0], [0], [1], [0, 0, 1, 1], [], []>} : vector<64x64xbf16>, vector<64x64xbf16>, vector<64x64xf32> -> vector<64x64xf32>
    %38 = arith.truncf %37 : vector<64x64xf32> to vector<64x64xbf16>
    %c4_33 = arith.constant 4 : index
    %c0_34 = arith.constant 0 : index
    %c0_35 = arith.constant 0 : index
    %39 = vector.load %arg2[%c4_33, %c0_34, %c0_35] : memref<9x64x64xbf16, #tpu.memory_space<vmem>>, vector<1x64x64xbf16>
    %40 = vector.shape_cast %39 : vector<1x64x64xbf16> to vector<64x64xbf16>
    %cst_36 = arith.constant dense<0.000000e+00> : vector<64x64xf32>
    %41 = tpu.matmul %38, %40, %cst_36 {dimension_numbers = #tpu.dot_dimension_numbers<[1], [0], [0], [1], [0, 0, 1, 1], [], []>} : vector<64x64xbf16>, vector<64x64xbf16>, vector<64x64xf32> -> vector<64x64xf32>
    %42 = arith.addf %34, %41 : vector<64x64xf32>
    %c5 = arith.constant 5 : index
    %c0_37 = arith.constant 0 : index
    %c0_38 = arith.constant 0 : index
    %43 = vector.load %arg1[%c5, %c0_37, %c0_38] : memref<9x64x64xbf16, #tpu.memory_space<vmem>>, vector<1x64x64xbf16>
    %44 = vector.shape_cast %43 : vector<1x64x64xbf16> to vector<64x64xbf16>
    %cst_39 = arith.constant dense<0.000000e+00> : vector<64x64xf32>
    %45 = tpu.matmul %44, %1, %cst_39 {dimension_numbers = #tpu.dot_dimension_numbers<[1], [0], [0], [1], [0, 0, 1, 1], [], []>} : vector<64x64xbf16>, vector<64x64xbf16>, vector<64x64xf32> -> vector<64x64xf32>
    %46 = arith.truncf %45 : vector<64x64xf32> to vector<64x64xbf16>
    %c5_40 = arith.constant 5 : index
    %c0_41 = arith.constant 0 : index
    %c0_42 = arith.constant 0 : index
    %47 = vector.load %arg2[%c5_40, %c0_41, %c0_42] : memref<9x64x64xbf16, #tpu.memory_space<vmem>>, vector<1x64x64xbf16>
    %48 = vector.shape_cast %47 : vector<1x64x64xbf16> to vector<64x64xbf16>
    %cst_43 = arith.constant dense<0.000000e+00> : vector<64x64xf32>
    %49 = tpu.matmul %46, %48, %cst_43 {dimension_numbers = #tpu.dot_dimension_numbers<[1], [0], [0], [1], [0, 0, 1, 1], [], []>} : vector<64x64xbf16>, vector<64x64xbf16>, vector<64x64xf32> -> vector<64x64xf32>
    %50 = arith.addf %42, %49 : vector<64x64xf32>
    %c6 = arith.constant 6 : index
    %c0_44 = arith.constant 0 : index
    %c0_45 = arith.constant 0 : index
    %51 = vector.load %arg1[%c6, %c0_44, %c0_45] : memref<9x64x64xbf16, #tpu.memory_space<vmem>>, vector<1x64x64xbf16>
    %52 = vector.shape_cast %51 : vector<1x64x64xbf16> to vector<64x64xbf16>
    %cst_46 = arith.constant dense<0.000000e+00> : vector<64x64xf32>
    %53 = tpu.matmul %52, %1, %cst_46 {dimension_numbers = #tpu.dot_dimension_numbers<[1], [0], [0], [1], [0, 0, 1, 1], [], []>} : vector<64x64xbf16>, vector<64x64xbf16>, vector<64x64xf32> -> vector<64x64xf32>
    %54 = arith.truncf %53 : vector<64x64xf32> to vector<64x64xbf16>
    %c6_47 = arith.constant 6 : index
    %c0_48 = arith.constant 0 : index
    %c0_49 = arith.constant 0 : index
    %55 = vector.load %arg2[%c6_47, %c0_48, %c0_49] : memref<9x64x64xbf16, #tpu.memory_space<vmem>>, vector<1x64x64xbf16>
    %56 = vector.shape_cast %55 : vector<1x64x64xbf16> to vector<64x64xbf16>
    %cst_50 = arith.constant dense<0.000000e+00> : vector<64x64xf32>
    %57 = tpu.matmul %54, %56, %cst_50 {dimension_numbers = #tpu.dot_dimension_numbers<[1], [0], [0], [1], [0, 0, 1, 1], [], []>} : vector<64x64xbf16>, vector<64x64xbf16>, vector<64x64xf32> -> vector<64x64xf32>
    %58 = arith.addf %50, %57 : vector<64x64xf32>
    %c7 = arith.constant 7 : index
    %c0_51 = arith.constant 0 : index
    %c0_52 = arith.constant 0 : index
    %59 = vector.load %arg1[%c7, %c0_51, %c0_52] : memref<9x64x64xbf16, #tpu.memory_space<vmem>>, vector<1x64x64xbf16>
    %60 = vector.shape_cast %59 : vector<1x64x64xbf16> to vector<64x64xbf16>
    %cst_53 = arith.constant dense<0.000000e+00> : vector<64x64xf32>
    %61 = tpu.matmul %60, %1, %cst_53 {dimension_numbers = #tpu.dot_dimension_numbers<[1], [0], [0], [1], [0, 0, 1, 1], [], []>} : vector<64x64xbf16>, vector<64x64xbf16>, vector<64x64xf32> -> vector<64x64xf32>
    %62 = arith.truncf %61 : vector<64x64xf32> to vector<64x64xbf16>
    %c7_54 = arith.constant 7 : index
    %c0_55 = arith.constant 0 : index
    %c0_56 = arith.constant 0 : index
    %63 = vector.load %arg2[%c7_54, %c0_55, %c0_56] : memref<9x64x64xbf16, #tpu.memory_space<vmem>>, vector<1x64x64xbf16>
    %64 = vector.shape_cast %63 : vector<1x64x64xbf16> to vector<64x64xbf16>
    %cst_57 = arith.constant dense<0.000000e+00> : vector<64x64xf32>
    %65 = tpu.matmul %62, %64, %cst_57 {dimension_numbers = #tpu.dot_dimension_numbers<[1], [0], [0], [1], [0, 0, 1, 1], [], []>} : vector<64x64xbf16>, vector<64x64xbf16>, vector<64x64xf32> -> vector<64x64xf32>
    %66 = arith.addf %58, %65 : vector<64x64xf32>
    %c8 = arith.constant 8 : index
    %c0_58 = arith.constant 0 : index
    %c0_59 = arith.constant 0 : index
    %67 = vector.load %arg1[%c8, %c0_58, %c0_59] : memref<9x64x64xbf16, #tpu.memory_space<vmem>>, vector<1x64x64xbf16>
    %68 = vector.shape_cast %67 : vector<1x64x64xbf16> to vector<64x64xbf16>
    %cst_60 = arith.constant dense<0.000000e+00> : vector<64x64xf32>
    %69 = tpu.matmul %68, %1, %cst_60 {dimension_numbers = #tpu.dot_dimension_numbers<[1], [0], [0], [1], [0, 0, 1, 1], [], []>} : vector<64x64xbf16>, vector<64x64xbf16>, vector<64x64xf32> -> vector<64x64xf32>
    %70 = arith.truncf %69 : vector<64x64xf32> to vector<64x64xbf16>
    %c8_61 = arith.constant 8 : index
    %c0_62 = arith.constant 0 : index
    %c0_63 = arith.constant 0 : index
    %71 = vector.load %arg2[%c8_61, %c0_62, %c0_63] : memref<9x64x64xbf16, #tpu.memory_space<vmem>>, vector<1x64x64xbf16>
    %72 = vector.shape_cast %71 : vector<1x64x64xbf16> to vector<64x64xbf16>
    %cst_64 = arith.constant dense<0.000000e+00> : vector<64x64xf32>
    %73 = tpu.matmul %70, %72, %cst_64 {dimension_numbers = #tpu.dot_dimension_numbers<[1], [0], [0], [1], [0, 0, 1, 1], [], []>} : vector<64x64xbf16>, vector<64x64xbf16>, vector<64x64xf32> -> vector<64x64xf32>
    %74 = arith.addf %66, %73 : vector<64x64xf32>
    %c0_65 = arith.constant 0 : index
    %c0_66 = arith.constant 0 : index
    %75 = vector.load %arg3[%c0_65, %c0_66] : memref<1x64xf32, #tpu.memory_space<vmem>>, vector<1x64xf32>
    %76 = vector.broadcast %75 : vector<1x64xf32> to vector<64x64xf32>
    %77 = arith.mulf %74, %76 : vector<64x64xf32>
    %c0_67 = arith.constant 0 : index
    %c0_68 = arith.constant 0 : index
    %78 = vector.load %arg4[%c0_67, %c0_68] : memref<1x64xf32, #tpu.memory_space<vmem>>, vector<1x64xf32>
    %79 = vector.broadcast %78 : vector<1x64xf32> to vector<64x64xf32>
    %80 = arith.addf %77, %79 : vector<64x64xf32>
    %cst_69 = arith.constant 0.000000e+00 : f32
    %81 = vector.broadcast %cst_69 : f32 to vector<64x64xf32>
    %82 = arith.maximumf %80, %81 : vector<64x64xf32>
    %83 = arith.truncf %82 : vector<64x64xf32> to vector<64x64xbf16>
    %cst_70 = arith.constant 0.000000e+00 : f32
    %84 = vector.broadcast %cst_70 : f32 to vector<64x64xf32>
    %c0_71 = arith.constant 0 : index
    %c0_72 = arith.constant 0 : index
    %c0_73 = arith.constant 0 : index
    %85 = vector.load %arg1[%c0_71, %c0_72, %c0_73] : memref<9x64x64xbf16, #tpu.memory_space<vmem>>, vector<1x64x64xbf16>
    %86 = vector.shape_cast %85 : vector<1x64x64xbf16> to vector<64x64xbf16>
    %cst_74 = arith.constant dense<0.000000e+00> : vector<64x64xf32>
    %87 = tpu.matmul %86, %83, %cst_74 {dimension_numbers = #tpu.dot_dimension_numbers<[1], [0], [0], [1], [0, 0, 1, 1], [], []>} : vector<64x64xbf16>, vector<64x64xbf16>, vector<64x64xf32> -> vector<64x64xf32>
    %88 = arith.truncf %87 : vector<64x64xf32> to vector<64x64xbf16>
    %c0_75 = arith.constant 0 : index
    %c0_76 = arith.constant 0 : index
    %c0_77 = arith.constant 0 : index
    %89 = vector.load %arg5[%c0_75, %c0_76, %c0_77] : memref<9x64x64xbf16, #tpu.memory_space<vmem>>, vector<1x64x64xbf16>
    %90 = vector.shape_cast %89 : vector<1x64x64xbf16> to vector<64x64xbf16>
    %cst_78 = arith.constant dense<0.000000e+00> : vector<64x64xf32>
    %91 = tpu.matmul %88, %90, %cst_78 {dimension_numbers = #tpu.dot_dimension_numbers<[1], [0], [0], [1], [0, 0, 1, 1], [], []>} : vector<64x64xbf16>, vector<64x64xbf16>, vector<64x64xf32> -> vector<64x64xf32>
    %92 = arith.addf %84, %91 : vector<64x64xf32>
    %c1_79 = arith.constant 1 : index
    %c0_80 = arith.constant 0 : index
    %c0_81 = arith.constant 0 : index
    %93 = vector.load %arg1[%c1_79, %c0_80, %c0_81] : memref<9x64x64xbf16, #tpu.memory_space<vmem>>, vector<1x64x64xbf16>
    %94 = vector.shape_cast %93 : vector<1x64x64xbf16> to vector<64x64xbf16>
    %cst_82 = arith.constant dense<0.000000e+00> : vector<64x64xf32>
    %95 = tpu.matmul %94, %83, %cst_82 {dimension_numbers = #tpu.dot_dimension_numbers<[1], [0], [0], [1], [0, 0, 1, 1], [], []>} : vector<64x64xbf16>, vector<64x64xbf16>, vector<64x64xf32> -> vector<64x64xf32>
    %96 = arith.truncf %95 : vector<64x64xf32> to vector<64x64xbf16>
    %c1_83 = arith.constant 1 : index
    %c0_84 = arith.constant 0 : index
    %c0_85 = arith.constant 0 : index
    %97 = vector.load %arg5[%c1_83, %c0_84, %c0_85] : memref<9x64x64xbf16, #tpu.memory_space<vmem>>, vector<1x64x64xbf16>
    %98 = vector.shape_cast %97 : vector<1x64x64xbf16> to vector<64x64xbf16>
    %cst_86 = arith.constant dense<0.000000e+00> : vector<64x64xf32>
    %99 = tpu.matmul %96, %98, %cst_86 {dimension_numbers = #tpu.dot_dimension_numbers<[1], [0], [0], [1], [0, 0, 1, 1], [], []>} : vector<64x64xbf16>, vector<64x64xbf16>, vector<64x64xf32> -> vector<64x64xf32>
    %100 = arith.addf %92, %99 : vector<64x64xf32>
    %c2_87 = arith.constant 2 : index
    %c0_88 = arith.constant 0 : index
    %c0_89 = arith.constant 0 : index
    %101 = vector.load %arg1[%c2_87, %c0_88, %c0_89] : memref<9x64x64xbf16, #tpu.memory_space<vmem>>, vector<1x64x64xbf16>
    %102 = vector.shape_cast %101 : vector<1x64x64xbf16> to vector<64x64xbf16>
    %cst_90 = arith.constant dense<0.000000e+00> : vector<64x64xf32>
    %103 = tpu.matmul %102, %83, %cst_90 {dimension_numbers = #tpu.dot_dimension_numbers<[1], [0], [0], [1], [0, 0, 1, 1], [], []>} : vector<64x64xbf16>, vector<64x64xbf16>, vector<64x64xf32> -> vector<64x64xf32>
    %104 = arith.truncf %103 : vector<64x64xf32> to vector<64x64xbf16>
    %c2_91 = arith.constant 2 : index
    %c0_92 = arith.constant 0 : index
    %c0_93 = arith.constant 0 : index
    %105 = vector.load %arg5[%c2_91, %c0_92, %c0_93] : memref<9x64x64xbf16, #tpu.memory_space<vmem>>, vector<1x64x64xbf16>
    %106 = vector.shape_cast %105 : vector<1x64x64xbf16> to vector<64x64xbf16>
    %cst_94 = arith.constant dense<0.000000e+00> : vector<64x64xf32>
    %107 = tpu.matmul %104, %106, %cst_94 {dimension_numbers = #tpu.dot_dimension_numbers<[1], [0], [0], [1], [0, 0, 1, 1], [], []>} : vector<64x64xbf16>, vector<64x64xbf16>, vector<64x64xf32> -> vector<64x64xf32>
    %108 = arith.addf %100, %107 : vector<64x64xf32>
    %c3_95 = arith.constant 3 : index
    %c0_96 = arith.constant 0 : index
    %c0_97 = arith.constant 0 : index
    %109 = vector.load %arg1[%c3_95, %c0_96, %c0_97] : memref<9x64x64xbf16, #tpu.memory_space<vmem>>, vector<1x64x64xbf16>
    %110 = vector.shape_cast %109 : vector<1x64x64xbf16> to vector<64x64xbf16>
    %cst_98 = arith.constant dense<0.000000e+00> : vector<64x64xf32>
    %111 = tpu.matmul %110, %83, %cst_98 {dimension_numbers = #tpu.dot_dimension_numbers<[1], [0], [0], [1], [0, 0, 1, 1], [], []>} : vector<64x64xbf16>, vector<64x64xbf16>, vector<64x64xf32> -> vector<64x64xf32>
    %112 = arith.truncf %111 : vector<64x64xf32> to vector<64x64xbf16>
    %c3_99 = arith.constant 3 : index
    %c0_100 = arith.constant 0 : index
    %c0_101 = arith.constant 0 : index
    %113 = vector.load %arg5[%c3_99, %c0_100, %c0_101] : memref<9x64x64xbf16, #tpu.memory_space<vmem>>, vector<1x64x64xbf16>
    %114 = vector.shape_cast %113 : vector<1x64x64xbf16> to vector<64x64xbf16>
    %cst_102 = arith.constant dense<0.000000e+00> : vector<64x64xf32>
    %115 = tpu.matmul %112, %114, %cst_102 {dimension_numbers = #tpu.dot_dimension_numbers<[1], [0], [0], [1], [0, 0, 1, 1], [], []>} : vector<64x64xbf16>, vector<64x64xbf16>, vector<64x64xf32> -> vector<64x64xf32>
    %116 = arith.addf %108, %115 : vector<64x64xf32>
    %c4_103 = arith.constant 4 : index
    %c0_104 = arith.constant 0 : index
    %c0_105 = arith.constant 0 : index
    %117 = vector.load %arg1[%c4_103, %c0_104, %c0_105] : memref<9x64x64xbf16, #tpu.memory_space<vmem>>, vector<1x64x64xbf16>
    %118 = vector.shape_cast %117 : vector<1x64x64xbf16> to vector<64x64xbf16>
    %cst_106 = arith.constant dense<0.000000e+00> : vector<64x64xf32>
    %119 = tpu.matmul %118, %83, %cst_106 {dimension_numbers = #tpu.dot_dimension_numbers<[1], [0], [0], [1], [0, 0, 1, 1], [], []>} : vector<64x64xbf16>, vector<64x64xbf16>, vector<64x64xf32> -> vector<64x64xf32>
    %120 = arith.truncf %119 : vector<64x64xf32> to vector<64x64xbf16>
    %c4_107 = arith.constant 4 : index
    %c0_108 = arith.constant 0 : index
    %c0_109 = arith.constant 0 : index
    %121 = vector.load %arg5[%c4_107, %c0_108, %c0_109] : memref<9x64x64xbf16, #tpu.memory_space<vmem>>, vector<1x64x64xbf16>
    %122 = vector.shape_cast %121 : vector<1x64x64xbf16> to vector<64x64xbf16>
    %cst_110 = arith.constant dense<0.000000e+00> : vector<64x64xf32>
    %123 = tpu.matmul %120, %122, %cst_110 {dimension_numbers = #tpu.dot_dimension_numbers<[1], [0], [0], [1], [0, 0, 1, 1], [], []>} : vector<64x64xbf16>, vector<64x64xbf16>, vector<64x64xf32> -> vector<64x64xf32>
    %124 = arith.addf %116, %123 : vector<64x64xf32>
    %c5_111 = arith.constant 5 : index
    %c0_112 = arith.constant 0 : index
    %c0_113 = arith.constant 0 : index
    %125 = vector.load %arg1[%c5_111, %c0_112, %c0_113] : memref<9x64x64xbf16, #tpu.memory_space<vmem>>, vector<1x64x64xbf16>
    %126 = vector.shape_cast %125 : vector<1x64x64xbf16> to vector<64x64xbf16>
    %cst_114 = arith.constant dense<0.000000e+00> : vector<64x64xf32>
    %127 = tpu.matmul %126, %83, %cst_114 {dimension_numbers = #tpu.dot_dimension_numbers<[1], [0], [0], [1], [0, 0, 1, 1], [], []>} : vector<64x64xbf16>, vector<64x64xbf16>, vector<64x64xf32> -> vector<64x64xf32>
    %128 = arith.truncf %127 : vector<64x64xf32> to vector<64x64xbf16>
    %c5_115 = arith.constant 5 : index
    %c0_116 = arith.constant 0 : index
    %c0_117 = arith.constant 0 : index
    %129 = vector.load %arg5[%c5_115, %c0_116, %c0_117] : memref<9x64x64xbf16, #tpu.memory_space<vmem>>, vector<1x64x64xbf16>
    %130 = vector.shape_cast %129 : vector<1x64x64xbf16> to vector<64x64xbf16>
    %cst_118 = arith.constant dense<0.000000e+00> : vector<64x64xf32>
    %131 = tpu.matmul %128, %130, %cst_118 {dimension_numbers = #tpu.dot_dimension_numbers<[1], [0], [0], [1], [0, 0, 1, 1], [], []>} : vector<64x64xbf16>, vector<64x64xbf16>, vector<64x64xf32> -> vector<64x64xf32>
    %132 = arith.addf %124, %131 : vector<64x64xf32>
    %c6_119 = arith.constant 6 : index
    %c0_120 = arith.constant 0 : index
    %c0_121 = arith.constant 0 : index
    %133 = vector.load %arg1[%c6_119, %c0_120, %c0_121] : memref<9x64x64xbf16, #tpu.memory_space<vmem>>, vector<1x64x64xbf16>
    %134 = vector.shape_cast %133 : vector<1x64x64xbf16> to vector<64x64xbf16>
    %cst_122 = arith.constant dense<0.000000e+00> : vector<64x64xf32>
    %135 = tpu.matmul %134, %83, %cst_122 {dimension_numbers = #tpu.dot_dimension_numbers<[1], [0], [0], [1], [0, 0, 1, 1], [], []>} : vector<64x64xbf16>, vector<64x64xbf16>, vector<64x64xf32> -> vector<64x64xf32>
    %136 = arith.truncf %135 : vector<64x64xf32> to vector<64x64xbf16>
    %c6_123 = arith.constant 6 : index
    %c0_124 = arith.constant 0 : index
    %c0_125 = arith.constant 0 : index
    %137 = vector.load %arg5[%c6_123, %c0_124, %c0_125] : memref<9x64x64xbf16, #tpu.memory_space<vmem>>, vector<1x64x64xbf16>
    %138 = vector.shape_cast %137 : vector<1x64x64xbf16> to vector<64x64xbf16>
    %cst_126 = arith.constant dense<0.000000e+00> : vector<64x64xf32>
    %139 = tpu.matmul %136, %138, %cst_126 {dimension_numbers = #tpu.dot_dimension_numbers<[1], [0], [0], [1], [0, 0, 1, 1], [], []>} : vector<64x64xbf16>, vector<64x64xbf16>, vector<64x64xf32> -> vector<64x64xf32>
    %140 = arith.addf %132, %139 : vector<64x64xf32>
    %c7_127 = arith.constant 7 : index
    %c0_128 = arith.constant 0 : index
    %c0_129 = arith.constant 0 : index
    %141 = vector.load %arg1[%c7_127, %c0_128, %c0_129] : memref<9x64x64xbf16, #tpu.memory_space<vmem>>, vector<1x64x64xbf16>
    %142 = vector.shape_cast %141 : vector<1x64x64xbf16> to vector<64x64xbf16>
    %cst_130 = arith.constant dense<0.000000e+00> : vector<64x64xf32>
    %143 = tpu.matmul %142, %83, %cst_130 {dimension_numbers = #tpu.dot_dimension_numbers<[1], [0], [0], [1], [0, 0, 1, 1], [], []>} : vector<64x64xbf16>, vector<64x64xbf16>, vector<64x64xf32> -> vector<64x64xf32>
    %144 = arith.truncf %143 : vector<64x64xf32> to vector<64x64xbf16>
    %c7_131 = arith.constant 7 : index
    %c0_132 = arith.constant 0 : index
    %c0_133 = arith.constant 0 : index
    %145 = vector.load %arg5[%c7_131, %c0_132, %c0_133] : memref<9x64x64xbf16, #tpu.memory_space<vmem>>, vector<1x64x64xbf16>
    %146 = vector.shape_cast %145 : vector<1x64x64xbf16> to vector<64x64xbf16>
    %cst_134 = arith.constant dense<0.000000e+00> : vector<64x64xf32>
    %147 = tpu.matmul %144, %146, %cst_134 {dimension_numbers = #tpu.dot_dimension_numbers<[1], [0], [0], [1], [0, 0, 1, 1], [], []>} : vector<64x64xbf16>, vector<64x64xbf16>, vector<64x64xf32> -> vector<64x64xf32>
    %148 = arith.addf %140, %147 : vector<64x64xf32>
    %c8_135 = arith.constant 8 : index
    %c0_136 = arith.constant 0 : index
    %c0_137 = arith.constant 0 : index
    %149 = vector.load %arg1[%c8_135, %c0_136, %c0_137] : memref<9x64x64xbf16, #tpu.memory_space<vmem>>, vector<1x64x64xbf16>
    %150 = vector.shape_cast %149 : vector<1x64x64xbf16> to vector<64x64xbf16>
    %cst_138 = arith.constant dense<0.000000e+00> : vector<64x64xf32>
    %151 = tpu.matmul %150, %83, %cst_138 {dimension_numbers = #tpu.dot_dimension_numbers<[1], [0], [0], [1], [0, 0, 1, 1], [], []>} : vector<64x64xbf16>, vector<64x64xbf16>, vector<64x64xf32> -> vector<64x64xf32>
    %152 = arith.truncf %151 : vector<64x64xf32> to vector<64x64xbf16>
    %c8_139 = arith.constant 8 : index
    %c0_140 = arith.constant 0 : index
    %c0_141 = arith.constant 0 : index
    %153 = vector.load %arg5[%c8_139, %c0_140, %c0_141] : memref<9x64x64xbf16, #tpu.memory_space<vmem>>, vector<1x64x64xbf16>
    %154 = vector.shape_cast %153 : vector<1x64x64xbf16> to vector<64x64xbf16>
    %cst_142 = arith.constant dense<0.000000e+00> : vector<64x64xf32>
    %155 = tpu.matmul %152, %154, %cst_142 {dimension_numbers = #tpu.dot_dimension_numbers<[1], [0], [0], [1], [0, 0, 1, 1], [], []>} : vector<64x64xbf16>, vector<64x64xbf16>, vector<64x64xf32> -> vector<64x64xf32>
    %156 = arith.addf %148, %155 : vector<64x64xf32>
    %c0_143 = arith.constant 0 : index
    %c0_144 = arith.constant 0 : index
    %157 = vector.load %arg6[%c0_143, %c0_144] : memref<1x64xf32, #tpu.memory_space<vmem>>, vector<1x64xf32>
    %158 = vector.broadcast %157 : vector<1x64xf32> to vector<64x64xf32>
    %159 = arith.mulf %156, %158 : vector<64x64xf32>
    %c0_145 = arith.constant 0 : index
    %c0_146 = arith.constant 0 : index
    %160 = vector.load %arg7[%c0_145, %c0_146] : memref<1x64xf32, #tpu.memory_space<vmem>>, vector<1x64xf32>
    %161 = vector.broadcast %160 : vector<1x64xf32> to vector<64x64xf32>
    %162 = arith.addf %159, %161 : vector<64x64xf32>
    %163 = arith.addf %162, %0 : vector<64x64xf32>
    %cst_147 = arith.constant 0.000000e+00 : f32
    %164 = vector.broadcast %cst_147 : f32 to vector<64x64xf32>
    %165 = arith.maximumf %163, %164 : vector<64x64xf32>
    %c0_148 = arith.constant 0 : index
    %c0_149 = arith.constant 0 : index
    %166 = vector.load %arg8[%c0_148, %c0_149] : memref<64x64xf32, #tpu.memory_space<vmem>>, vector<64x64xf32>
    tpu.vector_store %arg8[%c0_148, %c0_149], %165 {strides = array<i32>} : memref<64x64xf32, #tpu.memory_space<vmem>>, vector<64x64xf32>,
    return
  }
}

module attributes {stable_mosaic.version = 11 : i64} {
  func.func @kernel(%arg0: memref<32x128xf32, #tpu.memory_space<vmem>>, %arg1: memref<9x32x32xbf16, #tpu.memory_space<vmem>>, %arg2: memref<9x128x128xbf16, #tpu.memory_space<vmem>>, %arg3: memref<1x128xf32, #tpu.memory_space<vmem>>, %arg4: memref<1x128xf32, #tpu.memory_space<vmem>>, %arg5: memref<9x128x128xbf16, #tpu.memory_space<vmem>>, %arg6: memref<1x128xf32, #tpu.memory_space<vmem>>, %arg7: memref<1x128xf32, #tpu.memory_space<vmem>>, %arg8: memref<32x128xf32, #tpu.memory_space<vmem>>) attributes {dimension_semantics = [], scalar_prefetch = 0 : i64, scratch_operands = 0 : i64, tpu.core_type = #tpu.core_type<tc>} {
    %c0 = arith.constant 0 : index
    %c0_0 = arith.constant 0 : index
    %0 = vector.load %arg0[%c0, %c0_0] : memref<32x128xf32, #tpu.memory_space<vmem>>, vector<32x128xf32>
    %1 = arith.truncf %0 : vector<32x128xf32> to vector<32x128xbf16>
    %cst = arith.constant 0.000000e+00 : f32
    %2 = vector.broadcast %cst : f32 to vector<32x128xf32>
    %c0_1 = arith.constant 0 : index
    %c0_2 = arith.constant 0 : index
    %c0_3 = arith.constant 0 : index
    %3 = vector.load %arg1[%c0_1, %c0_2, %c0_3] : memref<9x32x32xbf16, #tpu.memory_space<vmem>>, vector<1x32x32xbf16>
    %4 = vector.shape_cast %3 : vector<1x32x32xbf16> to vector<32x32xbf16>
    %cst_4 = arith.constant dense<0.000000e+00> : vector<32x128xf32>
    %5 = tpu.matmul %4, %1, %cst_4 {dimension_numbers = #tpu.dot_dimension_numbers<[1], [0], [0], [1], [0, 0, 1, 1], [], []>} : vector<32x32xbf16>, vector<32x128xbf16>, vector<32x128xf32> -> vector<32x128xf32>
    %6 = arith.truncf %5 : vector<32x128xf32> to vector<32x128xbf16>
    %c0_5 = arith.constant 0 : index
    %c0_6 = arith.constant 0 : index
    %c0_7 = arith.constant 0 : index
    %7 = vector.load %arg2[%c0_5, %c0_6, %c0_7] : memref<9x128x128xbf16, #tpu.memory_space<vmem>>, vector<1x128x128xbf16>
    %8 = vector.shape_cast %7 : vector<1x128x128xbf16> to vector<128x128xbf16>
    %cst_8 = arith.constant dense<0.000000e+00> : vector<32x128xf32>
    %9 = tpu.matmul %6, %8, %cst_8 {dimension_numbers = #tpu.dot_dimension_numbers<[1], [0], [0], [1], [0, 0, 1, 1], [], []>} : vector<32x128xbf16>, vector<128x128xbf16>, vector<32x128xf32> -> vector<32x128xf32>
    %10 = arith.addf %2, %9 : vector<32x128xf32>
    %c1 = arith.constant 1 : index
    %c0_9 = arith.constant 0 : index
    %c0_10 = arith.constant 0 : index
    %11 = vector.load %arg1[%c1, %c0_9, %c0_10] : memref<9x32x32xbf16, #tpu.memory_space<vmem>>, vector<1x32x32xbf16>
    %12 = vector.shape_cast %11 : vector<1x32x32xbf16> to vector<32x32xbf16>
    %cst_11 = arith.constant dense<0.000000e+00> : vector<32x128xf32>
    %13 = tpu.matmul %12, %1, %cst_11 {dimension_numbers = #tpu.dot_dimension_numbers<[1], [0], [0], [1], [0, 0, 1, 1], [], []>} : vector<32x32xbf16>, vector<32x128xbf16>, vector<32x128xf32> -> vector<32x128xf32>
    %14 = arith.truncf %13 : vector<32x128xf32> to vector<32x128xbf16>
    %c1_12 = arith.constant 1 : index
    %c0_13 = arith.constant 0 : index
    %c0_14 = arith.constant 0 : index
    %15 = vector.load %arg2[%c1_12, %c0_13, %c0_14] : memref<9x128x128xbf16, #tpu.memory_space<vmem>>, vector<1x128x128xbf16>
    %16 = vector.shape_cast %15 : vector<1x128x128xbf16> to vector<128x128xbf16>
    %cst_15 = arith.constant dense<0.000000e+00> : vector<32x128xf32>
    %17 = tpu.matmul %14, %16, %cst_15 {dimension_numbers = #tpu.dot_dimension_numbers<[1], [0], [0], [1], [0, 0, 1, 1], [], []>} : vector<32x128xbf16>, vector<128x128xbf16>, vector<32x128xf32> -> vector<32x128xf32>
    %18 = arith.addf %10, %17 : vector<32x128xf32>
    %c2 = arith.constant 2 : index
    %c0_16 = arith.constant 0 : index
    %c0_17 = arith.constant 0 : index
    %19 = vector.load %arg1[%c2, %c0_16, %c0_17] : memref<9x32x32xbf16, #tpu.memory_space<vmem>>, vector<1x32x32xbf16>
    %20 = vector.shape_cast %19 : vector<1x32x32xbf16> to vector<32x32xbf16>
    %cst_18 = arith.constant dense<0.000000e+00> : vector<32x128xf32>
    %21 = tpu.matmul %20, %1, %cst_18 {dimension_numbers = #tpu.dot_dimension_numbers<[1], [0], [0], [1], [0, 0, 1, 1], [], []>} : vector<32x32xbf16>, vector<32x128xbf16>, vector<32x128xf32> -> vector<32x128xf32>
    %22 = arith.truncf %21 : vector<32x128xf32> to vector<32x128xbf16>
    %c2_19 = arith.constant 2 : index
    %c0_20 = arith.constant 0 : index
    %c0_21 = arith.constant 0 : index
    %23 = vector.load %arg2[%c2_19, %c0_20, %c0_21] : memref<9x128x128xbf16, #tpu.memory_space<vmem>>, vector<1x128x128xbf16>
    %24 = vector.shape_cast %23 : vector<1x128x128xbf16> to vector<128x128xbf16>
    %cst_22 = arith.constant dense<0.000000e+00> : vector<32x128xf32>
    %25 = tpu.matmul %22, %24, %cst_22 {dimension_numbers = #tpu.dot_dimension_numbers<[1], [0], [0], [1], [0, 0, 1, 1], [], []>} : vector<32x128xbf16>, vector<128x128xbf16>, vector<32x128xf32> -> vector<32x128xf32>
    %26 = arith.addf %18, %25 : vector<32x128xf32>
    %c3 = arith.constant 3 : index
    %c0_23 = arith.constant 0 : index
    %c0_24 = arith.constant 0 : index
    %27 = vector.load %arg1[%c3, %c0_23, %c0_24] : memref<9x32x32xbf16, #tpu.memory_space<vmem>>, vector<1x32x32xbf16>
    %28 = vector.shape_cast %27 : vector<1x32x32xbf16> to vector<32x32xbf16>
    %cst_25 = arith.constant dense<0.000000e+00> : vector<32x128xf32>
    %29 = tpu.matmul %28, %1, %cst_25 {dimension_numbers = #tpu.dot_dimension_numbers<[1], [0], [0], [1], [0, 0, 1, 1], [], []>} : vector<32x32xbf16>, vector<32x128xbf16>, vector<32x128xf32> -> vector<32x128xf32>
    %30 = arith.truncf %29 : vector<32x128xf32> to vector<32x128xbf16>
    %c3_26 = arith.constant 3 : index
    %c0_27 = arith.constant 0 : index
    %c0_28 = arith.constant 0 : index
    %31 = vector.load %arg2[%c3_26, %c0_27, %c0_28] : memref<9x128x128xbf16, #tpu.memory_space<vmem>>, vector<1x128x128xbf16>
    %32 = vector.shape_cast %31 : vector<1x128x128xbf16> to vector<128x128xbf16>
    %cst_29 = arith.constant dense<0.000000e+00> : vector<32x128xf32>
    %33 = tpu.matmul %30, %32, %cst_29 {dimension_numbers = #tpu.dot_dimension_numbers<[1], [0], [0], [1], [0, 0, 1, 1], [], []>} : vector<32x128xbf16>, vector<128x128xbf16>, vector<32x128xf32> -> vector<32x128xf32>
    %34 = arith.addf %26, %33 : vector<32x128xf32>
    %c4 = arith.constant 4 : index
    %c0_30 = arith.constant 0 : index
    %c0_31 = arith.constant 0 : index
    %35 = vector.load %arg1[%c4, %c0_30, %c0_31] : memref<9x32x32xbf16, #tpu.memory_space<vmem>>, vector<1x32x32xbf16>
    %36 = vector.shape_cast %35 : vector<1x32x32xbf16> to vector<32x32xbf16>
    %cst_32 = arith.constant dense<0.000000e+00> : vector<32x128xf32>
    %37 = tpu.matmul %36, %1, %cst_32 {dimension_numbers = #tpu.dot_dimension_numbers<[1], [0], [0], [1], [0, 0, 1, 1], [], []>} : vector<32x32xbf16>, vector<32x128xbf16>, vector<32x128xf32> -> vector<32x128xf32>
    %38 = arith.truncf %37 : vector<32x128xf32> to vector<32x128xbf16>
    %c4_33 = arith.constant 4 : index
    %c0_34 = arith.constant 0 : index
    %c0_35 = arith.constant 0 : index
    %39 = vector.load %arg2[%c4_33, %c0_34, %c0_35] : memref<9x128x128xbf16, #tpu.memory_space<vmem>>, vector<1x128x128xbf16>
    %40 = vector.shape_cast %39 : vector<1x128x128xbf16> to vector<128x128xbf16>
    %cst_36 = arith.constant dense<0.000000e+00> : vector<32x128xf32>
    %41 = tpu.matmul %38, %40, %cst_36 {dimension_numbers = #tpu.dot_dimension_numbers<[1], [0], [0], [1], [0, 0, 1, 1], [], []>} : vector<32x128xbf16>, vector<128x128xbf16>, vector<32x128xf32> -> vector<32x128xf32>
    %42 = arith.addf %34, %41 : vector<32x128xf32>
    %c5 = arith.constant 5 : index
    %c0_37 = arith.constant 0 : index
    %c0_38 = arith.constant 0 : index
    %43 = vector.load %arg1[%c5, %c0_37, %c0_38] : memref<9x32x32xbf16, #tpu.memory_space<vmem>>, vector<1x32x32xbf16>
    %44 = vector.shape_cast %43 : vector<1x32x32xbf16> to vector<32x32xbf16>
    %cst_39 = arith.constant dense<0.000000e+00> : vector<32x128xf32>
    %45 = tpu.matmul %44, %1, %cst_39 {dimension_numbers = #tpu.dot_dimension_numbers<[1], [0], [0], [1], [0, 0, 1, 1], [], []>} : vector<32x32xbf16>, vector<32x128xbf16>, vector<32x128xf32> -> vector<32x128xf32>
    %46 = arith.truncf %45 : vector<32x128xf32> to vector<32x128xbf16>
    %c5_40 = arith.constant 5 : index
    %c0_41 = arith.constant 0 : index
    %c0_42 = arith.constant 0 : index
    %47 = vector.load %arg2[%c5_40, %c0_41, %c0_42] : memref<9x128x128xbf16, #tpu.memory_space<vmem>>, vector<1x128x128xbf16>
    %48 = vector.shape_cast %47 : vector<1x128x128xbf16> to vector<128x128xbf16>
    %cst_43 = arith.constant dense<0.000000e+00> : vector<32x128xf32>
    %49 = tpu.matmul %46, %48, %cst_43 {dimension_numbers = #tpu.dot_dimension_numbers<[1], [0], [0], [1], [0, 0, 1, 1], [], []>} : vector<32x128xbf16>, vector<128x128xbf16>, vector<32x128xf32> -> vector<32x128xf32>
    %50 = arith.addf %42, %49 : vector<32x128xf32>
    %c6 = arith.constant 6 : index
    %c0_44 = arith.constant 0 : index
    %c0_45 = arith.constant 0 : index
    %51 = vector.load %arg1[%c6, %c0_44, %c0_45] : memref<9x32x32xbf16, #tpu.memory_space<vmem>>, vector<1x32x32xbf16>
    %52 = vector.shape_cast %51 : vector<1x32x32xbf16> to vector<32x32xbf16>
    %cst_46 = arith.constant dense<0.000000e+00> : vector<32x128xf32>
    %53 = tpu.matmul %52, %1, %cst_46 {dimension_numbers = #tpu.dot_dimension_numbers<[1], [0], [0], [1], [0, 0, 1, 1], [], []>} : vector<32x32xbf16>, vector<32x128xbf16>, vector<32x128xf32> -> vector<32x128xf32>
    %54 = arith.truncf %53 : vector<32x128xf32> to vector<32x128xbf16>
    %c6_47 = arith.constant 6 : index
    %c0_48 = arith.constant 0 : index
    %c0_49 = arith.constant 0 : index
    %55 = vector.load %arg2[%c6_47, %c0_48, %c0_49] : memref<9x128x128xbf16, #tpu.memory_space<vmem>>, vector<1x128x128xbf16>
    %56 = vector.shape_cast %55 : vector<1x128x128xbf16> to vector<128x128xbf16>
    %cst_50 = arith.constant dense<0.000000e+00> : vector<32x128xf32>
    %57 = tpu.matmul %54, %56, %cst_50 {dimension_numbers = #tpu.dot_dimension_numbers<[1], [0], [0], [1], [0, 0, 1, 1], [], []>} : vector<32x128xbf16>, vector<128x128xbf16>, vector<32x128xf32> -> vector<32x128xf32>
    %58 = arith.addf %50, %57 : vector<32x128xf32>
    %c7 = arith.constant 7 : index
    %c0_51 = arith.constant 0 : index
    %c0_52 = arith.constant 0 : index
    %59 = vector.load %arg1[%c7, %c0_51, %c0_52] : memref<9x32x32xbf16, #tpu.memory_space<vmem>>, vector<1x32x32xbf16>
    %60 = vector.shape_cast %59 : vector<1x32x32xbf16> to vector<32x32xbf16>
    %cst_53 = arith.constant dense<0.000000e+00> : vector<32x128xf32>
    %61 = tpu.matmul %60, %1, %cst_53 {dimension_numbers = #tpu.dot_dimension_numbers<[1], [0], [0], [1], [0, 0, 1, 1], [], []>} : vector<32x32xbf16>, vector<32x128xbf16>, vector<32x128xf32> -> vector<32x128xf32>
    %62 = arith.truncf %61 : vector<32x128xf32> to vector<32x128xbf16>
    %c7_54 = arith.constant 7 : index
    %c0_55 = arith.constant 0 : index
    %c0_56 = arith.constant 0 : index
    %63 = vector.load %arg2[%c7_54, %c0_55, %c0_56] : memref<9x128x128xbf16, #tpu.memory_space<vmem>>, vector<1x128x128xbf16>
    %64 = vector.shape_cast %63 : vector<1x128x128xbf16> to vector<128x128xbf16>
    %cst_57 = arith.constant dense<0.000000e+00> : vector<32x128xf32>
    %65 = tpu.matmul %62, %64, %cst_57 {dimension_numbers = #tpu.dot_dimension_numbers<[1], [0], [0], [1], [0, 0, 1, 1], [], []>} : vector<32x128xbf16>, vector<128x128xbf16>, vector<32x128xf32> -> vector<32x128xf32>
    %66 = arith.addf %58, %65 : vector<32x128xf32>
    %c8 = arith.constant 8 : index
    %c0_58 = arith.constant 0 : index
    %c0_59 = arith.constant 0 : index
    %67 = vector.load %arg1[%c8, %c0_58, %c0_59] : memref<9x32x32xbf16, #tpu.memory_space<vmem>>, vector<1x32x32xbf16>
    %68 = vector.shape_cast %67 : vector<1x32x32xbf16> to vector<32x32xbf16>
    %cst_60 = arith.constant dense<0.000000e+00> : vector<32x128xf32>
    %69 = tpu.matmul %68, %1, %cst_60 {dimension_numbers = #tpu.dot_dimension_numbers<[1], [0], [0], [1], [0, 0, 1, 1], [], []>} : vector<32x32xbf16>, vector<32x128xbf16>, vector<32x128xf32> -> vector<32x128xf32>
    %70 = arith.truncf %69 : vector<32x128xf32> to vector<32x128xbf16>
    %c8_61 = arith.constant 8 : index
    %c0_62 = arith.constant 0 : index
    %c0_63 = arith.constant 0 : index
    %71 = vector.load %arg2[%c8_61, %c0_62, %c0_63] : memref<9x128x128xbf16, #tpu.memory_space<vmem>>, vector<1x128x128xbf16>
    %72 = vector.shape_cast %71 : vector<1x128x128xbf16> to vector<128x128xbf16>
    %cst_64 = arith.constant dense<0.000000e+00> : vector<32x128xf32>
    %73 = tpu.matmul %70, %72, %cst_64 {dimension_numbers = #tpu.dot_dimension_numbers<[1], [0], [0], [1], [0, 0, 1, 1], [], []>} : vector<32x128xbf16>, vector<128x128xbf16>, vector<32x128xf32> -> vector<32x128xf32>
    %74 = arith.addf %66, %73 : vector<32x128xf32>
    %c0_65 = arith.constant 0 : index
    %c0_66 = arith.constant 0 : index
    %75 = vector.load %arg3[%c0_65, %c0_66] : memref<1x128xf32, #tpu.memory_space<vmem>>, vector<1x128xf32>
    %76 = vector.broadcast %75 : vector<1x128xf32> to vector<32x128xf32>
    %77 = arith.mulf %74, %76 : vector<32x128xf32>
    %c0_67 = arith.constant 0 : index
    %c0_68 = arith.constant 0 : index
    %78 = vector.load %arg4[%c0_67, %c0_68] : memref<1x128xf32, #tpu.memory_space<vmem>>, vector<1x128xf32>
    %79 = vector.broadcast %78 : vector<1x128xf32> to vector<32x128xf32>
    %80 = arith.addf %77, %79 : vector<32x128xf32>
    %cst_69 = arith.constant 0.000000e+00 : f32
    %81 = vector.broadcast %cst_69 : f32 to vector<32x128xf32>
    %82 = arith.maximumf %80, %81 : vector<32x128xf32>
    %83 = arith.truncf %82 : vector<32x128xf32> to vector<32x128xbf16>
    %cst_70 = arith.constant 0.000000e+00 : f32
    %84 = vector.broadcast %cst_70 : f32 to vector<32x128xf32>
    %c0_71 = arith.constant 0 : index
    %c0_72 = arith.constant 0 : index
    %c0_73 = arith.constant 0 : index
    %85 = vector.load %arg1[%c0_71, %c0_72, %c0_73] : memref<9x32x32xbf16, #tpu.memory_space<vmem>>, vector<1x32x32xbf16>
    %86 = vector.shape_cast %85 : vector<1x32x32xbf16> to vector<32x32xbf16>
    %cst_74 = arith.constant dense<0.000000e+00> : vector<32x128xf32>
    %87 = tpu.matmul %86, %83, %cst_74 {dimension_numbers = #tpu.dot_dimension_numbers<[1], [0], [0], [1], [0, 0, 1, 1], [], []>} : vector<32x32xbf16>, vector<32x128xbf16>, vector<32x128xf32> -> vector<32x128xf32>
    %88 = arith.truncf %87 : vector<32x128xf32> to vector<32x128xbf16>
    %c0_75 = arith.constant 0 : index
    %c0_76 = arith.constant 0 : index
    %c0_77 = arith.constant 0 : index
    %89 = vector.load %arg5[%c0_75, %c0_76, %c0_77] : memref<9x128x128xbf16, #tpu.memory_space<vmem>>, vector<1x128x128xbf16>
    %90 = vector.shape_cast %89 : vector<1x128x128xbf16> to vector<128x128xbf16>
    %cst_78 = arith.constant dense<0.000000e+00> : vector<32x128xf32>
    %91 = tpu.matmul %88, %90, %cst_78 {dimension_numbers = #tpu.dot_dimension_numbers<[1], [0], [0], [1], [0, 0, 1, 1], [], []>} : vector<32x128xbf16>, vector<128x128xbf16>, vector<32x128xf32> -> vector<32x128xf32>
    %92 = arith.addf %84, %91 : vector<32x128xf32>
    %c1_79 = arith.constant 1 : index
    %c0_80 = arith.constant 0 : index
    %c0_81 = arith.constant 0 : index
    %93 = vector.load %arg1[%c1_79, %c0_80, %c0_81] : memref<9x32x32xbf16, #tpu.memory_space<vmem>>, vector<1x32x32xbf16>
    %94 = vector.shape_cast %93 : vector<1x32x32xbf16> to vector<32x32xbf16>
    %cst_82 = arith.constant dense<0.000000e+00> : vector<32x128xf32>
    %95 = tpu.matmul %94, %83, %cst_82 {dimension_numbers = #tpu.dot_dimension_numbers<[1], [0], [0], [1], [0, 0, 1, 1], [], []>} : vector<32x32xbf16>, vector<32x128xbf16>, vector<32x128xf32> -> vector<32x128xf32>
    %96 = arith.truncf %95 : vector<32x128xf32> to vector<32x128xbf16>
    %c1_83 = arith.constant 1 : index
    %c0_84 = arith.constant 0 : index
    %c0_85 = arith.constant 0 : index
    %97 = vector.load %arg5[%c1_83, %c0_84, %c0_85] : memref<9x128x128xbf16, #tpu.memory_space<vmem>>, vector<1x128x128xbf16>
    %98 = vector.shape_cast %97 : vector<1x128x128xbf16> to vector<128x128xbf16>
    %cst_86 = arith.constant dense<0.000000e+00> : vector<32x128xf32>
    %99 = tpu.matmul %96, %98, %cst_86 {dimension_numbers = #tpu.dot_dimension_numbers<[1], [0], [0], [1], [0, 0, 1, 1], [], []>} : vector<32x128xbf16>, vector<128x128xbf16>, vector<32x128xf32> -> vector<32x128xf32>
    %100 = arith.addf %92, %99 : vector<32x128xf32>
    %c2_87 = arith.constant 2 : index
    %c0_88 = arith.constant 0 : index
    %c0_89 = arith.constant 0 : index
    %101 = vector.load %arg1[%c2_87, %c0_88, %c0_89] : memref<9x32x32xbf16, #tpu.memory_space<vmem>>, vector<1x32x32xbf16>
    %102 = vector.shape_cast %101 : vector<1x32x32xbf16> to vector<32x32xbf16>
    %cst_90 = arith.constant dense<0.000000e+00> : vector<32x128xf32>
    %103 = tpu.matmul %102, %83, %cst_90 {dimension_numbers = #tpu.dot_dimension_numbers<[1], [0], [0], [1], [0, 0, 1, 1], [], []>} : vector<32x32xbf16>, vector<32x128xbf16>, vector<32x128xf32> -> vector<32x128xf32>
    %104 = arith.truncf %103 : vector<32x128xf32> to vector<32x128xbf16>
    %c2_91 = arith.constant 2 : index
    %c0_92 = arith.constant 0 : index
    %c0_93 = arith.constant 0 : index
    %105 = vector.load %arg5[%c2_91, %c0_92, %c0_93] : memref<9x128x128xbf16, #tpu.memory_space<vmem>>, vector<1x128x128xbf16>
    %106 = vector.shape_cast %105 : vector<1x128x128xbf16> to vector<128x128xbf16>
    %cst_94 = arith.constant dense<0.000000e+00> : vector<32x128xf32>
    %107 = tpu.matmul %104, %106, %cst_94 {dimension_numbers = #tpu.dot_dimension_numbers<[1], [0], [0], [1], [0, 0, 1, 1], [], []>} : vector<32x128xbf16>, vector<128x128xbf16>, vector<32x128xf32> -> vector<32x128xf32>
    %108 = arith.addf %100, %107 : vector<32x128xf32>
    %c3_95 = arith.constant 3 : index
    %c0_96 = arith.constant 0 : index
    %c0_97 = arith.constant 0 : index
    %109 = vector.load %arg1[%c3_95, %c0_96, %c0_97] : memref<9x32x32xbf16, #tpu.memory_space<vmem>>, vector<1x32x32xbf16>
    %110 = vector.shape_cast %109 : vector<1x32x32xbf16> to vector<32x32xbf16>
    %cst_98 = arith.constant dense<0.000000e+00> : vector<32x128xf32>
    %111 = tpu.matmul %110, %83, %cst_98 {dimension_numbers = #tpu.dot_dimension_numbers<[1], [0], [0], [1], [0, 0, 1, 1], [], []>} : vector<32x32xbf16>, vector<32x128xbf16>, vector<32x128xf32> -> vector<32x128xf32>
    %112 = arith.truncf %111 : vector<32x128xf32> to vector<32x128xbf16>
    %c3_99 = arith.constant 3 : index
    %c0_100 = arith.constant 0 : index
    %c0_101 = arith.constant 0 : index
    %113 = vector.load %arg5[%c3_99, %c0_100, %c0_101] : memref<9x128x128xbf16, #tpu.memory_space<vmem>>, vector<1x128x128xbf16>
    %114 = vector.shape_cast %113 : vector<1x128x128xbf16> to vector<128x128xbf16>
    %cst_102 = arith.constant dense<0.000000e+00> : vector<32x128xf32>
    %115 = tpu.matmul %112, %114, %cst_102 {dimension_numbers = #tpu.dot_dimension_numbers<[1], [0], [0], [1], [0, 0, 1, 1], [], []>} : vector<32x128xbf16>, vector<128x128xbf16>, vector<32x128xf32> -> vector<32x128xf32>
    %116 = arith.addf %108, %115 : vector<32x128xf32>
    %c4_103 = arith.constant 4 : index
    %c0_104 = arith.constant 0 : index
    %c0_105 = arith.constant 0 : index
    %117 = vector.load %arg1[%c4_103, %c0_104, %c0_105] : memref<9x32x32xbf16, #tpu.memory_space<vmem>>, vector<1x32x32xbf16>
    %118 = vector.shape_cast %117 : vector<1x32x32xbf16> to vector<32x32xbf16>
    %cst_106 = arith.constant dense<0.000000e+00> : vector<32x128xf32>
    %119 = tpu.matmul %118, %83, %cst_106 {dimension_numbers = #tpu.dot_dimension_numbers<[1], [0], [0], [1], [0, 0, 1, 1], [], []>} : vector<32x32xbf16>, vector<32x128xbf16>, vector<32x128xf32> -> vector<32x128xf32>
    %120 = arith.truncf %119 : vector<32x128xf32> to vector<32x128xbf16>
    %c4_107 = arith.constant 4 : index
    %c0_108 = arith.constant 0 : index
    %c0_109 = arith.constant 0 : index
    %121 = vector.load %arg5[%c4_107, %c0_108, %c0_109] : memref<9x128x128xbf16, #tpu.memory_space<vmem>>, vector<1x128x128xbf16>
    %122 = vector.shape_cast %121 : vector<1x128x128xbf16> to vector<128x128xbf16>
    %cst_110 = arith.constant dense<0.000000e+00> : vector<32x128xf32>
    %123 = tpu.matmul %120, %122, %cst_110 {dimension_numbers = #tpu.dot_dimension_numbers<[1], [0], [0], [1], [0, 0, 1, 1], [], []>} : vector<32x128xbf16>, vector<128x128xbf16>, vector<32x128xf32> -> vector<32x128xf32>
    %124 = arith.addf %116, %123 : vector<32x128xf32>
    %c5_111 = arith.constant 5 : index
    %c0_112 = arith.constant 0 : index
    %c0_113 = arith.constant 0 : index
    %125 = vector.load %arg1[%c5_111, %c0_112, %c0_113] : memref<9x32x32xbf16, #tpu.memory_space<vmem>>, vector<1x32x32xbf16>
    %126 = vector.shape_cast %125 : vector<1x32x32xbf16> to vector<32x32xbf16>
    %cst_114 = arith.constant dense<0.000000e+00> : vector<32x128xf32>
    %127 = tpu.matmul %126, %83, %cst_114 {dimension_numbers = #tpu.dot_dimension_numbers<[1], [0], [0], [1], [0, 0, 1, 1], [], []>} : vector<32x32xbf16>, vector<32x128xbf16>, vector<32x128xf32> -> vector<32x128xf32>
    %128 = arith.truncf %127 : vector<32x128xf32> to vector<32x128xbf16>
    %c5_115 = arith.constant 5 : index
    %c0_116 = arith.constant 0 : index
    %c0_117 = arith.constant 0 : index
    %129 = vector.load %arg5[%c5_115, %c0_116, %c0_117] : memref<9x128x128xbf16, #tpu.memory_space<vmem>>, vector<1x128x128xbf16>
    %130 = vector.shape_cast %129 : vector<1x128x128xbf16> to vector<128x128xbf16>
    %cst_118 = arith.constant dense<0.000000e+00> : vector<32x128xf32>
    %131 = tpu.matmul %128, %130, %cst_118 {dimension_numbers = #tpu.dot_dimension_numbers<[1], [0], [0], [1], [0, 0, 1, 1], [], []>} : vector<32x128xbf16>, vector<128x128xbf16>, vector<32x128xf32> -> vector<32x128xf32>
    %132 = arith.addf %124, %131 : vector<32x128xf32>
    %c6_119 = arith.constant 6 : index
    %c0_120 = arith.constant 0 : index
    %c0_121 = arith.constant 0 : index
    %133 = vector.load %arg1[%c6_119, %c0_120, %c0_121] : memref<9x32x32xbf16, #tpu.memory_space<vmem>>, vector<1x32x32xbf16>
    %134 = vector.shape_cast %133 : vector<1x32x32xbf16> to vector<32x32xbf16>
    %cst_122 = arith.constant dense<0.000000e+00> : vector<32x128xf32>
    %135 = tpu.matmul %134, %83, %cst_122 {dimension_numbers = #tpu.dot_dimension_numbers<[1], [0], [0], [1], [0, 0, 1, 1], [], []>} : vector<32x32xbf16>, vector<32x128xbf16>, vector<32x128xf32> -> vector<32x128xf32>
    %136 = arith.truncf %135 : vector<32x128xf32> to vector<32x128xbf16>
    %c6_123 = arith.constant 6 : index
    %c0_124 = arith.constant 0 : index
    %c0_125 = arith.constant 0 : index
    %137 = vector.load %arg5[%c6_123, %c0_124, %c0_125] : memref<9x128x128xbf16, #tpu.memory_space<vmem>>, vector<1x128x128xbf16>
    %138 = vector.shape_cast %137 : vector<1x128x128xbf16> to vector<128x128xbf16>
    %cst_126 = arith.constant dense<0.000000e+00> : vector<32x128xf32>
    %139 = tpu.matmul %136, %138, %cst_126 {dimension_numbers = #tpu.dot_dimension_numbers<[1], [0], [0], [1], [0, 0, 1, 1], [], []>} : vector<32x128xbf16>, vector<128x128xbf16>, vector<32x128xf32> -> vector<32x128xf32>
    %140 = arith.addf %132, %139 : vector<32x128xf32>
    %c7_127 = arith.constant 7 : index
    %c0_128 = arith.constant 0 : index
    %c0_129 = arith.constant 0 : index
    %141 = vector.load %arg1[%c7_127, %c0_128, %c0_129] : memref<9x32x32xbf16, #tpu.memory_space<vmem>>, vector<1x32x32xbf16>
    %142 = vector.shape_cast %141 : vector<1x32x32xbf16> to vector<32x32xbf16>
    %cst_130 = arith.constant dense<0.000000e+00> : vector<32x128xf32>
    %143 = tpu.matmul %142, %83, %cst_130 {dimension_numbers = #tpu.dot_dimension_numbers<[1], [0], [0], [1], [0, 0, 1, 1], [], []>} : vector<32x32xbf16>, vector<32x128xbf16>, vector<32x128xf32> -> vector<32x128xf32>
    %144 = arith.truncf %143 : vector<32x128xf32> to vector<32x128xbf16>
    %c7_131 = arith.constant 7 : index
    %c0_132 = arith.constant 0 : index
    %c0_133 = arith.constant 0 : index
    %145 = vector.load %arg5[%c7_131, %c0_132, %c0_133] : memref<9x128x128xbf16, #tpu.memory_space<vmem>>, vector<1x128x128xbf16>
    %146 = vector.shape_cast %145 : vector<1x128x128xbf16> to vector<128x128xbf16>
    %cst_134 = arith.constant dense<0.000000e+00> : vector<32x128xf32>
    %147 = tpu.matmul %144, %146, %cst_134 {dimension_numbers = #tpu.dot_dimension_numbers<[1], [0], [0], [1], [0, 0, 1, 1], [], []>} : vector<32x128xbf16>, vector<128x128xbf16>, vector<32x128xf32> -> vector<32x128xf32>
    %148 = arith.addf %140, %147 : vector<32x128xf32>
    %c8_135 = arith.constant 8 : index
    %c0_136 = arith.constant 0 : index
    %c0_137 = arith.constant 0 : index
    %149 = vector.load %arg1[%c8_135, %c0_136, %c0_137] : memref<9x32x32xbf16, #tpu.memory_space<vmem>>, vector<1x32x32xbf16>
    %150 = vector.shape_cast %149 : vector<1x32x32xbf16> to vector<32x32xbf16>
    %cst_138 = arith.constant dense<0.000000e+00> : vector<32x128xf32>
    %151 = tpu.matmul %150, %83, %cst_138 {dimension_numbers = #tpu.dot_dimension_numbers<[1], [0], [0], [1], [0, 0, 1, 1], [], []>} : vector<32x32xbf16>, vector<32x128xbf16>, vector<32x128xf32> -> vector<32x128xf32>
    %152 = arith.truncf %151 : vector<32x128xf32> to vector<32x128xbf16>
    %c8_139 = arith.constant 8 : index
    %c0_140 = arith.constant 0 : index
    %c0_141 = arith.constant 0 : index
    %153 = vector.load %arg5[%c8_139, %c0_140, %c0_141] : memref<9x128x128xbf16, #tpu.memory_space<vmem>>, vector<1x128x128xbf16>
    %154 = vector.shape_cast %153 : vector<1x128x128xbf16> to vector<128x128xbf16>
    %cst_142 = arith.constant dense<0.000000e+00> : vector<32x128xf32>
    %155 = tpu.matmul %152, %154, %cst_142 {dimension_numbers = #tpu.dot_dimension_numbers<[1], [0], [0], [1], [0, 0, 1, 1], [], []>} : vector<32x128xbf16>, vector<128x128xbf16>, vector<32x128xf32> -> vector<32x128xf32>
    %156 = arith.addf %148, %155 : vector<32x128xf32>
    %c0_143 = arith.constant 0 : index
    %c0_144 = arith.constant 0 : index
    %157 = vector.load %arg6[%c0_143, %c0_144] : memref<1x128xf32, #tpu.memory_space<vmem>>, vector<1x128xf32>
    %158 = vector.broadcast %157 : vector<1x128xf32> to vector<32x128xf32>
    %159 = arith.mulf %156, %158 : vector<32x128xf32>
    %c0_145 = arith.constant 0 : index
    %c0_146 = arith.constant 0 : index
    %160 = vector.load %arg7[%c0_145, %c0_146] : memref<1x128xf32, #tpu.memory_space<vmem>>, vector<1x128xf32>
    %161 = vector.broadcast %160 : vector<1x128xf32> to vector<32x128xf32>
    %162 = arith.addf %159, %161 : vector<32x128xf32>
    %163 = arith.addf %162, %0 : vector<32x128xf32>
    %c0_147 = arith.constant 0 : index
    %c0_148 = arith.constant 0 : index
    %164 = vector.load %arg8[%c0_147, %c0_148] : memref<32x128xf32, #tpu.memory_space<vmem>>, vector<32x128xf32>
    tpu.vector_store %arg8[%c0_147, %c0_148], %163 {strides = array<i32>} : memref<32x128xf32, #tpu.memory_space<vmem>>, vector<32x128xf32>,
    return
  }
}

module attributes {stable_mosaic.version = 11 : i64} {
  func.func @kernel(%arg0: i32, %arg1: i32, %arg2: memref<128x512xbf16, #tpu.memory_space<vmem>>, %arg3: memref<512x128xbf16, #tpu.memory_space<vmem>>, %arg4: memref<1x128xf32, #tpu.memory_space<vmem>>, %arg5: memref<1x128xf32, #tpu.memory_space<vmem>>, %arg6: memref<128x128xf32, #tpu.memory_space<vmem>>) attributes {dimension_semantics = [#tpu.dimension_semantics<parallel>, #tpu.dimension_semantics<arbitrary>], iteration_bounds = array<i64: 1, 4>, scalar_prefetch = 0 : i64, scratch_operands = 0 : i64, tpu.core_type = #tpu.core_type<tc>, window_params = [{transform_indices = @transform_0, window_bounds = array<i64: 128, 512>}, {transform_indices = @transform_1, window_bounds = array<i64: 512, 128>}, {pipeline_mode = #tpu.pipeline_mode<synchronous>, transform_indices = @transform_2, window_bounds = array<i64: 1, 128>}, {pipeline_mode = #tpu.pipeline_mode<synchronous>, transform_indices = @transform_3, window_bounds = array<i64: 1, 128>}, {transform_indices = @transform_4, window_bounds = array<i64: 128, 128>}]} {
    %c0_i32 = arith.constant 0 : i32
    %0 = arith.cmpi eq, %arg1, %c0_i32 : i32
    %1 = arith.extui %0 : i1 to i32
    %c0_i32_0 = arith.constant 0 : i32
    %2 = arith.cmpi ne, %1, %c0_i32_0 : i32
    scf.if %2 {
      %cst_9 = arith.constant 0.000000e+00 : f32
      %12 = vector.broadcast %cst_9 : f32 to vector<128x128xf32>
      %c0_10 = arith.constant 0 : index
      %c0_11 = arith.constant 0 : index
      %13 = vector.load %arg6[%c0_10, %c0_11] : memref<128x128xf32, #tpu.memory_space<vmem>>, vector<128x128xf32>
      tpu.vector_store %arg6[%c0_10, %c0_11], %12 {strides = array<i32>} : memref<128x128xf32, #tpu.memory_space<vmem>>, vector<128x128xf32>,
    } else {
    }
    %c0 = arith.constant 0 : index
    %c0_1 = arith.constant 0 : index
    %3 = vector.load %arg6[%c0, %c0_1] : memref<128x128xf32, #tpu.memory_space<vmem>>, vector<128x128xf32>
    %c0_2 = arith.constant 0 : index
    %c0_3 = arith.constant 0 : index
    %4 = vector.load %arg2[%c0_2, %c0_3] : memref<128x512xbf16, #tpu.memory_space<vmem>>, vector<128x512xbf16>
    %c0_4 = arith.constant 0 : index
    %c0_5 = arith.constant 0 : index
    %5 = vector.load %arg3[%c0_4, %c0_5] : memref<512x128xbf16, #tpu.memory_space<vmem>>, vector<512x128xbf16>
    %cst = arith.constant dense<0.000000e+00> : vector<128x128xf32>
    %6 = tpu.matmul %4, %5, %cst {dimension_numbers = #tpu.dot_dimension_numbers<[1], [0], [0], [1], [0, 0, 1, 1], [], []>} : vector<128x512xbf16>, vector<512x128xbf16>, vector<128x128xf32> -> vector<128x128xf32>
    %7 = arith.addf %3, %6 : vector<128x128xf32>
    %c0_6 = arith.constant 0 : index
    %c0_7 = arith.constant 0 : index
    %8 = vector.load %arg6[%c0_6, %c0_7] : memref<128x128xf32, #tpu.memory_space<vmem>>, vector<128x128xf32>
    tpu.vector_store %arg6[%c0_6, %c0_7], %7 {strides = array<i32>} : memref<128x128xf32, #tpu.memory_space<vmem>>, vector<128x128xf32>,
    %c3_i32 = arith.constant 3 : i32
    %9 = arith.cmpi eq, %arg1, %c3_i32 : i32
    %10 = arith.extui %9 : i1 to i32
    %c0_i32_8 = arith.constant 0 : i32
    %11 = arith.cmpi ne, %10, %c0_i32_8 : i32
    scf.if %11 {
      %c0_9 = arith.constant 0 : index
      %c0_10 = arith.constant 0 : index
      %12 = vector.load %arg6[%c0_9, %c0_10] : memref<128x128xf32, #tpu.memory_space<vmem>>, vector<128x128xf32>
      %c0_11 = arith.constant 0 : index
      %c0_12 = arith.constant 0 : index
      %13 = vector.load %arg4[%c0_11, %c0_12] : memref<1x128xf32, #tpu.memory_space<vmem>>, vector<1x128xf32>
      %14 = vector.broadcast %13 : vector<1x128xf32> to vector<128x128xf32>
      %15 = arith.mulf %12, %14 : vector<128x128xf32>
      %c0_13 = arith.constant 0 : index
      %c0_14 = arith.constant 0 : index
      %16 = vector.load %arg5[%c0_13, %c0_14] : memref<1x128xf32, #tpu.memory_space<vmem>>, vector<1x128xf32>
      %17 = vector.broadcast %16 : vector<1x128xf32> to vector<128x128xf32>
      %18 = arith.addf %15, %17 : vector<128x128xf32>
      %19 = math.tanh %18 : vector<128x128xf32>
      %c0_15 = arith.constant 0 : index
      %c0_16 = arith.constant 0 : index
      %20 = vector.load %arg6[%c0_15, %c0_16] : memref<128x128xf32, #tpu.memory_space<vmem>>, vector<128x128xf32>
      tpu.vector_store %arg6[%c0_15, %c0_16], %19 {strides = array<i32>} : memref<128x128xf32, #tpu.memory_space<vmem>>, vector<128x128xf32>,
    } else {
    }
    return
  }
  func.func @transform_0(%arg0: i32, %arg1: i32) -> (i32, i32) {
    %c0_i32 = arith.constant 0 : i32
    return %arg0, %arg1 : i32, i32
  }
  func.func @transform_1(%arg0: i32, %arg1: i32) -> (i32, i32) {
    %c0_i32 = arith.constant 0 : i32
    %c0_i32_0 = arith.constant 0 : i32
    return %arg1, %c0_i32 : i32, i32
  }
  func.func @transform_2(%arg0: i32, %arg1: i32) -> (i32, i32) {
    %c0_i32 = arith.constant 0 : i32
    %c0_i32_0 = arith.constant 0 : i32
    %c0_i32_1 = arith.constant 0 : i32
    return %c0_i32, %c0_i32_0 : i32, i32
  }
  func.func @transform_3(%arg0: i32, %arg1: i32) -> (i32, i32) {
    %c0_i32 = arith.constant 0 : i32
    %c0_i32_0 = arith.constant 0 : i32
    %c0_i32_1 = arith.constant 0 : i32
    return %c0_i32, %c0_i32_0 : i32, i32
  }
  func.func @transform_4(%arg0: i32, %arg1: i32) -> (i32, i32) {
    %c0_i32 = arith.constant 0 : i32
    %c0_i32_0 = arith.constant 0 : i32
    return %arg0, %c0_i32 : i32, i32
  }
}

</mosaic_0001>

<bundles_post_ra>
// kernel: catted_generator_forward.7
= control target key start
LH: loop header
LB: loop body
LE: loop exit
PB: predicated region body
PF: predicated region fallthrough
CT: control target
= control target key end

     0   :  { %s1069_s15 = smov 0   ;;  %s1071_s16 = smov 0   ;;  %s1235_s0 = inlined_call_operand.vmem [shape: bf16[256,256], index: 0, kind: input, shape index: {}]   ;;  %s1236_s1 = inlined_call_operand.vmem [shape: bf16[256,128], index: 1, kind: input, shape index: {}]   ;;  %s1237_s2 = inlined_call_operand.vmem [shape: f32[1,128], index: 2, kind: input, shape index: {}]   ;;  %s1238_s3 = inlined_call_operand.vmem [shape: f32[1,128], index: 3, kind: input, shape index: {}]   ;;  %s1239_s4 = inlined_call_operand.vmem [shape: f32[256,128], index: 4, kind: output, shape index: {}]  }
   0x1   :  { %s1073_s17 = smov 0  }
   0x2 LB: > { %s26_s18 = sadd.s32 1, %s1038_s16  ;;  %p832_p0 = scmp.ge.s32.totalorder %s1042_s17, 1  ;;  %s1042_s17 = sphi %s1073_s17, %s14_s17   ;;  %s1038_s16 = sphi %s1071_s16, %s1241_s16   ;;  %s1034_s15 = sphi %s1069_s15, %s1240_s15  }
   0x3   : > { %p28_p1 = scmp.ge.s32.totalorder %s26_s18, 2  ;;  %p194_p2 = scmp.lt.s32.totalorder %s1042_s17, 3 }
   0x5   : > { %s1243_s18 = smov (%p28_p1, %s26_s18), 0  ;;  %p195_p3 = pnand %p832_p0, %p194_p2 }
   0x6   : > { %s833_s21 = sshll.u32 (!%p195_p3), %s1034_s15, 4 }
   0x7   : > { %198 = sbr.rel (%p195_p3) target bundleno = 277 (0x115), region = 36  ;;  %p232_p4 = scmp.lt.s32.totalorder (!%p195_p3), %s833_s21, 31 }
   0xc   : > { %v980_v0 = vld [vmem:[%s1236_s1 + $0x78] sm:$0xff]   ;;  %v982_v2 = vld [vmem:[%s1236_s1 + $0x70] sm:$0xff]   ;;  %v984_v4 = vld [vmem:[%s1236_s1 + $0x68] sm:$0xff]   ;;  %s1245_s21 = smov (!%p232_p4, %s833_s21), 31 }
   0xd   : > { %v981_v1 = vld [vmem:[%s1236_s1 + $0x38] sm:$0xff]   ;;  %875 = vmatprep.subr.bf16.mxu0 %v980_v0  ;;  %939 = vmatprep.subr.bf16.mxu1 %v980_v0  ;;  %v983_v3 = vld [vmem:[%s1236_s1 + $0x30] sm:$0xff]   ;;  %v985_v5 = vld [vmem:[%s1236_s1 + $0x28] sm:$0xff]   ;;  %s874_s10 = sshll.u32 %s1245_s21, 3 }
   0xe   : > { %876 = vmatpush3.bf16.msra.mxu0 %v981_v1  ;;  %947 = vmatpush3.bf16.msra.mxu1 %v981_v1  ;;  %v986_v6 = vld [vmem:[%s1236_s1 + $0x60] sm:$0xff]   ;;  %v988_v8 = vld [vmem:[%s1236_s1 + $0x58] sm:$0xff]   ;;  %s1122_s15 = scalar_lea.vmem %s1235_s0, %s874_s10  ;;  %v990_v10 = vld [vmem:[%s1236_s1 + $0x50] sm:$0xff]  }
   0xf   : > { %877 = vmatprep.subr.bf16.mxu0 %v982_v2  ;;  %940 = vmatprep.subr.bf16.mxu1 %v982_v2  ;;  %v987_v7 = vld [vmem:[%s1236_s1 + $0x20] sm:$0xff]   ;;  %v989_v9 = vld [vmem:[%s1236_s1 + $0x18] sm:$0xff]   ;;  %v991_v13 = vld [vmem:[%s1236_s1 + $0x10] sm:$0xff]  }
  0x10   : > { %v998_v11 = vld [vmem:[%s1122_s15 + $0x4] ss:$8 sps:$4 sm:$0xff]   ;;  %v996_v18 = vld [vmem:[%s1122_s15] ss:$8 sps:$4 sm:$0xff]   ;;  %v1002_v20 = vld [vmem:[%s1122_s15 + $0x14] ss:$8 sps:$4 sm:$0xff]  }
  0x11   : > { %v1001_v12 = vld [vmem:[%s1122_s15 + $0x44] ss:$8 sps:$4 sm:$0xff]   ;;  %547 = vmatprep.mubr.bf16.mxu0 %v998_v11  ;;  %v999_v19 = vld [vmem:[%s1122_s15 + $0x40] ss:$8 sps:$4 sm:$0xff]   ;;  %v1004_v21 = vld [vmem:[%s1122_s15 + $0x54] ss:$8 sps:$4 sm:$0xff]  }
  0x12   : > { %878 = vmatpush3.bf16.msra.mxu0 %v983_v3  ;;  %948 = vmatpush3.bf16.msra.mxu1 %v983_v3  ;;  %v992_v14 = vld [vmem:[%s1236_s1 + $0x48] sm:$0xff]   ;;  %v994_v16 = vld [vmem:[%s1236_s1 + $0x40] sm:$0xff]   ;;  %v1006_v22 = vld [vmem:[%s1122_s15 + $0x10] ss:$8 sps:$4 sm:$0xff]  }
  0x13   : > { %879 = vmatprep.subr.bf16.mxu0 %v984_v4  ;;  %941 = vmatprep.subr.bf16.mxu1 %v984_v4  ;;  %v993_v15 = vld [vmem:[%s1236_s1 + $0x8] sm:$0xff]   ;;  %v995_v17 = vld [vmem:[%s1236_s1] sm:$0xff]   ;;  %v1007_v23 = vld [vmem:[%s1122_s15 + $0x50] ss:$8 sps:$4 sm:$0xff]  }
  0x14   : > { %579 = vmatprep.mubr.bf16.mxu1 %v1001_v12  ;;  %v1008_v24 = vld [vmem:[%s1122_s15 + $0x24] ss:$8 sps:$4 sm:$0xff]   ;;  %v1012_v26 = vld [vmem:[%s1122_s15 + $0x20] ss:$8 sps:$4 sm:$0xff]   ;;  %v1014_v28 = vld [vmem:[%s1122_s15 + $0x34] ss:$8 sps:$4 sm:$0xff]  }
  0x15   : > { %v1010_v25 = vld [vmem:[%s1122_s15 + $0x64] ss:$8 sps:$4 sm:$0xff]   ;;  %v1013_v27 = vld [vmem:[%s1122_s15 + $0x60] ss:$8 sps:$4 sm:$0xff]   ;;  %v1016_v29 = vld [vmem:[%s1122_s15 + $0x74] ss:$8 sps:$4 sm:$0xff]  }
  0x16   : > { %880 = vmatpush3.bf16.msra.mxu0 %v985_v5  ;;  %949 = vmatpush3.bf16.msra.mxu1 %v985_v5  ;;  %v1018_v30 = vld [vmem:[%s1122_s15 + $0x30] ss:$8 sps:$4 sm:$0xff]   ;;  %v1164_v38 = vld [vmem:[%s1237_s2] ss:$0 sm:$0xff] }
  0x17   : > { %881 = vmatprep.subr.bf16.mxu0 %v986_v6  ;;  %942 = vmatprep.subr.bf16.mxu1 %v986_v6  ;;  %v1019_v31 = vld [vmem:[%s1122_s15 + $0x70] ss:$8 sps:$4 sm:$0xff]   ;;  %v1169_v41 = vld [vmem:[%s1238_s3] ss:$0 sm:$0xff]  ;;  %s1180_s15 = scalar_lea.vmem %s1239_s4, %s874_s10 }
  0x1a   : > { %882 = vmatpush3.bf16.msra.mxu0 %v987_v7  ;;  %950 = vmatpush3.bf16.msra.mxu1 %v987_v7 }
  0x1b   : > { %883 = vmatprep.subr.bf16.mxu0 %v988_v8  ;;  %943 = vmatprep.subr.bf16.mxu1 %v988_v8 }
  0x1e   : > { %884 = vmatpush3.bf16.msra.mxu0 %v989_v9  ;;  %951 = vmatpush3.bf16.msra.mxu1 %v989_v9 }
  0x1f   : > { %885 = vmatprep.subr.bf16.mxu0 %v990_v10  ;;  %944 = vmatprep.subr.bf16.mxu1 %v990_v10 }
  0x22   : > { %886 = vmatpush3.bf16.msra.mxu0 %v991_v13  ;;  %952 = vmatpush3.bf16.msra.mxu1 %v991_v13 }
  0x23   : > { %887 = vmatprep.subr.bf16.mxu0 %v992_v14  ;;  %945 = vmatprep.subr.bf16.mxu1 %v992_v14 }
  0x26   : > { %888 = vmatpush3.bf16.msra.mxu0 %v993_v15  ;;  %953 = vmatpush3.bf16.msra.mxu1 %v993_v15 }
  0x27   : > { %889 = vmatprep.subr.bf16.mxu0 %v994_v16  ;;  %946 = vmatprep.subr.bf16.mxu1 %v994_v16 }
  0x2a   : > { %890 = vmatpush3.bf16.msra.mxu0 %v995_v17  ;;  %954 = vmatpush3.bf16.msra.mxu1 %v995_v17 }
  0x2d   : > { %548 = vmatmul.mubr.bf16.vlgmr.msra.gmra.mxu0 %v996_v18  ;;  %580 = vmatmul.mubr.bf16.vlgmr.msra.gmra.mxu1 %v999_v19 }
  0x2e   : > { %555 = vmatprep.mubr.bf16.mxu0 %v1002_v20  ;;  %587 = vmatprep.mubr.bf16.mxu1 %v1004_v21 }
  0x35   : > { %556 = vmatmul.mubr.bf16.gmra.mxu0 %v1006_v22  ;;  %588 = vmatmul.mubr.bf16.gmra.mxu1 %v1007_v23 }
  0x36   : > { %563 = vmatprep.mubr.bf16.mxu0 %v1008_v24  ;;  %595 = vmatprep.mubr.bf16.mxu1 %v1010_v25 }
  0x3d   : > { %564 = vmatmul.mubr.bf16.gmra.mxu0 %v1012_v26  ;;  %596 = vmatmul.mubr.bf16.gmra.mxu1 %v1013_v27 }
  0x3e   : > { %571 = vmatprep.mubr.bf16.mxu0 %v1014_v28  ;;  %603 = vmatprep.mubr.bf16.mxu1 %v1016_v29 }
  0x45   : > { %572 = vmatmul.mubr.bf16.gmra.mxu0 %v1018_v30  ;;  %604 = vmatmul.mubr.bf16.gmra.mxu1 %v1019_v31 }
  0xed   : > { %v891_v32 = vpop.f32.mrf.mxu0  ;;  %v915_v33 = vpop.f32.mrf.mxu1 }
  0xef   : > { %v892_v34 = vpop.f32.mrf.mxu0  ;;  %v916_v35 = vpop.f32.mrf.mxu1 }
  0xf0   : > { %v893_v36 = vadd.f32 %v892_v34, %v891_v32  ;;  %v917_v37 = vadd.f32 %v916_v35, %v915_v33 }
  0xf1   : > { %v894_v39 = vpop.f32.mrf.mxu0  ;;  %v918_v40 = vpop.f32.mrf.mxu1 }
  0xf2   : > { %v670_v44 = vmul.f32 %v893_v36, %v1164_v38  ;;  %v678_v45 = vmul.f32 %v917_v37, %v1164_v38 }
  0xf3   : > { %v895_v42 = vpop.f32.mrf.mxu0  ;;  %v919_v43 = vpop.f32.mrf.mxu1 }
  0xf4   : > { %v896_v46 = vadd.f32 %v895_v42, %v894_v39  ;;  %v920_v47 = vadd.f32 %v919_v43, %v918_v40  ;;  %v693_v50 = vadd.f32 %v1169_v41, %v670_v44  ;;  %v701_v51 = vadd.f32 %v1169_v41, %v678_v45 }
  0xf5   : > { %v897_v48 = vpop.f32.mrf.mxu0  ;;  %v921_v49 = vpop.f32.mrf.mxu1 }
  0xf6   : > { %v709_v54 = vmax.f32 %v693_v50, 0.0  ;;  %v717_v55 = vmax.f32 %v701_v51, 0.0  ;;  %v671_v56 = vmul.f32 %v896_v46, %v1164_v38  ;;  %v679_v57 = vmul.f32 %v920_v47, %v1164_v38 }
  0xf7   : > { %v898_v52 = vpop.f32.mrf.mxu0  ;;  %v922_v53 = vpop.f32.mrf.mxu1 }
  0xf8   : > { %v899_v58 = vadd.f32 %v898_v52, %v897_v48  ;;  %v923_v59 = vadd.f32 %v922_v53, %v921_v49  ;;  %725 = vst [vmem:[%s1180_s15] sm:$0xff] %v709_v54  ;;  %733 = vst [vmem:[%s1180_s15 + $0x40] sm:$0xff] %v717_v55  ;;  %v694_v62 = vadd.f32 %v1169_v41, %v671_v56 }
  0xf9   : > { %v900_v60 = vpop.f32.mrf.mxu0  ;;  %v924_v61 = vpop.f32.mrf.mxu1  ;;  %v702_v63 = vadd.f32 %v1169_v41, %v679_v57 }
  0xfa   : > { %v710_v2 = vmax.f32 %v694_v62, 0.0  ;;  %v672_v6 = vmul.f32 %v899_v58, %v1164_v38  ;;  %v680_v7 = vmul.f32 %v923_v59, %v1164_v38 }
  0xfb   : > { %v901_v0 = vpop.f32.mrf.mxu0  ;;  %v925_v1 = vpop.f32.mrf.mxu1  ;;  %v718_v3 = vmax.f32 %v702_v63, 0.0 }
  0xfc   : > { %v902_v4 = vadd.f32 %v901_v0, %v900_v60  ;;  %v926_v5 = vadd.f32 %v925_v1, %v924_v61  ;;  %726 = vst [vmem:[%s1180_s15 + $0x8] sm:$0xff] %v710_v2  ;;  %v695_v10 = vadd.f32 %v1169_v41, %v672_v6  ;;  %v703_v11 = vadd.f32 %v1169_v41, %v680_v7 }
  0xfd   : > { %v903_v8 = vpop.f32.mrf.mxu0  ;;  %v927_v9 = vpop.f32.mrf.mxu1  ;;  %734 = vst [vmem:[%s1180_s15 + $0x48] sm:$0xff] %v718_v3 }
  0xfe   : > { %v673_v14 = vmul.f32 %v902_v4, %v1164_v38  ;;  %v681_v15 = vmul.f32 %v926_v5, %v1164_v38  ;;  %v711_v18 = vmax.f32 %v695_v10, 0.0  ;;  %v719_v19 = vmax.f32 %v703_v11, 0.0 }
  0xff   : > { %v904_v12 = vpop.f32.mrf.mxu0  ;;  %v928_v13 = vpop.f32.mrf.mxu1 }
 0x100   : > { %v905_v16 = vadd.f32 %v904_v12, %v903_v8  ;;  %v929_v17 = vadd.f32 %v928_v13, %v927_v9  ;;  %v696_v22 = vadd.f32 %v1169_v41, %v673_v14  ;;  %v704_v23 = vadd.f32 %v1169_v41, %v681_v15  ;;  %727 = vst [vmem:[%s1180_s15 + $0x10] sm:$0xff] %v711_v18 }
 0x101   : > { %v906_v20 = vpop.f32.mrf.mxu0  ;;  %v930_v21 = vpop.f32.mrf.mxu1  ;;  %735 = vst [vmem:[%s1180_s15 + $0x50] sm:$0xff] %v719_v19 }
 0x102   : > { %v712_v26 = vmax.f32 %v696_v22, 0.0  ;;  %v720_v27 = vmax.f32 %v704_v23, 0.0  ;;  %v674_v28 = vmul.f32 %v905_v16, %v1164_v38  ;;  %v682_v29 = vmul.f32 %v929_v17, %v1164_v38 }
 0x103   : > { %v907_v24 = vpop.f32.mrf.mxu0  ;;  %v931_v25 = vpop.f32.mrf.mxu1 }
 0x104   : > { %v908_v30 = vadd.f32 %v907_v24, %v906_v20  ;;  %v932_v31 = vadd.f32 %v931_v25, %v930_v21  ;;  %728 = vst [vmem:[%s1180_s15 + $0x18] sm:$0xff] %v712_v26  ;;  %736 = vst [vmem:[%s1180_s15 + $0x58] sm:$0xff] %v720_v27  ;;  %v697_v34 = vadd.f32 %v1169_v41, %v674_v28 }
 0x105   : > { %v909_v32 = vpop.f32.mrf.mxu0  ;;  %v933_v33 = vpop.f32.mrf.mxu1  ;;  %v705_v35 = vadd.f32 %v1169_v41, %v682_v29 }
 0x106   : > { %v713_v39 = vmax.f32 %v697_v34, 0.0  ;;  %v675_v44 = vmul.f32 %v908_v30, %v1164_v38  ;;  %v683_v45 = vmul.f32 %v932_v31, %v1164_v38 }
 0x107   : > { %v910_v36 = vpop.f32.mrf.mxu0  ;;  %v934_v37 = vpop.f32.mrf.mxu1  ;;  %v721_v40 = vmax.f32 %v705_v35, 0.0 }
 0x108   : > { %v911_v42 = vadd.f32 %v910_v36, %v909_v32  ;;  %v935_v43 = vadd.f32 %v934_v37, %v933_v33  ;;  %729 = vst [vmem:[%s1180_s15 + $0x20] sm:$0xff] %v713_v39  ;;  %v698_v48 = vadd.f32 %v1169_v41, %v675_v44  ;;  %v706_v49 = vadd.f32 %v1169_v41, %v683_v45 }
 0x109   : > { %v912_v46 = vpop.f32.mrf.mxu0  ;;  %v936_v47 = vpop.f32.mrf.mxu1  ;;  %737 = vst [vmem:[%s1180_s15 + $0x60] sm:$0xff] %v721_v40 }
 0x10a   : > { %v676_v52 = vmul.f32 %v911_v42, %v1164_v38  ;;  %v684_v53 = vmul.f32 %v935_v43, %v1164_v38  ;;  %v714_v56 = vmax.f32 %v698_v48, 0.0  ;;  %v722_v57 = vmax.f32 %v706_v49, 0.0 }
 0x10b   : > { %v913_v50 = vpop.f32.mrf.mxu0  ;;  %v937_v51 = vpop.f32.mrf.mxu1 }
 0x10c   : > { %v914_v54 = vadd.f32 %v913_v50, %v912_v46  ;;  %v938_v55 = vadd.f32 %v937_v51, %v936_v47  ;;  %v699_v58 = vadd.f32 %v1169_v41, %v676_v52  ;;  %v707_v59 = vadd.f32 %v1169_v41, %v684_v53  ;;  %730 = vst [vmem:[%s1180_s15 + $0x28] sm:$0xff] %v714_v56 }
 0x10d   : > { %738 = vst [vmem:[%s1180_s15 + $0x68] sm:$0xff] %v722_v57 }
 0x10e   : > { %v715_v60 = vmax.f32 %v699_v58, 0.0  ;;  %v723_v61 = vmax.f32 %v707_v59, 0.0  ;;  %v677_v62 = vmul.f32 %v914_v54, %v1164_v38  ;;  %v685_v63 = vmul.f32 %v938_v55, %v1164_v38 }
 0x110   : > { %731 = vst [vmem:[%s1180_s15 + $0x30] sm:$0xff] %v715_v60  ;;  %739 = vst [vmem:[%s1180_s15 + $0x70] sm:$0xff] %v723_v61  ;;  %v700_v0 = vadd.f32 %v1169_v41, %v677_v62  ;;  %v708_v1 = vadd.f32 %v1169_v41, %v685_v63 }
 0x112   : > { %v716_v2 = vmax.f32 %v700_v0, 0.0  ;;  %v724_v3 = vmax.f32 %v708_v1, 0.0 }
 0x114   : > { %732 = vst [vmem:[%s1180_s15 + $0x38] sm:$0xff] %v716_v2  ;;  %740 = vst [vmem:[%s1180_s15 + $0x78] sm:$0xff] %v724_v3 }
 0x115 PF: > { %s14_s17 = sadd.s32 1, %s1042_s17   ;;  %s1240_s15 = smov %s1038_s16 }
 0x116   : > { %p11_p5 = scmp.ge.s32.totalorder %s14_s17, 4   ;;  %s1241_s16 = smov %s1243_s18 }
 0x118   :  { %13 = sbr.rel (!%p11_p5) target bundleno = 2 (0x2), region = 77 }

// kernel: catted_generator_forward.8
= control target key start
LH: loop header
LB: loop body
LE: loop exit
PB: predicated region body
PF: predicated region fallthrough
CT: control target
= control target key end

     0   :  { %vm70_vm0 = vcmask 523264   ;;  %s6269_s0 = inlined_call_operand.vmem [shape: f32[64,64], index: 0, kind: input, shape index: {}]   ;;  %s6270_s1 = inlined_call_operand.vmem [shape: bf16[9,64,64], index: 1, kind: input, shape index: {}]   ;;  %s6271_s2 = inlined_call_operand.vmem [shape: bf16[9,64,64], index: 2, kind: input, shape index: {}]   ;;  %s6272_s5 = inlined_call_operand.vmem [shape: bf16[9,64,64], index: 5, kind: input, shape index: {}]   ;;  %s6273_s3 = inlined_call_operand.vmem [shape: f32[1,64], index: 3, kind: input, shape index: {}]   ;;  %s6274_s4 = inlined_call_operand.vmem [shape: f32[1,64], index: 4, kind: input, shape index: {}]   ;;  %s6275_s6 = inlined_call_operand.vmem [shape: f32[1,64], index: 6, kind: input, shape index: {}]   ;;  %s6276_s7 = inlined_call_operand.vmem [shape: f32[1,64], index: 7, kind: input, shape index: {}]   ;;  %s6277_s8 = inlined_call_operand.vmem [shape: f32[64,64], index: 8, kind: output, shape index: {}]  }
   0x1   :  { %v36_v0 = vld [vmem:[%s6269_s0 + $0x30] sm:$0xff]  ;;  %v37_v1 = vld [vmem:[%s6269_s0 + $0x38] sm:$0xff]  ;;  %v34_v2 = vld [vmem:[%s6269_s0 + $0x20] sm:$0xff] }
   0x2   :  { %v5360_v3 = vpack.c.bf16 %v37_v1, %v36_v0  ;;  %v35_v4 = vld [vmem:[%s6269_s0 + $0x28] sm:$0xff]  ;;  %v32_v6 = vld [vmem:[%s6269_s0 + $0x10] sm:$0xff]  ;;  %v33_v7 = vld [vmem:[%s6269_s0 + $0x18] sm:$0xff] }
   0x3   :  { %v5365_v5 = vpack.c.bf16 %v35_v4, %v34_v2  ;;  %v5378_v8 = vld [vmem:[%s6270_s1] sm:$0xff]   ;;  %v5387_v10 = vpack.c.bf16 %v33_v7, %v32_v6  ;;  %v31_v12 = vld [vmem:[%s6269_s0 + $0x8] sm:$0xff]  ;;  %v5163_v14 = vld [vmem:[%s6271_s2 + $0x38] sm:$0xff]  }
   0x4   :  { %4579 = vmatprep.subr.bf16.mxu0 %v5360_v3  ;;  %4595 = vmatprep.subr.bf16.mxu1 %v5360_v3  ;;  %v5156_v9 = vld [vmem:[%s6270_s1 + $0x20] sm:$0xff]   ;;  %v5157_v15 = vld [vmem:[%s6270_s1 + $0x8] sm:$0xff]   ;;  %v5164_v17 = vld [vmem:[%s6271_s2 + $0x18] sm:$0xff]  }
   0x5   :  { %4580 = vmatpush3.bf16.msra.mxu0 %v5360_v3  ;;  %4596 = vmatpush3.bf16.msra.mxu1 %v5360_v3  ;;  %v30_v11 = vld [vmem:[%s6269_s0] sm:$0xff]  ;;  %v5158_v16 = vld [vmem:[%s6270_s1 + $0x28] sm:$0xff]   ;;  %v5159_v18 = vld [vmem:[%s6270_s1 + $0x10] sm:$0xff]  }
   0x6   :  { %4581 = vmatprep.subr.bf16.mxu0 %v5365_v5  ;;  %4597 = vmatprep.subr.bf16.mxu1 %v5365_v5  ;;  %v5402_v13 = vpack.c.bf16 %v31_v12, %v30_v11  ;;  %v5160_v19 = vld [vmem:[%s6270_s1 + $0x30] sm:$0xff]   ;;  %v5161_v22 = vld [vmem:[%s6270_s1 + $0x18] sm:$0xff]   ;;  %v5167_v24 = vld [vmem:[%s6271_s2 + $0x28] sm:$0xff]  }
   0x7   :  { %4587 = vmatprep.mubr.msk.bf16.mxu0 %vm70_vm0, %v5378_v8  ;;  %4603 = vmatprep.mubr.msk.bf16.mxu1 %vm70_vm0, %v5156_v9  ;;  %v5165_v20 = vld [vmem:[%s6271_s2 + $0x30] sm:$0xff]   ;;  %v5162_v23 = vld [vmem:[%s6270_s1 + $0x38] sm:$0xff]   ;;  %v5168_v25 = vld [vmem:[%s6271_s2 + $0x8] sm:$0xff]  }
   0x8   :  { %v5166_v21 = vld [vmem:[%s6271_s2 + $0x10] sm:$0xff]   ;;  %v5169_v26 = vld [vmem:[%s6271_s2 + $0x20] sm:$0xff]   ;;  %v5172_v53 = vld [vmem:[%s6270_s1 + $0x48] sm:$0xff]  }
   0x9   :  { %4582 = vmatpush3.bf16.msra.mxu0 %v5365_v5  ;;  %4598 = vmatpush3.bf16.msra.mxu1 %v5365_v5  ;;  %v5170_v27 = vld [vmem:[%s6271_s2] sm:$0xff]   ;;  %v5173_v54 = vld [vmem:[%s6270_s1 + $0x50] sm:$0xff]   ;;  %v5174_v55 = vld [vmem:[%s6270_s1 + $0x58] sm:$0xff]  }
   0xa   :  { %4583 = vmatprep.subr.bf16.mxu0 %v5387_v10  ;;  %4599 = vmatprep.subr.bf16.mxu1 %v5387_v10  ;;  %v5171_v51 = vld [vmem:[%s6270_s1 + $0x40] sm:$0xff]   ;;  %v5176_v57 = vld [vmem:[%s6270_s1 + $0x68] sm:$0xff]   ;;  %v5177_v58 = vld [vmem:[%s6270_s1 + $0x70] sm:$0xff]  }
   0xb   :  { %v5175_v56 = vld [vmem:[%s6270_s1 + $0x60] sm:$0xff]   ;;  %v5178_v59 = vld [vmem:[%s6270_s1 + $0x78] sm:$0xff]   ;;  %v5180_v61 = vld [vmem:[%s6270_s1 + $0x88] sm:$0xff]  }
   0xc   :  { %v5179_v60 = vld [vmem:[%s6270_s1 + $0x80] sm:$0xff]   ;;  %v5181_v62 = vld [vmem:[%s6270_s1 + $0x90] sm:$0xff]   ;;  %v5182_v63 = vld [vmem:[%s6270_s1 + $0x98] sm:$0xff]  }
   0xd   :  { %4584 = vmatpush3.bf16.msra.mxu0 %v5387_v10  ;;  %4600 = vmatpush3.bf16.msra.mxu1 %v5387_v10  ;;  %v5183_v0 = vld [vmem:[%s6270_s1 + $0xa0] sm:$0xff]   ;;  %v5184_v1 = vld [vmem:[%s6270_s1 + $0xa8] sm:$0xff]   ;;  %v5185_v2 = vld [vmem:[%s6270_s1 + $0xb0] sm:$0xff]  }
   0xe   :  { %4585 = vmatprep.subr.bf16.mxu0 %v5402_v13  ;;  %4601 = vmatprep.subr.bf16.mxu1 %v5402_v13  ;;  %v5186_v4 = vld [vmem:[%s6270_s1 + $0xb8] sm:$0xff]   ;;  %v5187_v6 = vld [vmem:[%s6270_s1 + $0xc0] sm:$0xff]   ;;  %v5188_v9 = vld [vmem:[%s6270_s1 + $0xc8] sm:$0xff]  }
   0xf   :  { %v5199_v7 = vld [vmem:[%s6271_s2 + $0x58] sm:$0xff]   ;;  %v5200_v11 = vld [vmem:[%s6271_s2 + $0x50] sm:$0xff]  }
  0x10   :  { %v5189_v12 = vld [vmem:[%s6270_s1 + $0xd0] sm:$0xff]  }
  0x11   :  { %4586 = vmatpush3.bf16.msra.mxu0 %v5402_v13  ;;  %4602 = vmatpush3.bf16.msra.mxu1 %v5402_v13 }
  0x12   :  { %4611 = vmatprep.subr.bf16.mxu0 %v5163_v14  ;;  %4627 = vmatprep.subr.bf16.mxu1 %v5164_v17 }
  0x14   :  { %4588 = vmatmul.mubr.msk.bf16.vlgmr.msra.gmra.mxu0 %vm70_vm0, %v5157_v15  ;;  %4604 = vmatmul.mubr.msk.bf16.vlgmr.msra.gmra.mxu1 %vm70_vm0, %v5158_v16  ;;  %v5190_v15 = vld [vmem:[%s6270_s1 + $0xd8] sm:$0xff]   ;;  %v5202_v16 = vld [vmem:[%s6271_s2 + $0x40] sm:$0xff]  }
  0x15   :  { %4591 = vmatprep.mubr.msk.bf16.mxu0 %vm70_vm0, %v5159_v18  ;;  %4607 = vmatprep.mubr.msk.bf16.mxu1 %vm70_vm0, %v5160_v19  ;;  %v5203_v18 = vld [vmem:[%s6271_s2 + $0x78] sm:$0xff]   ;;  %v5192_v19 = vld [vmem:[%s6270_s1 + $0xe8] sm:$0xff]  }
  0x16   :  { %4612 = vmatpush3.bf16.msra.mxu0 %v5163_v14  ;;  %4628 = vmatpush3.bf16.msra.mxu1 %v5164_v17  ;;  %v5201_v14 = vld [vmem:[%s6271_s2 + $0x48] sm:$0xff]   ;;  %v5191_v17 = vld [vmem:[%s6270_s1 + $0xe0] sm:$0xff]  }
  0x17   :  { %4613 = vmatprep.subr.bf16.mxu0 %v5165_v20  ;;  %4629 = vmatprep.subr.bf16.mxu1 %v5166_v21 }
  0x1a   :  { %4614 = vmatpush3.bf16.msra.mxu0 %v5165_v20  ;;  %4630 = vmatpush3.bf16.msra.mxu1 %v5166_v21  ;;  %v5193_v20 = vld [vmem:[%s6270_s1 + $0xf0] sm:$0xff]   ;;  %v5194_v21 = vld [vmem:[%s6270_s1 + $0xf8] sm:$0xff]  }
  0x1b   :  { %4615 = vmatprep.subr.bf16.mxu0 %v5167_v24  ;;  %4631 = vmatprep.subr.bf16.mxu1 %v5168_v25 }
  0x1c   :  { %4592 = vmatmul.mubr.msk.bf16.gmra.mxu0 %vm70_vm0, %v5161_v22  ;;  %4608 = vmatmul.mubr.msk.bf16.gmra.mxu1 %vm70_vm0, %v5162_v23  ;;  %v5195_v22 = vld [vmem:[%s6270_s1 + $0x100] sm:$0xff]  }
  0x1e   :  { %4616 = vmatpush3.bf16.msra.mxu0 %v5167_v24  ;;  %4632 = vmatpush3.bf16.msra.mxu1 %v5168_v25 }
  0x1f   :  { %4617 = vmatprep.subr.bf16.mxu0 %v5169_v26  ;;  %4633 = vmatprep.subr.bf16.mxu1 %v5170_v27 }
  0x22   :  { %4618 = vmatpush3.bf16.msra.mxu0 %v5169_v26  ;;  %4634 = vmatpush3.bf16.msra.mxu1 %v5170_v27 }
  0x23   :  { %4643 = vmatprep.subr.bf16.mxu0 %v5360_v3  ;;  %4659 = vmatprep.subr.bf16.mxu1 %v5199_v7 }
  0xd4   :  { %v4589_v28 = vpop.f32.mrf.mxu0  ;;  %v4605_v29 = vpop.f32.mrf.mxu1 }
  0xd6   :  { %v117_v30 = vpop.f32.mrf.mxu0  ;;  %v235_v31 = vpop.f32.mrf.mxu1 }
  0xd8   :  { %v4590_v32 = vpop.f32.mrf.mxu0  ;;  %v4606_v33 = vpop.f32.mrf.mxu1 }
  0xd9   :  { %v149_v34 = vpack.c.bf16 %v4590_v32, %v4589_v28  ;;  %v267_v39 = vpack.c.bf16 %v4606_v33, %v4605_v29 }
  0xda   :  { %v120_v35 = vpop.f32.mrf.mxu0  ;;  %v238_v36 = vpop.f32.mrf.mxu1 }
  0xdb   :  { %v148_v37 = vpack.c.bf16 %v120_v35, %v117_v30  ;;  %v266_v38 = vpack.c.bf16 %v238_v36, %v235_v31 }
  0xdc   :  { %v4593_v40 = vpop.f32.mrf.mxu0  ;;  %v4609_v41 = vpop.f32.mrf.mxu1 }
  0xdd   :  { %4619 = vmatprep.mubr.msk.bf16.mxu0 %vm70_vm0, %v266_v38  ;;  %4635 = vmatprep.mubr.msk.bf16.mxu1 %vm70_vm0, %v148_v37 }
  0xde   :  { %v133_v42 = vpop.f32.mrf.mxu0  ;;  %v251_v43 = vpop.f32.mrf.mxu1  ;;  %4620 = vmatmul.mubr.msk.bf16.vlgmr.msra.gmra.mxu0 %vm70_vm0, %v267_v39  ;;  %4636 = vmatmul.mubr.msk.bf16.vlgmr.msra.gmra.mxu1 %vm70_vm0, %v149_v34 }
  0xdf   :  { %4644 = vmatpush3.bf16.msra.mxu0 %v5360_v3  ;;  %4660 = vmatpush3.bf16.msra.mxu1 %v5199_v7 }
  0xe0   :  { %v4594_v44 = vpop.f32.mrf.mxu0  ;;  %v4610_v45 = vpop.f32.mrf.mxu1  ;;  %4645 = vmatprep.subr.bf16.mxu0 %v5365_v5  ;;  %4661 = vmatprep.subr.bf16.mxu1 %v5200_v11 }
  0xe1   :  { %v151_v46 = vpack.c.bf16 %v4594_v44, %v4593_v40  ;;  %v269_v52 = vpack.c.bf16 %v4610_v45, %v4609_v41 }
  0xe2   :  { %v136_v47 = vpop.f32.mrf.mxu0  ;;  %v254_v48 = vpop.f32.mrf.mxu1 }
  0xe3   :  { %v150_v49 = vpack.c.bf16 %v136_v47, %v133_v42  ;;  %v268_v50 = vpack.c.bf16 %v254_v48, %v251_v43  ;;  %4646 = vmatpush3.bf16.msra.mxu0 %v5365_v5  ;;  %4662 = vmatpush3.bf16.msra.mxu1 %v5200_v11 }
  0xe4   :  { %4647 = vmatprep.subr.bf16.mxu0 %v5387_v10  ;;  %4663 = vmatprep.subr.bf16.mxu1 %v5201_v14 }
  0xe5   :  { %4623 = vmatprep.mubr.msk.bf16.mxu0 %vm70_vm0, %v268_v50  ;;  %4639 = vmatprep.mubr.msk.bf16.mxu1 %vm70_vm0, %v150_v49  ;;  %v5204_v49 = vld [vmem:[%s6271_s2 + $0x70] sm:$0xff]  }
  0xe6   :  { %4624 = vmatmul.mubr.msk.bf16.gmra.mxu0 %vm70_vm0, %v269_v52  ;;  %4640 = vmatmul.mubr.msk.bf16.gmra.mxu1 %vm70_vm0, %v151_v46  ;;  %v5205_v52 = vld [vmem:[%s6271_s2 + $0x68] sm:$0xff]  }
  0xe7   :  { %4648 = vmatpush3.bf16.msra.mxu0 %v5387_v10  ;;  %4651 = vmatprep.mubr.msk.bf16.mxu0 %vm70_vm0, %v5171_v51 }
  0xe8   :  { %4649 = vmatprep.subr.bf16.mxu0 %v5402_v13  ;;  %4664 = vmatpush3.bf16.msra.mxu1 %v5201_v14  ;;  %v5210_v14 = vld [vmem:[%s6271_s2 + $0x80] sm:$0xff]  }
  0xe9   :  { %4665 = vmatprep.subr.bf16.mxu1 %v5202_v16 }
  0xeb   :  { %4650 = vmatpush3.bf16.msra.mxu0 %v5402_v13 }
  0xec   :  { %4675 = vmatprep.subr.bf16.mxu0 %v5360_v3  ;;  %4666 = vmatpush3.bf16.msra.mxu1 %v5202_v16 }
  0xed   :  { %4691 = vmatprep.subr.bf16.mxu1 %v5203_v18 }
  0xee   :  { %4652 = vmatmul.mubr.msk.bf16.vlgmr.msra.gmra.mxu0 %vm70_vm0, %v5172_v53 }
  0xef   :  { %4676 = vmatpush3.bf16.msra.mxu0 %v5360_v3  ;;  %4655 = vmatprep.mubr.msk.bf16.mxu0 %vm70_vm0, %v5173_v54 }
  0xf0   :  { %4677 = vmatprep.subr.bf16.mxu0 %v5365_v5 }
  0xf3   :  { %4678 = vmatpush3.bf16.msra.mxu0 %v5365_v5 }
  0xf4   :  { %4679 = vmatprep.subr.bf16.mxu0 %v5387_v10 }
  0xf6   :  { %4656 = vmatmul.mubr.msk.bf16.gmra.mxu0 %vm70_vm0, %v5174_v55 }
  0xf7   :  { %4680 = vmatpush3.bf16.msra.mxu0 %v5387_v10  ;;  %4683 = vmatprep.mubr.msk.bf16.mxu0 %vm70_vm0, %v5175_v56 }
  0xf8   :  { %4681 = vmatprep.subr.bf16.mxu0 %v5402_v13 }
  0xfb   :  { %4682 = vmatpush3.bf16.msra.mxu0 %v5402_v13 }
  0xfc   :  { %4707 = vmatprep.subr.bf16.mxu0 %v5360_v3 }
  0xfe   :  { %4684 = vmatmul.mubr.msk.bf16.vlgmr.msra.gmra.mxu0 %vm70_vm0, %v5176_v57  ;;  %v5206_v57 = vld [vmem:[%s6271_s2 + $0x60] sm:$0xff]  }
  0xff   :  { %4708 = vmatpush3.bf16.msra.mxu0 %v5360_v3  ;;  %4687 = vmatprep.mubr.msk.bf16.mxu0 %vm70_vm0, %v5177_v58 }
 0x100   :  { %4709 = vmatprep.subr.bf16.mxu0 %v5365_v5 }
 0x103   :  { %4710 = vmatpush3.bf16.msra.mxu0 %v5365_v5 }
 0x104   :  { %4711 = vmatprep.subr.bf16.mxu0 %v5387_v10 }
 0x106   :  { %4688 = vmatmul.mubr.msk.bf16.gmra.mxu0 %vm70_vm0, %v5178_v59 }
 0x107   :  { %4712 = vmatpush3.bf16.msra.mxu0 %v5387_v10  ;;  %4715 = vmatprep.mubr.msk.bf16.mxu0 %vm70_vm0, %v5179_v60  ;;  %v5207_v60 = vld [vmem:[%s6271_s2 + $0x98] sm:$0xff]  }
 0x108   :  { %4713 = vmatprep.subr.bf16.mxu0 %v5402_v13 }
 0x10b   :  { %4714 = vmatpush3.bf16.msra.mxu0 %v5402_v13 }
 0x10c   :  { %4739 = vmatprep.subr.bf16.mxu0 %v5360_v3 }
 0x10e   :  { %4716 = vmatmul.mubr.msk.bf16.vlgmr.msra.gmra.mxu0 %vm70_vm0, %v5180_v61 }
 0x10f   :  { %4740 = vmatpush3.bf16.msra.mxu0 %v5360_v3  ;;  %4719 = vmatprep.mubr.msk.bf16.mxu0 %vm70_vm0, %v5181_v62 }
 0x110   :  { %4741 = vmatprep.subr.bf16.mxu0 %v5365_v5 }
 0x113   :  { %4742 = vmatpush3.bf16.msra.mxu0 %v5365_v5 }
 0x114   :  { %4743 = vmatprep.subr.bf16.mxu0 %v5387_v10 }
 0x116   :  { %4720 = vmatmul.mubr.msk.bf16.gmra.mxu0 %vm70_vm0, %v5182_v63 }
 0x117   :  { %4744 = vmatpush3.bf16.msra.mxu0 %v5387_v10  ;;  %4747 = vmatprep.mubr.msk.bf16.mxu0 %vm70_vm0, %v5183_v0 }
 0x118   :  { %4745 = vmatprep.subr.bf16.mxu0 %v5402_v13 }
 0x11b   :  { %4746 = vmatpush3.bf16.msra.mxu0 %v5402_v13 }
 0x11c   :  { %4771 = vmatprep.subr.bf16.mxu0 %v5360_v3 }
 0x11e   :  { %4748 = vmatmul.mubr.msk.bf16.vlgmr.msra.gmra.mxu0 %vm70_vm0, %v5184_v1  ;;  %v5208_v1 = vld [vmem:[%s6271_s2 + $0x90] sm:$0xff]  }
 0x11f   :  { %4772 = vmatpush3.bf16.msra.mxu0 %v5360_v3  ;;  %4751 = vmatprep.mubr.msk.bf16.mxu0 %vm70_vm0, %v5185_v2 }
 0x120   :  { %4773 = vmatprep.subr.bf16.mxu0 %v5365_v5 }
 0x123   :  { %4774 = vmatpush3.bf16.msra.mxu0 %v5365_v5 }
 0x124   :  { %4775 = vmatprep.subr.bf16.mxu0 %v5387_v10 }
 0x126   :  { %4752 = vmatmul.mubr.msk.bf16.gmra.mxu0 %vm70_vm0, %v5186_v4 }
 0x127   :  { %4776 = vmatpush3.bf16.msra.mxu0 %v5387_v10  ;;  %4779 = vmatprep.mubr.msk.bf16.mxu0 %vm70_vm0, %v5187_v6  ;;  %v5209_v6 = vld [vmem:[%s6271_s2 + $0x88] sm:$0xff]  }
 0x128   :  { %4777 = vmatprep.subr.bf16.mxu0 %v5402_v13 }
 0x12b   :  { %4778 = vmatpush3.bf16.msra.mxu0 %v5402_v13 }
 0x12c   :  { %4803 = vmatprep.subr.bf16.mxu0 %v5360_v3 }
 0x12e   :  { %4780 = vmatmul.mubr.msk.bf16.vlgmr.msra.gmra.mxu0 %vm70_vm0, %v5188_v9 }
 0x12f   :  { %4804 = vmatpush3.bf16.msra.mxu0 %v5360_v3  ;;  %4783 = vmatprep.mubr.msk.bf16.mxu0 %vm70_vm0, %v5189_v12 }
 0x130   :  { %4805 = vmatprep.subr.bf16.mxu0 %v5365_v5 }
 0x133   :  { %4806 = vmatpush3.bf16.msra.mxu0 %v5365_v5 }
 0x134   :  { %4807 = vmatprep.subr.bf16.mxu0 %v5387_v10 }
 0x136   :  { %4784 = vmatmul.mubr.msk.bf16.gmra.mxu0 %vm70_vm0, %v5190_v15 }
 0x137   :  { %4808 = vmatpush3.bf16.msra.mxu0 %v5387_v10  ;;  %4811 = vmatprep.mubr.msk.bf16.mxu0 %vm70_vm0, %v5191_v17  ;;  %v5211_v17 = vld [vmem:[%s6271_s2 + $0xb8] sm:$0xff]  }
 0x138   :  { %4809 = vmatprep.subr.bf16.mxu0 %v5402_v13 }
 0x13b   :  { %4810 = vmatpush3.bf16.msra.mxu0 %v5402_v13 }
 0x13c   :  { %4835 = vmatprep.subr.bf16.mxu0 %v5360_v3 }
 0x13e   :  { %4812 = vmatmul.mubr.msk.bf16.vlgmr.msra.gmra.mxu0 %vm70_vm0, %v5192_v19 }
 0x13f   :  { %4836 = vmatpush3.bf16.msra.mxu0 %v5360_v3  ;;  %4815 = vmatprep.mubr.msk.bf16.mxu0 %vm70_vm0, %v5193_v20  ;;  %v5196_v3 = vld [vmem:[%s6270_s1 + $0x108] sm:$0xff]  }
 0x140   :  { %4837 = vmatprep.subr.bf16.mxu0 %v5365_v5 }
 0x143   :  { %4838 = vmatpush3.bf16.msra.mxu0 %v5365_v5  ;;  %v5197_v5 = vld [vmem:[%s6270_s1 + $0x110] sm:$0xff]  }
 0x144   :  { %4839 = vmatprep.subr.bf16.mxu0 %v5387_v10 }
 0x146   :  { %4816 = vmatmul.mubr.msk.bf16.gmra.mxu0 %vm70_vm0, %v5194_v21 }
 0x147   :  { %4840 = vmatpush3.bf16.msra.mxu0 %v5387_v10  ;;  %4843 = vmatprep.mubr.msk.bf16.mxu0 %vm70_vm0, %v5195_v22  ;;  %v5198_v10 = vld [vmem:[%s6270_s1 + $0x118] sm:$0xff]   ;;  %v5212_v22 = vld [vmem:[%s6271_s2 + $0xb0] sm:$0xff]  }
 0x148   :  { %4841 = vmatprep.subr.bf16.mxu0 %v5402_v13 }
 0x14b   :  { %4842 = vmatpush3.bf16.msra.mxu0 %v5402_v13 }
 0x14e   :  { %4844 = vmatmul.mubr.msk.bf16.vlgmr.msra.gmra.mxu0 %vm70_vm0, %v5196_v3 }
 0x14f   :  { %4847 = vmatprep.mubr.msk.bf16.mxu0 %vm70_vm0, %v5197_v5 }
 0x156   :  { %4848 = vmatmul.mubr.msk.bf16.gmra.mxu0 %vm70_vm0, %v5198_v10  ;;  %v5213_v10 = vld [vmem:[%s6271_s2 + $0xa8] sm:$0xff]  }
 0x157   :  { %4875 = vmatprep.mubr.msk.bf16.mxu0 %vm70_vm0, %v5378_v8 }
 0x19e   :  { %v4621_v23 = vpop.f32.mrf.mxu0  ;;  %v4637_v24 = vpop.f32.mrf.mxu1 }
 0x19f   :  { %v5651_v13 = vadd.f32 %v4637_v24, %v4621_v23 }
 0x1a0   :  { %v349_v25 = vpop.f32.mrf.mxu0  ;;  %v450_v26 = vpop.f32.mrf.mxu1 }
 0x1a1   :  { %v5653_v27 = vadd.f32 %v450_v26, %v349_v25 }
 0x1a2   :  { %v4622_v28 = vpop.f32.mrf.mxu0  ;;  %v4638_v29 = vpop.f32.mrf.mxu1 }
 0x1a3   :  { %v5655_v30 = vadd.f32 %v4638_v29, %v4622_v28  ;;  %v5214_v28 = vld [vmem:[%s6271_s2 + $0xa0] sm:$0xff]  }
 0x1a4   :  { %v5657_v31 = vpop.f32.mrf.mxu0  ;;  %v5659_v32 = vpop.f32.mrf.mxu1 }
 0x1a6   :  { %v4625_v33 = vpop.f32.mrf.mxu0  ;;  %v4641_v34 = vpop.f32.mrf.mxu1 }
 0x1a7   :  { %v5661_v35 = vadd.f32 %v4641_v34, %v4625_v33  ;;  %v5215_v34 = vld [vmem:[%s6271_s2 + $0xd8] sm:$0xff]  }
 0x1a8   :  { %v365_v8 = vpop.f32.mrf.mxu0  ;;  %v466_v36 = vpop.f32.mrf.mxu1 }
 0x1a9   :  { %v5663_v37 = vadd.f32 %v466_v36, %v365_v8 }
 0x1aa   :  { %v4626_v38 = vpop.f32.mrf.mxu0  ;;  %v4642_v39 = vpop.f32.mrf.mxu1 }
 0x1ab   :  { %v5665_v40 = vadd.f32 %v4642_v39, %v4626_v38 }
 0x1ac   :  { %v5667_v41 = vpop.f32.mrf.mxu0 }
 0x1ae   :  { %v4653_v42 = vpop.f32.mrf.mxu0 }
 0x1b0   :  { %v556_v43 = vpop.f32.mrf.mxu0 }
 0x1b2   :  { %v4654_v44 = vpop.f32.mrf.mxu0 }
 0x1b3   :  { %v588_v47 = vpack.c.bf16 %v4654_v44, %v4653_v42  ;;  %v5216_v42 = vld [vmem:[%s6271_s2 + $0xd0] sm:$0xff]  }
 0x1b4   :  { %v559_v45 = vpop.f32.mrf.mxu0 }
 0x1b5   :  { %v587_v46 = vpack.c.bf16 %v559_v45, %v556_v43  ;;  %v5217_v45 = vld [vmem:[%s6271_s2 + $0xc8] sm:$0xff]  }
 0x1b6   :  { %v4657_v48 = vpop.f32.mrf.mxu0 }
 0x1b7   :  { %4667 = vmatprep.mubr.msk.bf16.mxu1 %vm70_vm0, %v587_v46 }
 0x1b8   :  { %v572_v50 = vpop.f32.mrf.mxu0  ;;  %4668 = vmatmul.mubr.msk.bf16.vlgmr.msra.gmra.mxu1 %vm70_vm0, %v588_v47 }
 0x1b9   :  { %4692 = vmatpush3.bf16.msra.mxu1 %v5203_v18 }
 0x1ba   :  { %v4658_v51 = vpop.f32.mrf.mxu0  ;;  %4693 = vmatprep.subr.bf16.mxu1 %v5204_v49 }
 0x1bb   :  { %v590_v55 = vpack.c.bf16 %v4658_v51, %v4657_v48 }
 0x1bc   :  { %v575_v53 = vpop.f32.mrf.mxu0 }
 0x1bd   :  { %v589_v54 = vpack.c.bf16 %v575_v53, %v572_v50  ;;  %4694 = vmatpush3.bf16.msra.mxu1 %v5204_v49  ;;  %v5218_v50 = vld [vmem:[%s6271_s2 + $0xc0] sm:$0xff]   ;;  %v5219_v53 = vld [vmem:[%s6271_s2 + $0xf8] sm:$0xff]  }
 0x1be   :  { %v4685_v56 = vpop.f32.mrf.mxu0  ;;  %4695 = vmatprep.subr.bf16.mxu1 %v5205_v52 }
 0x1bf   :  { %4671 = vmatprep.mubr.msk.bf16.mxu1 %vm70_vm0, %v589_v54 }
 0x1c0   :  { %4672 = vmatmul.mubr.msk.bf16.gmra.mxu1 %vm70_vm0, %v590_v55  ;;  %v784_v58 = vpop.f32.mrf.mxu0 }
 0x1c1   :  { %4696 = vmatpush3.bf16.msra.mxu1 %v5205_v52 }
 0x1c2   :  { %v4686_v59 = vpop.f32.mrf.mxu0  ;;  %4697 = vmatprep.subr.bf16.mxu1 %v5206_v57 }
 0x1c3   :  { %v816_v63 = vpack.c.bf16 %v4686_v59, %v4685_v56 }
 0x1c4   :  { %v787_v61 = vpop.f32.mrf.mxu0 }
 0x1c5   :  { %v815_v62 = vpack.c.bf16 %v787_v61, %v784_v58  ;;  %4698 = vmatpush3.bf16.msra.mxu1 %v5206_v57  ;;  %v5220_v58 = vld [vmem:[%s6271_s2 + $0xf0] sm:$0xff]   ;;  %v5221_v61 = vld [vmem:[%s6271_s2 + $0xe8] sm:$0xff]  }
 0x1c6   :  { %v4689_v0 = vpop.f32.mrf.mxu0  ;;  %4723 = vmatprep.subr.bf16.mxu1 %v5207_v60 }
 0x1c7   :  { %4699 = vmatprep.mubr.msk.bf16.mxu1 %vm70_vm0, %v815_v62 }
 0x1c8   :  { %v800_v2 = vpop.f32.mrf.mxu0  ;;  %4700 = vmatmul.mubr.msk.bf16.vlgmr.msra.gmra.mxu1 %vm70_vm0, %v816_v63 }
 0x1c9   :  { %4724 = vmatpush3.bf16.msra.mxu1 %v5207_v60 }
 0x1ca   :  { %v4690_v4 = vpop.f32.mrf.mxu0  ;;  %4725 = vmatprep.subr.bf16.mxu1 %v5208_v1 }
 0x1cb   :  { %v818_v11 = vpack.c.bf16 %v4690_v4, %v4689_v0 }
 0x1cc   :  { %v803_v7 = vpop.f32.mrf.mxu0 }
 0x1cd   :  { %v817_v9 = vpack.c.bf16 %v803_v7, %v800_v2  ;;  %4726 = vmatpush3.bf16.msra.mxu1 %v5208_v1  ;;  %v5222_v2 = vld [vmem:[%s6271_s2 + $0xe0] sm:$0xff]   ;;  %v5223_v7 = vld [vmem:[%s6271_s2 + $0x118] sm:$0xff]  }
 0x1ce   :  { %v4717_v12 = vpop.f32.mrf.mxu0  ;;  %4727 = vmatprep.subr.bf16.mxu1 %v5209_v6 }
 0x1cf   :  { %4703 = vmatprep.mubr.msk.bf16.mxu1 %vm70_vm0, %v817_v9 }
 0x1d0   :  { %4704 = vmatmul.mubr.msk.bf16.gmra.mxu1 %vm70_vm0, %v818_v11  ;;  %v1012_v15 = vpop.f32.mrf.mxu0 }
 0x1d1   :  { %4728 = vmatpush3.bf16.msra.mxu1 %v5209_v6 }
 0x1d2   :  { %v4718_v16 = vpop.f32.mrf.mxu0  ;;  %4729 = vmatprep.subr.bf16.mxu1 %v5210_v14 }
 0x1d3   :  { %v1044_v20 = vpack.c.bf16 %v4718_v16, %v4717_v12 }
 0x1d4   :  { %v1015_v18 = vpop.f32.mrf.mxu0 }
 0x1d5   :  { %v1043_v19 = vpack.c.bf16 %v1015_v18, %v1012_v15  ;;  %4730 = vmatpush3.bf16.msra.mxu1 %v5210_v14  ;;  %v5224_v15 = vld [vmem:[%s6271_s2 + $0x110] sm:$0xff]   ;;  %v5225_v18 = vld [vmem:[%s6271_s2 + $0x108] sm:$0xff]  }
 0x1d6   :  { %v4721_v21 = vpop.f32.mrf.mxu0  ;;  %4755 = vmatprep.subr.bf16.mxu1 %v5211_v17 }
 0x1d7   :  { %4731 = vmatprep.mubr.msk.bf16.mxu1 %vm70_vm0, %v1043_v19 }
 0x1d8   :  { %v1028_v3 = vpop.f32.mrf.mxu0  ;;  %4732 = vmatmul.mubr.msk.bf16.vlgmr.msra.gmra.mxu1 %vm70_vm0, %v1044_v20 }
 0x1d9   :  { %4756 = vmatpush3.bf16.msra.mxu1 %v5211_v17 }
 0x1da   :  { %v4722_v5 = vpop.f32.mrf.mxu0  ;;  %4757 = vmatprep.subr.bf16.mxu1 %v5212_v22 }
 0x1db   :  { %v1046_v25 = vpack.c.bf16 %v4722_v5, %v4721_v21 }
 0x1dc   :  { %v1031_v23 = vpop.f32.mrf.mxu0 }
 0x1dd   :  { %v1045_v24 = vpack.c.bf16 %v1031_v23, %v1028_v3  ;;  %4758 = vmatpush3.bf16.msra.mxu1 %v5212_v22  ;;  %v5226_v3 = vld [vmem:[%s6271_s2 + $0x100] sm:$0xff]  }
 0x1de   :  { %v4749_v26 = vpop.f32.mrf.mxu0  ;;  %4759 = vmatprep.subr.bf16.mxu1 %v5213_v10 }
 0x1df   :  { %4735 = vmatprep.mubr.msk.bf16.mxu1 %vm70_vm0, %v1045_v24 }
 0x1e0   :  { %4736 = vmatmul.mubr.msk.bf16.gmra.mxu1 %vm70_vm0, %v1046_v25  ;;  %v1240_v29 = vpop.f32.mrf.mxu0 }
 0x1e1   :  { %4760 = vmatpush3.bf16.msra.mxu1 %v5213_v10 }
 0x1e2   :  { %v4750_v33 = vpop.f32.mrf.mxu0  ;;  %4761 = vmatprep.subr.bf16.mxu1 %v5214_v28 }
 0x1e3   :  { %v1272_v38 = vpack.c.bf16 %v4750_v33, %v4749_v26 }
 0x1e4   :  { %v1243_v8 = vpop.f32.mrf.mxu0 }
 0x1e5   :  { %v1271_v36 = vpack.c.bf16 %v1243_v8, %v1240_v29  ;;  %4762 = vmatpush3.bf16.msra.mxu1 %v5214_v28 }
 0x1e6   :  { %v4753_v39 = vpop.f32.mrf.mxu0  ;;  %4787 = vmatprep.subr.bf16.mxu1 %v5215_v34 }
 0x1e7   :  { %4763 = vmatprep.mubr.msk.bf16.mxu1 %vm70_vm0, %v1271_v36  ;;  %v5263_v36 = vld [vmem:[%s6270_s1 + $0x20] sm:$0xff]  }
 0x1e8   :  { %v1256_v43 = vpop.f32.mrf.mxu0  ;;  %4764 = vmatmul.mubr.msk.bf16.vlgmr.msra.gmra.mxu1 %vm70_vm0, %v1272_v38  ;;  %v5770_v38 = vpop.f32.mrf.mxu1 }
 0x1e9   :  { %4788 = vmatpush3.bf16.msra.mxu1 %v5215_v34 }
 0x1ea   :  { %v4754_v44 = vpop.f32.mrf.mxu0  ;;  %4789 = vmatprep.subr.bf16.mxu1 %v5216_v42 }
 0x1eb   :  { %v1274_v48 = vpack.c.bf16 %v4754_v44, %v4753_v39 }
 0x1ec   :  { %v1259_v46 = vpop.f32.mrf.mxu0 }
 0x1ed   :  { %v1273_v47 = vpack.c.bf16 %v1259_v46, %v1256_v43  ;;  %4790 = vmatpush3.bf16.msra.mxu1 %v5216_v42 }
 0x1ee   :  { %v4781_v49 = vpop.f32.mrf.mxu0  ;;  %4791 = vmatprep.subr.bf16.mxu1 %v5217_v45 }
 0x1ef   :  { %4767 = vmatprep.mubr.msk.bf16.mxu1 %vm70_vm0, %v1273_v47 }
 0x1f0   :  { %4768 = vmatmul.mubr.msk.bf16.gmra.mxu1 %vm70_vm0, %v1274_v48  ;;  %v1468_v51 = vpop.f32.mrf.mxu0 }
 0x1f1   :  { %4792 = vmatpush3.bf16.msra.mxu1 %v5217_v45 }
 0x1f2   :  { %v4782_v52 = vpop.f32.mrf.mxu0  ;;  %4793 = vmatprep.subr.bf16.mxu1 %v5218_v50 }
 0x1f3   :  { %v1500_v56 = vpack.c.bf16 %v4782_v52, %v4781_v49 }
 0x1f4   :  { %v1471_v54 = vpop.f32.mrf.mxu0 }
 0x1f5   :  { %v1499_v55 = vpack.c.bf16 %v1471_v54, %v1468_v51  ;;  %4794 = vmatpush3.bf16.msra.mxu1 %v5218_v50 }
 0x1f6   :  { %v4785_v57 = vpop.f32.mrf.mxu0  ;;  %4819 = vmatprep.subr.bf16.mxu1 %v5219_v53 }
 0x1f7   :  { %4795 = vmatprep.mubr.msk.bf16.mxu1 %vm70_vm0, %v1499_v55 }
 0x1f8   :  { %v1484_v59 = vpop.f32.mrf.mxu0  ;;  %4796 = vmatmul.mubr.msk.bf16.vlgmr.msra.gmra.mxu1 %vm70_vm0, %v1500_v56 }
 0x1f9   :  { %4820 = vmatpush3.bf16.msra.mxu1 %v5219_v53 }
 0x1fa   :  { %v4786_v60 = vpop.f32.mrf.mxu0  ;;  %4821 = vmatprep.subr.bf16.mxu1 %v5220_v58 }
 0x1fb   :  { %v1502_v0 = vpack.c.bf16 %v4786_v60, %v4785_v57 }
 0x1fc   :  { %v1487_v62 = vpop.f32.mrf.mxu0 }
 0x1fd   :  { %v1501_v63 = vpack.c.bf16 %v1487_v62, %v1484_v59  ;;  %4822 = vmatpush3.bf16.msra.mxu1 %v5220_v58 }
 0x1fe   :  { %v4813_v1 = vpop.f32.mrf.mxu0  ;;  %4823 = vmatprep.subr.bf16.mxu1 %v5221_v61 }
 0x1ff   :  { %4799 = vmatprep.mubr.msk.bf16.mxu1 %vm70_vm0, %v1501_v63 }
 0x200   :  { %4800 = vmatmul.mubr.msk.bf16.gmra.mxu1 %vm70_vm0, %v1502_v0  ;;  %v1696_v4 = vpop.f32.mrf.mxu0 }
 0x201   :  { %4824 = vmatpush3.bf16.msra.mxu1 %v5221_v61 }
 0x202   :  { %v4814_v6 = vpop.f32.mrf.mxu0  ;;  %4825 = vmatprep.subr.bf16.mxu1 %v5222_v2 }
 0x203   :  { %v1728_v12 = vpack.c.bf16 %v4814_v6, %v4813_v1 }
 0x204   :  { %v1699_v9 = vpop.f32.mrf.mxu0 }
 0x205   :  { %v1727_v11 = vpack.c.bf16 %v1699_v9, %v1696_v4  ;;  %4826 = vmatpush3.bf16.msra.mxu1 %v5222_v2 }
 0x206   :  { %v4817_v14 = vpop.f32.mrf.mxu0  ;;  %4851 = vmatprep.subr.bf16.mxu1 %v5223_v7 }
 0x207   :  { %4827 = vmatprep.mubr.msk.bf16.mxu1 %vm70_vm0, %v1727_v11 }
 0x208   :  { %v1712_v16 = vpop.f32.mrf.mxu0  ;;  %4828 = vmatmul.mubr.msk.bf16.vlgmr.msra.gmra.mxu1 %vm70_vm0, %v1728_v12 }
 0x209   :  { %4852 = vmatpush3.bf16.msra.mxu1 %v5223_v7 }
 0x20a   :  { %v4818_v17 = vpop.f32.mrf.mxu0  ;;  %4853 = vmatprep.subr.bf16.mxu1 %v5224_v15 }
 0x20b   :  { %v1730_v21 = vpack.c.bf16 %v4818_v17, %v4817_v14 }
 0x20c   :  { %v1715_v19 = vpop.f32.mrf.mxu0 }
 0x20d   :  { %v1729_v20 = vpack.c.bf16 %v1715_v19, %v1712_v16  ;;  %4854 = vmatpush3.bf16.msra.mxu1 %v5224_v15 }
 0x20e   :  { %v4845_v22 = vpop.f32.mrf.mxu0  ;;  %4855 = vmatprep.subr.bf16.mxu1 %v5225_v18 }
 0x20f   :  { %4831 = vmatprep.mubr.msk.bf16.mxu1 %vm70_vm0, %v1729_v20 }
 0x210   :  { %4832 = vmatmul.mubr.msk.bf16.gmra.mxu1 %vm70_vm0, %v1730_v21  ;;  %v1924_v5 = vpop.f32.mrf.mxu0 }
 0x211   :  { %4856 = vmatpush3.bf16.msra.mxu1 %v5225_v18 }
 0x212   :  { %v4846_v10 = vpop.f32.mrf.mxu0  ;;  %4857 = vmatprep.subr.bf16.mxu1 %v5226_v3 }
 0x213   :  { %v1956_v25 = vpack.c.bf16 %v4846_v10, %v4845_v22 }
 0x214   :  { %v1927_v23 = vpop.f32.mrf.mxu0 }
 0x215   :  { %v1955_v24 = vpack.c.bf16 %v1927_v23, %v1924_v5  ;;  %4858 = vmatpush3.bf16.msra.mxu1 %v5226_v3 }
 0x216   :  { %v4849_v26 = vpop.f32.mrf.mxu0 }
 0x217   :  { %4859 = vmatprep.mubr.msk.bf16.mxu1 %vm70_vm0, %v1955_v24 }
 0x218   :  { %v1940_v28 = vpop.f32.mrf.mxu0  ;;  %4860 = vmatmul.mubr.msk.bf16.vlgmr.msra.gmra.mxu1 %vm70_vm0, %v1956_v25 }
 0x21a   :  { %v4850_v29 = vpop.f32.mrf.mxu0 }
 0x21b   :  { %v1958_v8 = vpack.c.bf16 %v4850_v29, %v4849_v26 }
 0x21c   :  { %v1943_v33 = vpop.f32.mrf.mxu0 }
 0x21d   :  { %v1957_v34 = vpack.c.bf16 %v1943_v33, %v1940_v28 }
 0x21f   :  { %4863 = vmatprep.mubr.msk.bf16.mxu1 %vm70_vm0, %v1957_v34 }
 0x220   :  { %4864 = vmatmul.mubr.msk.bf16.gmra.mxu1 %vm70_vm0, %v1958_v8 }
 0x221   :  { %4891 = vmatprep.mubr.msk.bf16.mxu1 %vm70_vm0, %v5263_v36 }
 0x278   :  { %v4669_v39 = vpop.f32.mrf.mxu1 }
 0x279   :  { %v703_v42 = vadd.f32 %v4669_v39, %v5651_v13  ;;  %v454_v39 = vadd.f32 %v5659_v32, %v5657_v31  ;;  %v4115_v31 = vld [vmem:[%s6273_s3] ss:$0 sm:$0xff] }
 0x27a   :  { %v670_v43 = vpop.f32.mrf.mxu1 }
 0x27b   :  { %v701_v44 = vadd.f32 %v670_v43, %v5653_v27 }
 0x27c   :  { %v4670_v45 = vpop.f32.mrf.mxu1 }
 0x27d   :  { %v704_v46 = vadd.f32 %v4670_v45, %v5655_v30 }
 0x27e   :  { %v673_v47 = vpop.f32.mrf.mxu1 }
 0x27f   :  { %v702_v43 = vadd.f32 %v673_v47, %v454_v39 }
 0x280   :  { %v4673_v48 = vpop.f32.mrf.mxu1 }
 0x281   :  { %v707_v49 = vadd.f32 %v4673_v48, %v5661_v35 }
 0x282   :  { %v686_v50 = vpop.f32.mrf.mxu1 }
 0x283   :  { %v705_v51 = vadd.f32 %v686_v50, %v5663_v37 }
 0x284   :  { %v4674_v52 = vpop.f32.mrf.mxu1 }
 0x285   :  { %v708_v53 = vadd.f32 %v4674_v52, %v5665_v40 }
 0x286   :  { %v5778_v54 = vpop.f32.mrf.mxu1 }
 0x288   :  { %v4701_v55 = vpop.f32.mrf.mxu1 }
 0x289   :  { %v931_v13 = vadd.f32 %v4701_v55, %v703_v42 }
 0x28a   :  { %v898_v56 = vpop.f32.mrf.mxu1 }
 0x28b   :  { %v929_v57 = vadd.f32 %v898_v56, %v701_v44 }
 0x28c   :  { %v4702_v27 = vpop.f32.mrf.mxu1 }
 0x28d   :  { %v932_v58 = vadd.f32 %v4702_v27, %v704_v46 }
 0x28e   :  { %v901_v59 = vpop.f32.mrf.mxu1 }
 0x28f   :  { %v930_v46 = vadd.f32 %v901_v59, %v702_v43 }
 0x290   :  { %v4705_v30 = vpop.f32.mrf.mxu1 }
 0x291   :  { %v935_v60 = vadd.f32 %v4705_v30, %v707_v49 }
 0x292   :  { %v914_v61 = vpop.f32.mrf.mxu1 }
 0x293   :  { %v933_v62 = vadd.f32 %v914_v61, %v705_v51 }
 0x294   :  { %v4706_v35 = vpop.f32.mrf.mxu1 }
 0x295   :  { %v5780_v63 = vadd.f32 %v4706_v35, %v708_v53 }
 0x296   :  { %v5782_v37 = vpop.f32.mrf.mxu1 }
 0x298   :  { %v4733_v0 = vpop.f32.mrf.mxu1 }
 0x299   :  { %v1159_v40 = vadd.f32 %v4733_v0, %v931_v13  ;;  %v470_v13 = vadd.f32 %v5770_v38, %v5667_v41 }
 0x29a   :  { %v1126_v1 = vpop.f32.mrf.mxu1 }
 0x29b   :  { %v1157_v2 = vadd.f32 %v1126_v1, %v929_v57  ;;  %v706_v59 = vadd.f32 %v5778_v54, %v470_v13 }
 0x29c   :  { %v4734_v4 = vpop.f32.mrf.mxu1 }
 0x29d   :  { %v1160_v6 = vadd.f32 %v4734_v4, %v932_v58  ;;  %v934_v41 = vadd.f32 %v5782_v37, %v706_v59  ;;  %v5231_v59 = vld [vmem:[%s6272_s5 + $0x18] sm:$0xff]  }
 0x29e   :  { %v1129_v7 = vpop.f32.mrf.mxu1 }
 0x29f   :  { %v1158_v51 = vadd.f32 %v1129_v7, %v930_v46 }
 0x2a0   :  { %v4737_v9 = vpop.f32.mrf.mxu1 }
 0x2a1   :  { %v1163_v56 = vadd.f32 %v4737_v9, %v935_v60  ;;  %v4116_v60 = vld [vmem:[%s6274_s4] ss:$0 sm:$0xff] }
 0x2a2   :  { %v1142_v11 = vpop.f32.mrf.mxu1 }
 0x2a3   :  { %v1161_v30 = vadd.f32 %v1142_v11, %v933_v62 }
 0x2a4   :  { %v4738_v12 = vpop.f32.mrf.mxu1 }
 0x2a5   :  { %v1164_v54 = vadd.f32 %v4738_v12, %v5780_v63 }
 0x2a6   :  { %v1145_v14 = vpop.f32.mrf.mxu1 }
 0x2a7   :  { %v1162_v62 = vadd.f32 %v1145_v14, %v934_v41  ;;  %v5230_v41 = vld [vmem:[%s6272_s5 + $0x20] sm:$0xff]  }
 0x2a8   :  { %v4765_v15 = vpop.f32.mrf.mxu1 }
 0x2a9   :  { %v1387_v44 = vadd.f32 %v4765_v15, %v1159_v40 }
 0x2aa   :  { %v1354_v16 = vpop.f32.mrf.mxu1 }
 0x2ab   :  { %v1385_v48 = vadd.f32 %v1354_v16, %v1157_v2 }
 0x2ac   :  { %v4766_v17 = vpop.f32.mrf.mxu1 }
 0x2ad   :  { %v1388_v52 = vadd.f32 %v4766_v17, %v1160_v6 }
 0x2ae   :  { %v1357_v18 = vpop.f32.mrf.mxu1 }
 0x2af   :  { %v1386_v32 = vadd.f32 %v1357_v18, %v1158_v51 }
 0x2b0   :  { %v4769_v19 = vpop.f32.mrf.mxu1 }
 0x2b1   :  { %v1391_v61 = vadd.f32 %v4769_v19, %v1163_v56 }
 0x2b2   :  { %v1370_v20 = vpop.f32.mrf.mxu1 }
 0x2b3   :  { %v1389_v38 = vadd.f32 %v1370_v20, %v1161_v30  ;;  %v5228_v30 = vld [vmem:[%s6272_s5 + $0x30] sm:$0xff]  }
 0x2b4   :  { %v4770_v21 = vpop.f32.mrf.mxu1 }
 0x2b5   :  { %v1392_v37 = vadd.f32 %v4770_v21, %v1164_v54 }
 0x2b6   :  { %v1373_v22 = vpop.f32.mrf.mxu1 }
 0x2b7   :  { %v1390_v20 = vadd.f32 %v1373_v22, %v1162_v62 }
 0x2b8   :  { %v4797_v3 = vpop.f32.mrf.mxu1 }
 0x2b9   :  { %v1615_v49 = vadd.f32 %v4797_v3, %v1387_v44 }
 0x2ba   :  { %v1582_v5 = vpop.f32.mrf.mxu1 }
 0x2bb   :  { %v1613_v53 = vadd.f32 %v1582_v5, %v1385_v48 }
 0x2bc   :  { %v4798_v10 = vpop.f32.mrf.mxu1 }
 0x2bd   :  { %v1616_v47 = vadd.f32 %v4798_v10, %v1388_v52 }
 0x2be   :  { %v1585_v23 = vpop.f32.mrf.mxu1 }
 0x2bf   :  { %v1614_v0 = vadd.f32 %v1585_v23, %v1386_v32 }
 0x2c0   :  { %v4801_v24 = vpop.f32.mrf.mxu1 }
 0x2c1   :  { %v1619_v6 = vadd.f32 %v4801_v24, %v1391_v61  ;;  %v5264_v61 = vld [vmem:[%s6270_s1 + $0x8] sm:$0xff]  }
 0x2c2   :  { %v1598_v25 = vpop.f32.mrf.mxu1 }
 0x2c3   :  { %v1617_v11 = vadd.f32 %v1598_v25, %v1389_v38  ;;  %v5268_v38 = vld [vmem:[%s6270_s1 + $0x18] sm:$0xff]  }
 0x2c4   :  { %v4802_v26 = vpop.f32.mrf.mxu1 }
 0x2c6   :  { %v1601_v28 = vpop.f32.mrf.mxu1 }
 0x2c8   :  { %v4829_v29 = vpop.f32.mrf.mxu1 }
 0x2c9   :  { %v1843_v55 = vadd.f32 %v4829_v29, %v1615_v49 }
 0x2ca   :  { %v1810_v33 = vpop.f32.mrf.mxu1 }
 0x2cb   :  { %v1841_v27 = vadd.f32 %v1810_v33, %v1613_v53 }
 0x2cc   :  { %v4830_v34 = vpop.f32.mrf.mxu1 }
 0x2cd   :  { %v1844_v40 = vadd.f32 %v4830_v34, %v1616_v47  ;;  %v1620_v34 = vadd.f32 %v4802_v26, %v1392_v37 }
 0x2ce   :  { %v1813_v8 = vpop.f32.mrf.mxu1 }
 0x2cf   :  { %v1842_v7 = vadd.f32 %v1813_v8, %v1614_v0  ;;  %v1618_v8 = vadd.f32 %v1601_v28, %v1390_v20  ;;  %v5232_v0 = vld [vmem:[%s6272_s5 + $0x10] sm:$0xff]  }
 0x2d0   :  { %v4833_v36 = vpop.f32.mrf.mxu1 }
 0x2d1   :  { %v1847_v17 = vadd.f32 %v4833_v36, %v1619_v6  ;;  %v5234_v6 = vld [vmem:[%s6272_s5] sm:$0xff]  }
 0x2d2   :  { %v1826_v42 = vpop.f32.mrf.mxu1 }
 0x2d3   :  { %v1845_v5 = vadd.f32 %v1826_v42, %v1617_v11 }
 0x2d4   :  { %v4834_v45 = vpop.f32.mrf.mxu1 }
 0x2d5   :  { %v1848_v25 = vadd.f32 %v4834_v45, %v1620_v34 }
 0x2d6   :  { %v1829_v50 = vpop.f32.mrf.mxu1 }
 0x2d7   :  { %v1846_v36 = vadd.f32 %v1829_v50, %v1618_v8 }
 0x2d8   :  { %v4861_v57 = vpop.f32.mrf.mxu1 }
 0x2d9   :  { %v2071_v58 = vadd.f32 %v4861_v57, %v1843_v55 }
 0x2da   :  { %v2038_v35 = vpop.f32.mrf.mxu1 }
 0x2db   :  { %v2086_v1 = vmul.f32 %v4115_v31, %v2071_v58  ;;  %v2069_v2 = vadd.f32 %v2038_v35, %v1841_v27  ;;  %v5265_v35 = vld [vmem:[%s6270_s1 + $0x28] sm:$0xff]  }
 0x2dc   :  { %v4862_v4 = vpop.f32.mrf.mxu1 }
 0x2dd   :  { %v2084_v9 = vmul.f32 %v4115_v31, %v2069_v2  ;;  %v2072_v15 = vadd.f32 %v4862_v4, %v1844_v40  ;;  %v2101_v18 = vadd.f32 %v4116_v60, %v2086_v1  ;;  %v5266_v40 = vld [vmem:[%s6270_s1 + $0x10] sm:$0xff]   ;;  %v5229_v2 = vld [vmem:[%s6272_s5 + $0x28] sm:$0xff]  }
 0x2de   :  { %v2041_v16 = vpop.f32.mrf.mxu1  ;;  %v5267_v1 = vld [vmem:[%s6270_s1 + $0x30] sm:$0xff]   ;;  %v5233_v4 = vld [vmem:[%s6272_s5 + $0x8] sm:$0xff]  }
 0x2df   :  { %v2087_v19 = vmul.f32 %v4115_v31, %v2072_v15  ;;  %v2070_v3 = vadd.f32 %v2041_v16, %v1842_v7  ;;  %v2099_v23 = vadd.f32 %v4116_v60, %v2084_v9  ;;  %v2109_v43 = vmax.f32 %v2101_v18, 0.0 }
 0x2e0   :  { %v4865_v10 = vpop.f32.mrf.mxu1 }
 0x2e1   :  { %v2102_v29 = vadd.f32 %v4116_v60, %v2087_v19  ;;  %v2085_v33 = vmul.f32 %v4115_v31, %v2070_v3  ;;  %v2075_v24 = vadd.f32 %v4865_v10, %v1847_v17  ;;  %v2107_v48 = vmax.f32 %v2099_v23, 0.0 }
 0x2e2   :  { %v2054_v39 = vpop.f32.mrf.mxu1 }
 0x2e3   :  { %v2110_v63 = vmax.f32 %v2102_v29, 0.0  ;;  %v2100_v12 = vadd.f32 %v4116_v60, %v2085_v33  ;;  %v2073_v14 = vadd.f32 %v2054_v39, %v1845_v5  ;;  %v2090_v44 = vmul.f32 %v4115_v31, %v2075_v24 }
 0x2e4   :  { %v4866_v46 = vpop.f32.mrf.mxu1 }
 0x2e5   :  { %v5797_v21 = vpack.c.bf16 %v2110_v63, %v2109_v43  ;;  %v2108_v22 = vmax.f32 %v2100_v12, 0.0  ;;  %v2088_v42 = vmul.f32 %v4115_v31, %v2073_v14  ;;  %v2076_v49 = vadd.f32 %v4866_v46, %v1848_v25  ;;  %v5270_v12 = vld [vmem:[%s6270_s1 + $0x40] sm:$0xff]   ;;  %v5271_v14 = vld [vmem:[%s6270_s1 + $0x48] sm:$0xff]   ;;  %v5272_v25 = vld [vmem:[%s6270_s1 + $0x50] sm:$0xff]  }
 0x2e6   :  { %v2057_v51 = vpop.f32.mrf.mxu1  ;;  %v2105_v28 = vadd.f32 %v4116_v60, %v2090_v44  ;;  %v5274_v44 = vld [vmem:[%s6270_s1 + $0x60] sm:$0xff]   ;;  %v5275_v46 = vld [vmem:[%s6270_s1 + $0x68] sm:$0xff]  }
 0x2e7   :  { %v5799_v52 = vpack.c.bf16 %v2108_v22, %v2107_v48  ;;  %v2074_v26 = vadd.f32 %v2057_v51, %v1846_v36  ;;  %v2091_v53 = vmul.f32 %v4115_v31, %v2076_v49  ;;  %v2103_v55 = vadd.f32 %v4116_v60, %v2088_v42  ;;  %v5273_v36 = vld [vmem:[%s6270_s1 + $0x58] sm:$0xff]   ;;  %v5276_v48 = vld [vmem:[%s6270_s1 + $0x70] sm:$0xff]   ;;  %v5278_v42 = vld [vmem:[%s6270_s1 + $0x80] sm:$0xff]  }
 0x2e8   :  { %v2113_v45 = vmax.f32 %v2105_v28, 0.0  ;;  %v5277_v22 = vld [vmem:[%s6270_s1 + $0x78] sm:$0xff]   ;;  %v5279_v49 = vld [vmem:[%s6270_s1 + $0x88] sm:$0xff]   ;;  %v5280_v51 = vld [vmem:[%s6270_s1 + $0x90] sm:$0xff]  }
 0x2e9   :  { %v2089_v13 = vmul.f32 %v4115_v31, %v2074_v26  ;;  %v2106_v56 = vadd.f32 %v4116_v60, %v2091_v53  ;;  %v2111_v32 = vmax.f32 %v2103_v55, 0.0  ;;  %v5227_v31 = vld [vmem:[%s6272_s5 + $0x38] sm:$0xff]   ;;  %v5282_v28 = vld [vmem:[%s6270_s1 + $0xa0] sm:$0xff]   ;;  %v5283_v53 = vld [vmem:[%s6270_s1 + $0xa8] sm:$0xff]  }
 0x2ea   :  { %v5281_v26 = vld [vmem:[%s6270_s1 + $0x98] sm:$0xff]   ;;  %v5284_v55 = vld [vmem:[%s6270_s1 + $0xb0] sm:$0xff]  }
 0x2eb   :  { %v2104_v57 = vadd.f32 %v4116_v60, %v2089_v13  ;;  %v2114_v50 = vmax.f32 %v2106_v56, 0.0  ;;  %v5269_v60 = vld [vmem:[%s6270_s1 + $0x38] sm:$0xff]   ;;  %v5286_v56 = vld [vmem:[%s6270_s1 + $0xc0] sm:$0xff]  }
 0x2ec   :  { %v5285_v13 = vld [vmem:[%s6270_s1 + $0xb8] sm:$0xff]  }
 0x2ed   :  { %v2112_v47 = vmax.f32 %v2104_v57, 0.0  ;;  %v5801_v27 = vpack.c.bf16 %v2114_v50, %v2113_v45  ;;  %v5235_v57 = vld [vmem:[%s6272_s5 + $0x58] sm:$0xff]   ;;  %v5236_v45 = vld [vmem:[%s6272_s5 + $0x50] sm:$0xff]   ;;  %v5287_v50 = vld [vmem:[%s6270_s1 + $0xc8] sm:$0xff]  }
 0x2ef   :  { %v5803_v58 = vpack.c.bf16 %v2112_v47, %v2111_v32  ;;  %4867 = vmatprep.subr.bf16.mxu0 %v5801_v27  ;;  %4883 = vmatprep.subr.bf16.mxu1 %v5801_v27  ;;  %v5288_v32 = vld [vmem:[%s6270_s1 + $0xd0] sm:$0xff]   ;;  %v5237_v47 = vld [vmem:[%s6272_s5 + $0x48] sm:$0xff]  }
 0x2f0   :  { %4868 = vmatpush3.bf16.msra.mxu0 %v5801_v27  ;;  %4884 = vmatpush3.bf16.msra.mxu1 %v5801_v27 }
 0x2f1   :  { %4869 = vmatprep.subr.bf16.mxu0 %v5803_v58  ;;  %4885 = vmatprep.subr.bf16.mxu1 %v5803_v58 }
 0x2f4   :  { %4870 = vmatpush3.bf16.msra.mxu0 %v5803_v58  ;;  %4886 = vmatpush3.bf16.msra.mxu1 %v5803_v58 }
 0x2f5   :  { %4871 = vmatprep.subr.bf16.mxu0 %v5797_v21  ;;  %4887 = vmatprep.subr.bf16.mxu1 %v5797_v21 }
 0x2f8   :  { %4872 = vmatpush3.bf16.msra.mxu0 %v5797_v21  ;;  %4888 = vmatpush3.bf16.msra.mxu1 %v5797_v21 }
 0x2f9   :  { %4873 = vmatprep.subr.bf16.mxu0 %v5799_v52  ;;  %4889 = vmatprep.subr.bf16.mxu1 %v5799_v52 }
 0x2fc   :  { %4874 = vmatpush3.bf16.msra.mxu0 %v5799_v52  ;;  %4890 = vmatpush3.bf16.msra.mxu1 %v5799_v52 }
 0x2fd   :  { %4899 = vmatprep.subr.bf16.mxu0 %v5227_v31  ;;  %4915 = vmatprep.subr.bf16.mxu1 %v5231_v59 }
 0x2ff   :  { %4876 = vmatmul.mubr.msk.bf16.vlgmr.msra.gmra.mxu0 %vm70_vm0, %v5264_v61  ;;  %4892 = vmatmul.mubr.msk.bf16.vlgmr.msra.gmra.mxu1 %vm70_vm0, %v5265_v35  ;;  %v5239_v61 = vld [vmem:[%s6272_s5 + $0x78] sm:$0xff]   ;;  %v5291_v35 = vld [vmem:[%s6270_s1 + $0xe8] sm:$0xff]  }
 0x300   :  { %4900 = vmatpush3.bf16.msra.mxu0 %v5227_v31  ;;  %4879 = vmatprep.mubr.msk.bf16.mxu0 %vm70_vm0, %v5266_v40  ;;  %v5238_v31 = vld [vmem:[%s6272_s5 + $0x40] sm:$0xff]   ;;  %v5293_v40 = vld [vmem:[%s6270_s1 + $0xf8] sm:$0xff]  }
 0x301   :  { %4901 = vmatprep.subr.bf16.mxu0 %v5228_v30  ;;  %4895 = vmatprep.mubr.msk.bf16.mxu1 %vm70_vm0, %v5267_v1  ;;  %v5297_v1 = vld [vmem:[%s6270_s1 + $0x118] sm:$0xff]  }
 0x302   :  { %4916 = vmatpush3.bf16.msra.mxu1 %v5231_v59  ;;  %v5289_v59 = vld [vmem:[%s6270_s1 + $0xd8] sm:$0xff]  }
 0x303   :  { %4917 = vmatprep.subr.bf16.mxu1 %v5232_v0 }
 0x304   :  { %4902 = vmatpush3.bf16.msra.mxu0 %v5228_v30  ;;  %v5290_v30 = vld [vmem:[%s6270_s1 + $0xe0] sm:$0xff]  }
 0x305   :  { %4903 = vmatprep.subr.bf16.mxu0 %v5229_v2 }
 0x306   :  { %4918 = vmatpush3.bf16.msra.mxu1 %v5232_v0  ;;  %v5292_v0 = vld [vmem:[%s6270_s1 + $0xf0] sm:$0xff]  }
 0x307   :  { %4880 = vmatmul.mubr.msk.bf16.gmra.mxu0 %vm70_vm0, %v5268_v38  ;;  %4896 = vmatmul.mubr.msk.bf16.gmra.mxu1 %vm70_vm0, %v5269_v60 }
 0x308   :  { %4904 = vmatpush3.bf16.msra.mxu0 %v5229_v2  ;;  %4919 = vmatprep.subr.bf16.mxu1 %v5233_v4 }
 0x309   :  { %4905 = vmatprep.subr.bf16.mxu0 %v5230_v41 }
 0x30a   :  { %4920 = vmatpush3.bf16.msra.mxu1 %v5233_v4 }
 0x30b   :  { %4921 = vmatprep.subr.bf16.mxu1 %v5234_v6 }
 0x30c   :  { %4906 = vmatpush3.bf16.msra.mxu0 %v5230_v41 }
 0x30d   :  { %4931 = vmatprep.subr.bf16.mxu0 %v5801_v27 }
 0x30e   :  { %4922 = vmatpush3.bf16.msra.mxu1 %v5234_v6 }
 0x30f   :  { %4947 = vmatprep.subr.bf16.mxu1 %v5235_v57 }
 0x3bf   :  { %v4877_v7 = vpop.f32.mrf.mxu0  ;;  %v4893_v9 = vpop.f32.mrf.mxu1 }
 0x3c1   :  { %v2153_v15 = vpop.f32.mrf.mxu0  ;;  %v2230_v54 = vpop.f32.mrf.mxu1 }
 0x3c3   :  { %v4878_v62 = vpop.f32.mrf.mxu0  ;;  %v4894_v11 = vpop.f32.mrf.mxu1 }
 0x3c4   :  { %v2185_v16 = vpack.c.bf16 %v4878_v62, %v4877_v7  ;;  %v2262_v37 = vpack.c.bf16 %v4894_v11, %v4893_v9 }
 0x3c5   :  { %v2156_v17 = vpop.f32.mrf.mxu0  ;;  %v2233_v18 = vpop.f32.mrf.mxu1 }
 0x3c6   :  { %v2184_v19 = vpack.c.bf16 %v2156_v17, %v2153_v15  ;;  %v2261_v3 = vpack.c.bf16 %v2233_v18, %v2230_v54 }
 0x3c7   :  { %v4881_v20 = vpop.f32.mrf.mxu0  ;;  %v4897_v5 = vpop.f32.mrf.mxu1 }
 0x3c8   :  { %4907 = vmatprep.mubr.msk.bf16.mxu0 %vm70_vm0, %v2261_v3  ;;  %4923 = vmatprep.mubr.msk.bf16.mxu1 %vm70_vm0, %v2184_v19 }
 0x3c9   :  { %v2169_v10 = vpop.f32.mrf.mxu0  ;;  %v2246_v23 = vpop.f32.mrf.mxu1  ;;  %4908 = vmatmul.mubr.msk.bf16.vlgmr.msra.gmra.mxu0 %vm70_vm0, %v2262_v37  ;;  %4924 = vmatmul.mubr.msk.bf16.vlgmr.msra.gmra.mxu1 %vm70_vm0, %v2185_v16 }
 0x3ca   :  { %4932 = vmatpush3.bf16.msra.mxu0 %v5801_v27  ;;  %4948 = vmatpush3.bf16.msra.mxu1 %v5235_v57  ;;  %v5245_v57 = vld [vmem:[%s6272_s5 + $0x88] sm:$0xff]  }
 0x3cb   :  { %4933 = vmatprep.subr.bf16.mxu0 %v5803_v58  ;;  %v4882_v29 = vpop.f32.mrf.mxu0  ;;  %v4898_v33 = vpop.f32.mrf.mxu1  ;;  %4949 = vmatprep.subr.bf16.mxu1 %v5236_v45 }
 0x3cc   :  { %v2187_v24 = vpack.c.bf16 %v4882_v29, %v4881_v20  ;;  %v2264_v63 = vpack.c.bf16 %v4898_v33, %v4897_v5 }
 0x3cd   :  { %v2172_v34 = vpop.f32.mrf.mxu0  ;;  %v2249_v8 = vpop.f32.mrf.mxu1 }
 0x3ce   :  { %v2186_v39 = vpack.c.bf16 %v2172_v34, %v2169_v10  ;;  %v2263_v43 = vpack.c.bf16 %v2249_v8, %v2246_v23  ;;  %4934 = vmatpush3.bf16.msra.mxu0 %v5803_v58  ;;  %4950 = vmatpush3.bf16.msra.mxu1 %v5236_v45 }
 0x3cf   :  { %4935 = vmatprep.subr.bf16.mxu0 %v5797_v21  ;;  %4951 = vmatprep.subr.bf16.mxu1 %v5237_v47 }
 0x3d0   :  { %4911 = vmatprep.mubr.msk.bf16.mxu0 %vm70_vm0, %v2263_v43  ;;  %4927 = vmatprep.mubr.msk.bf16.mxu1 %vm70_vm0, %v2186_v39  ;;  %v5240_v43 = vld [vmem:[%s6272_s5 + $0x70] sm:$0xff]  }
 0x3d1   :  { %4912 = vmatmul.mubr.msk.bf16.gmra.mxu0 %vm70_vm0, %v2264_v63  ;;  %4928 = vmatmul.mubr.msk.bf16.gmra.mxu1 %vm70_vm0, %v2187_v24 }
 0x3d2   :  { %4936 = vmatpush3.bf16.msra.mxu0 %v5797_v21  ;;  %4939 = vmatprep.mubr.msk.bf16.mxu0 %vm70_vm0, %v5270_v12 }
 0x3d3   :  { %4937 = vmatprep.subr.bf16.mxu0 %v5799_v52  ;;  %4952 = vmatpush3.bf16.msra.mxu1 %v5237_v47 }
 0x3d4   :  { %4953 = vmatprep.subr.bf16.mxu1 %v5238_v31 }
 0x3d6   :  { %4938 = vmatpush3.bf16.msra.mxu0 %v5799_v52 }
 0x3d7   :  { %4963 = vmatprep.subr.bf16.mxu0 %v5801_v27  ;;  %4954 = vmatpush3.bf16.msra.mxu1 %v5238_v31  ;;  %v5246_v31 = vld [vmem:[%s6272_s5 + $0x80] sm:$0xff]  }
 0x3d8   :  { %4979 = vmatprep.subr.bf16.mxu1 %v5239_v61 }
 0x3d9   :  { %4940 = vmatmul.mubr.msk.bf16.vlgmr.msra.gmra.mxu0 %vm70_vm0, %v5271_v14  ;;  %v5241_v14 = vld [vmem:[%s6272_s5 + $0x68] sm:$0xff]  }
 0x3da   :  { %4964 = vmatpush3.bf16.msra.mxu0 %v5801_v27  ;;  %4943 = vmatprep.mubr.msk.bf16.mxu0 %vm70_vm0, %v5272_v25 }
 0x3db   :  { %4965 = vmatprep.subr.bf16.mxu0 %v5803_v58 }
 0x3de   :  { %4966 = vmatpush3.bf16.msra.mxu0 %v5803_v58 }
 0x3df   :  { %4967 = vmatprep.subr.bf16.mxu0 %v5797_v21 }
 0x3e1   :  { %4944 = vmatmul.mubr.msk.bf16.gmra.mxu0 %vm70_vm0, %v5273_v36 }
 0x3e2   :  { %4968 = vmatpush3.bf16.msra.mxu0 %v5797_v21  ;;  %4971 = vmatprep.mubr.msk.bf16.mxu0 %vm70_vm0, %v5274_v44 }
 0x3e3   :  { %4969 = vmatprep.subr.bf16.mxu0 %v5799_v52 }
 0x3e6   :  { %4970 = vmatpush3.bf16.msra.mxu0 %v5799_v52 }
 0x3e7   :  { %4995 = vmatprep.subr.bf16.mxu0 %v5801_v27 }
 0x3e9   :  { %4972 = vmatmul.mubr.msk.bf16.vlgmr.msra.gmra.mxu0 %vm70_vm0, %v5275_v46 }
 0x3ea   :  { %4996 = vmatpush3.bf16.msra.mxu0 %v5801_v27  ;;  %4975 = vmatprep.mubr.msk.bf16.mxu0 %vm70_vm0, %v5276_v48  ;;  %v5242_v48 = vld [vmem:[%s6272_s5 + $0x60] sm:$0xff]  }
 0x3eb   :  { %4997 = vmatprep.subr.bf16.mxu0 %v5803_v58 }
 0x3ee   :  { %4998 = vmatpush3.bf16.msra.mxu0 %v5803_v58 }
 0x3ef   :  { %4999 = vmatprep.subr.bf16.mxu0 %v5797_v21 }
 0x3f1   :  { %4976 = vmatmul.mubr.msk.bf16.gmra.mxu0 %vm70_vm0, %v5277_v22 }
 0x3f2   :  { %5000 = vmatpush3.bf16.msra.mxu0 %v5797_v21  ;;  %5003 = vmatprep.mubr.msk.bf16.mxu0 %vm70_vm0, %v5278_v42 }
 0x3f3   :  { %5001 = vmatprep.subr.bf16.mxu0 %v5799_v52 }
 0x3f6   :  { %5002 = vmatpush3.bf16.msra.mxu0 %v5799_v52 }
 0x3f7   :  { %5027 = vmatprep.subr.bf16.mxu0 %v5801_v27 }
 0x3f9   :  { %5004 = vmatmul.mubr.msk.bf16.vlgmr.msra.gmra.mxu0 %vm70_vm0, %v5279_v49  ;;  %v5243_v49 = vld [vmem:[%s6272_s5 + $0x98] sm:$0xff]  }
 0x3fa   :  { %5028 = vmatpush3.bf16.msra.mxu0 %v5801_v27  ;;  %5007 = vmatprep.mubr.msk.bf16.mxu0 %vm70_vm0, %v5280_v51 }
 0x3fb   :  { %5029 = vmatprep.subr.bf16.mxu0 %v5803_v58 }
 0x3fe   :  { %5030 = vmatpush3.bf16.msra.mxu0 %v5803_v58 }
 0x3ff   :  { %5031 = vmatprep.subr.bf16.mxu0 %v5797_v21 }
 0x401   :  { %5008 = vmatmul.mubr.msk.bf16.gmra.mxu0 %vm70_vm0, %v5281_v26 }
 0x402   :  { %5032 = vmatpush3.bf16.msra.mxu0 %v5797_v21  ;;  %5035 = vmatprep.mubr.msk.bf16.mxu0 %vm70_vm0, %v5282_v28 }
 0x403   :  { %5033 = vmatprep.subr.bf16.mxu0 %v5799_v52 }
 0x406   :  { %5034 = vmatpush3.bf16.msra.mxu0 %v5799_v52 }
 0x407   :  { %5059 = vmatprep.subr.bf16.mxu0 %v5801_v27 }
 0x409   :  { %5036 = vmatmul.mubr.msk.bf16.vlgmr.msra.gmra.mxu0 %vm70_vm0, %v5283_v53 }
 0x40a   :  { %5060 = vmatpush3.bf16.msra.mxu0 %v5801_v27  ;;  %5039 = vmatprep.mubr.msk.bf16.mxu0 %vm70_vm0, %v5284_v55  ;;  %v5244_v55 = vld [vmem:[%s6272_s5 + $0x90] sm:$0xff]  }
 0x40b   :  { %5061 = vmatprep.subr.bf16.mxu0 %v5803_v58 }
 0x40e   :  { %5062 = vmatpush3.bf16.msra.mxu0 %v5803_v58 }
 0x40f   :  { %5063 = vmatprep.subr.bf16.mxu0 %v5797_v21 }
 0x411   :  { %5040 = vmatmul.mubr.msk.bf16.gmra.mxu0 %vm70_vm0, %v5285_v13 }
 0x412   :  { %5064 = vmatpush3.bf16.msra.mxu0 %v5797_v21  ;;  %5067 = vmatprep.mubr.msk.bf16.mxu0 %vm70_vm0, %v5286_v56 }
 0x413   :  { %5065 = vmatprep.subr.bf16.mxu0 %v5799_v52 }
 0x416   :  { %5066 = vmatpush3.bf16.msra.mxu0 %v5799_v52 }
 0x417   :  { %5091 = vmatprep.subr.bf16.mxu0 %v5801_v27 }
 0x419   :  { %5068 = vmatmul.mubr.msk.bf16.vlgmr.msra.gmra.mxu0 %vm70_vm0, %v5287_v50 }
 0x41a   :  { %5092 = vmatpush3.bf16.msra.mxu0 %v5801_v27  ;;  %5071 = vmatprep.mubr.msk.bf16.mxu0 %vm70_vm0, %v5288_v32 }
 0x41b   :  { %5093 = vmatprep.subr.bf16.mxu0 %v5803_v58 }
 0x41e   :  { %5094 = vmatpush3.bf16.msra.mxu0 %v5803_v58 }
 0x41f   :  { %5095 = vmatprep.subr.bf16.mxu0 %v5797_v21 }
 0x421   :  { %5072 = vmatmul.mubr.msk.bf16.gmra.mxu0 %vm70_vm0, %v5289_v59 }
 0x422   :  { %5096 = vmatpush3.bf16.msra.mxu0 %v5797_v21  ;;  %5099 = vmatprep.mubr.msk.bf16.mxu0 %vm70_vm0, %v5290_v30 }
 0x423   :  { %5097 = vmatprep.subr.bf16.mxu0 %v5799_v52 }
 0x426   :  { %5098 = vmatpush3.bf16.msra.mxu0 %v5799_v52 }
 0x427   :  { %5123 = vmatprep.subr.bf16.mxu0 %v5801_v27 }
 0x429   :  { %5100 = vmatmul.mubr.msk.bf16.vlgmr.msra.gmra.mxu0 %vm70_vm0, %v5291_v35 }
 0x42a   :  { %5124 = vmatpush3.bf16.msra.mxu0 %v5801_v27  ;;  %5103 = vmatprep.mubr.msk.bf16.mxu0 %vm70_vm0, %v5292_v0  ;;  %v5294_v27 = vld [vmem:[%s6270_s1 + $0x100] sm:$0xff]  }
 0x42b   :  { %5125 = vmatprep.subr.bf16.mxu0 %v5803_v58 }
 0x42e   :  { %5126 = vmatpush3.bf16.msra.mxu0 %v5803_v58  ;;  %v5295_v58 = vld [vmem:[%s6270_s1 + $0x108] sm:$0xff]  }
 0x42f   :  { %5127 = vmatprep.subr.bf16.mxu0 %v5797_v21 }
 0x431   :  { %5104 = vmatmul.mubr.msk.bf16.gmra.mxu0 %vm70_vm0, %v5293_v40 }
 0x432   :  { %5128 = vmatpush3.bf16.msra.mxu0 %v5797_v21  ;;  %5131 = vmatprep.mubr.msk.bf16.mxu0 %vm70_vm0, %v5294_v27  ;;  %v5296_v21 = vld [vmem:[%s6270_s1 + $0x110] sm:$0xff]  }
 0x433   :  { %5129 = vmatprep.subr.bf16.mxu0 %v5799_v52 }
 0x436   :  { %5130 = vmatpush3.bf16.msra.mxu0 %v5799_v52 }
 0x439   :  { %5132 = vmatmul.mubr.msk.bf16.vlgmr.msra.gmra.mxu0 %vm70_vm0, %v5295_v58  ;;  %v5248_v58 = vld [vmem:[%s6272_s5 + $0xb0] sm:$0xff]  }
 0x43a   :  { %5135 = vmatprep.mubr.msk.bf16.mxu0 %vm70_vm0, %v5296_v21 }
 0x441   :  { %5136 = vmatmul.mubr.msk.bf16.gmra.mxu0 %vm70_vm0, %v5297_v1 }
 0x489   :  { %v4909_v2 = vpop.f32.mrf.mxu0  ;;  %v4925_v52 = vpop.f32.mrf.mxu1 }
 0x48a   :  { %v6060_v41 = vadd.f32 %v4925_v52, %v4909_v2  ;;  %v5249_v2 = vld [vmem:[%s6272_s5 + $0xa8] sm:$0xff]  }
 0x48b   :  { %v2344_v38 = vpop.f32.mrf.mxu0  ;;  %v2445_v60 = vpop.f32.mrf.mxu1 }
 0x48c   :  { %v6062_v4 = vadd.f32 %v2445_v60, %v2344_v38 }
 0x48d   :  { %v4910_v6 = vpop.f32.mrf.mxu0  ;;  %v4926_v7 = vpop.f32.mrf.mxu1 }
 0x48e   :  { %v6064_v9 = vadd.f32 %v4926_v7, %v4910_v6  ;;  %v5250_v7 = vld [vmem:[%s6272_s5 + $0xa0] sm:$0xff]  }
 0x48f   :  { %v2347_v15 = vpop.f32.mrf.mxu0  ;;  %v2448_v54 = vpop.f32.mrf.mxu1 }
 0x490   :  { %v6066_v62 = vadd.f32 %v2448_v54, %v2347_v15 }
 0x491   :  { %v4913_v11 = vpop.f32.mrf.mxu0  ;;  %v4929_v16 = vpop.f32.mrf.mxu1 }
 0x492   :  { %v6068_v17 = vadd.f32 %v4929_v16, %v4913_v11  ;;  %v5251_v11 = vld [vmem:[%s6272_s5 + $0xd8] sm:$0xff]  }
 0x493   :  { %v2360_v18 = vpop.f32.mrf.mxu0  ;;  %v2461_v19 = vpop.f32.mrf.mxu1 }
 0x494   :  { %v6070_v3 = vadd.f32 %v2461_v19, %v2360_v18 }
 0x495   :  { %v4914_v37 = vpop.f32.mrf.mxu0  ;;  %v4930_v20 = vpop.f32.mrf.mxu1 }
 0x496   :  { %v6072_v5 = vadd.f32 %v4930_v20, %v4914_v37  ;;  %v5252_v20 = vld [vmem:[%s6272_s5 + $0xd0] sm:$0xff]  }
 0x497   :  { %v6074_v10 = vpop.f32.mrf.mxu0 }
 0x499   :  { %v4941_v23 = vpop.f32.mrf.mxu0 }
 0x49b   :  { %v2510_v29 = vpop.f32.mrf.mxu0 }
 0x49d   :  { %v4942_v33 = vpop.f32.mrf.mxu0 }
 0x49e   :  { %v2542_v8 = vpack.c.bf16 %v4942_v33, %v4941_v23  ;;  %v5253_v33 = vld [vmem:[%s6272_s5 + $0xc8] sm:$0xff]  }
 0x49f   :  { %v2513_v24 = vpop.f32.mrf.mxu0 }
 0x4a0   :  { %v2541_v34 = vpack.c.bf16 %v2513_v24, %v2510_v29 }
 0x4a1   :  { %v4945_v39 = vpop.f32.mrf.mxu0 }
 0x4a2   :  { %4955 = vmatprep.mubr.msk.bf16.mxu1 %vm70_vm0, %v2541_v34 }
 0x4a3   :  { %v2526_v63 = vpop.f32.mrf.mxu0  ;;  %4956 = vmatmul.mubr.msk.bf16.vlgmr.msra.gmra.mxu1 %vm70_vm0, %v2542_v8 }
 0x4a4   :  { %4980 = vmatpush3.bf16.msra.mxu1 %v5239_v61  ;;  %v5247_v61 = vld [vmem:[%s6272_s5 + $0xb8] sm:$0xff]  }
 0x4a5   :  { %v4946_v12 = vpop.f32.mrf.mxu0  ;;  %4981 = vmatprep.subr.bf16.mxu1 %v5240_v43 }
 0x4a6   :  { %v2544_v44 = vpack.c.bf16 %v4946_v12, %v4945_v39 }
 0x4a7   :  { %v2529_v25 = vpop.f32.mrf.mxu0 }
 0x4a8   :  { %v2543_v36 = vpack.c.bf16 %v2529_v25, %v2526_v63  ;;  %4982 = vmatpush3.bf16.msra.mxu1 %v5240_v43  ;;  %v5254_v43 = vld [vmem:[%s6272_s5 + $0xc0] sm:$0xff]  }
 0x4a9   :  { %v4973_v46 = vpop.f32.mrf.mxu0  ;;  %4983 = vmatprep.subr.bf16.mxu1 %v5241_v14 }
 0x4aa   :  { %4959 = vmatprep.mubr.msk.bf16.mxu1 %vm70_vm0, %v2543_v36 }
 0x4ab   :  { %4960 = vmatmul.mubr.msk.bf16.gmra.mxu1 %vm70_vm0, %v2544_v44  ;;  %v2697_v22 = vpop.f32.mrf.mxu0 }
 0x4ac   :  { %4984 = vmatpush3.bf16.msra.mxu1 %v5241_v14  ;;  %v5255_v14 = vld [vmem:[%s6272_s5 + $0xf8] sm:$0xff]  }
 0x4ad   :  { %v4974_v42 = vpop.f32.mrf.mxu0  ;;  %4985 = vmatprep.subr.bf16.mxu1 %v5242_v48 }
 0x4ae   :  { %v2729_v28 = vpack.c.bf16 %v4974_v42, %v4973_v46 }
 0x4af   :  { %v2700_v51 = vpop.f32.mrf.mxu0 }
 0x4b0   :  { %v2728_v26 = vpack.c.bf16 %v2700_v51, %v2697_v22  ;;  %4986 = vmatpush3.bf16.msra.mxu1 %v5242_v48  ;;  %v5256_v48 = vld [vmem:[%s6272_s5 + $0xf0] sm:$0xff]  }
 0x4b1   :  { %v4977_v53 = vpop.f32.mrf.mxu0  ;;  %5011 = vmatprep.subr.bf16.mxu1 %v5243_v49 }
 0x4b2   :  { %4987 = vmatprep.mubr.msk.bf16.mxu1 %vm70_vm0, %v2728_v26 }
 0x4b3   :  { %v2713_v13 = vpop.f32.mrf.mxu0  ;;  %4988 = vmatmul.mubr.msk.bf16.vlgmr.msra.gmra.mxu1 %vm70_vm0, %v2729_v28 }
 0x4b4   :  { %5012 = vmatpush3.bf16.msra.mxu1 %v5243_v49  ;;  %v5257_v49 = vld [vmem:[%s6272_s5 + $0xe8] sm:$0xff]  }
 0x4b5   :  { %v4978_v56 = vpop.f32.mrf.mxu0  ;;  %5013 = vmatprep.subr.bf16.mxu1 %v5244_v55 }
 0x4b6   :  { %v2731_v32 = vpack.c.bf16 %v4978_v56, %v4977_v53 }
 0x4b7   :  { %v2716_v45 = vpop.f32.mrf.mxu0 }
 0x4b8   :  { %v2730_v50 = vpack.c.bf16 %v2716_v45, %v2713_v13  ;;  %5014 = vmatpush3.bf16.msra.mxu1 %v5244_v55  ;;  %v5258_v55 = vld [vmem:[%s6272_s5 + $0xe0] sm:$0xff]  }
 0x4b9   :  { %v5005_v47 = vpop.f32.mrf.mxu0  ;;  %5015 = vmatprep.subr.bf16.mxu1 %v5245_v57 }
 0x4ba   :  { %4991 = vmatprep.mubr.msk.bf16.mxu1 %vm70_vm0, %v2730_v50 }
 0x4bb   :  { %4992 = vmatmul.mubr.msk.bf16.gmra.mxu1 %vm70_vm0, %v2731_v32  ;;  %v2884_v59 = vpop.f32.mrf.mxu0 }
 0x4bc   :  { %5016 = vmatpush3.bf16.msra.mxu1 %v5245_v57  ;;  %v5259_v57 = vld [vmem:[%s6272_s5 + $0x118] sm:$0xff]  }
 0x4bd   :  { %v5006_v30 = vpop.f32.mrf.mxu0  ;;  %5017 = vmatprep.subr.bf16.mxu1 %v5246_v31 }
 0x4be   :  { %v2916_v40 = vpack.c.bf16 %v5006_v30, %v5005_v47 }
 0x4bf   :  { %v2887_v35 = vpop.f32.mrf.mxu0 }
 0x4c0   :  { %v2915_v0 = vpack.c.bf16 %v2887_v35, %v2884_v59  ;;  %5018 = vmatpush3.bf16.msra.mxu1 %v5246_v31  ;;  %v5260_v31 = vld [vmem:[%s6272_s5 + $0x110] sm:$0xff]  }
 0x4c1   :  { %v5009_v27 = vpop.f32.mrf.mxu0  ;;  %5043 = vmatprep.subr.bf16.mxu1 %v5247_v61 }
 0x4c2   :  { %5019 = vmatprep.mubr.msk.bf16.mxu1 %vm70_vm0, %v2915_v0 }
 0x4c3   :  { %v2900_v21 = vpop.f32.mrf.mxu0  ;;  %5020 = vmatmul.mubr.msk.bf16.vlgmr.msra.gmra.mxu1 %vm70_vm0, %v2916_v40 }
 0x4c4   :  { %5044 = vmatpush3.bf16.msra.mxu1 %v5247_v61  ;;  %v5261_v61 = vld [vmem:[%s6272_s5 + $0x108] sm:$0xff]  }
 0x4c5   :  { %v5010_v1 = vpop.f32.mrf.mxu0  ;;  %5045 = vmatprep.subr.bf16.mxu1 %v5248_v58 }
 0x4c6   :  { %v2918_v60 = vpack.c.bf16 %v5010_v1, %v5009_v27 }
 0x4c7   :  { %v2903_v52 = vpop.f32.mrf.mxu0 }
 0x4c8   :  { %v2917_v38 = vpack.c.bf16 %v2903_v52, %v2900_v21  ;;  %5046 = vmatpush3.bf16.msra.mxu1 %v5248_v58  ;;  %v5262_v58 = vld [vmem:[%s6272_s5 + $0x100] sm:$0xff]  }
 0x4c9   :  { %v5037_v6 = vpop.f32.mrf.mxu0  ;;  %5047 = vmatprep.subr.bf16.mxu1 %v5249_v2 }
 0x4ca   :  { %5023 = vmatprep.mubr.msk.bf16.mxu1 %vm70_vm0, %v2917_v38 }
 0x4cb   :  { %5024 = vmatmul.mubr.msk.bf16.gmra.mxu1 %vm70_vm0, %v2918_v60  ;;  %v3071_v15 = vpop.f32.mrf.mxu0 }
 0x4cc   :  { %5048 = vmatpush3.bf16.msra.mxu1 %v5249_v2 }
 0x4cd   :  { %v5038_v54 = vpop.f32.mrf.mxu0  ;;  %5049 = vmatprep.subr.bf16.mxu1 %v5250_v7 }
 0x4ce   :  { %v3103_v19 = vpack.c.bf16 %v5038_v54, %v5037_v6 }
 0x4cf   :  { %v3074_v16 = vpop.f32.mrf.mxu0 }
 0x4d0   :  { %v3102_v18 = vpack.c.bf16 %v3074_v16, %v3071_v15  ;;  %5050 = vmatpush3.bf16.msra.mxu1 %v5250_v7  ;;  %v2464_v16 = vpop.f32.mrf.mxu1 }
 0x4d1   :  { %v5041_v37 = vpop.f32.mrf.mxu0  ;;  %5075 = vmatprep.subr.bf16.mxu1 %v5251_v11 }
 0x4d2   :  { %5051 = vmatprep.mubr.msk.bf16.mxu1 %vm70_vm0, %v3102_v18 }
 0x4d3   :  { %v3087_v23 = vpop.f32.mrf.mxu0  ;;  %5052 = vmatmul.mubr.msk.bf16.vlgmr.msra.gmra.mxu1 %vm70_vm0, %v3103_v19 }
 0x4d4   :  { %5076 = vmatpush3.bf16.msra.mxu1 %v5251_v11 }
 0x4d5   :  { %v5042_v29 = vpop.f32.mrf.mxu0  ;;  %5077 = vmatprep.subr.bf16.mxu1 %v5252_v20 }
 0x4d6   :  { %v3105_v8 = vpack.c.bf16 %v5042_v29, %v5041_v37 }
 0x4d7   :  { %v3090_v24 = vpop.f32.mrf.mxu0 }
 0x4d8   :  { %v3104_v34 = vpack.c.bf16 %v3090_v24, %v3087_v23  ;;  %5078 = vmatpush3.bf16.msra.mxu1 %v5252_v20 }
 0x4d9   :  { %v5069_v39 = vpop.f32.mrf.mxu0  ;;  %5079 = vmatprep.subr.bf16.mxu1 %v5253_v33 }
 0x4da   :  { %5055 = vmatprep.mubr.msk.bf16.mxu1 %vm70_vm0, %v3104_v34 }
 0x4db   :  { %5056 = vmatmul.mubr.msk.bf16.gmra.mxu1 %vm70_vm0, %v3105_v8  ;;  %v3258_v63 = vpop.f32.mrf.mxu0 }
 0x4dc   :  { %5080 = vmatpush3.bf16.msra.mxu1 %v5253_v33 }
 0x4dd   :  { %v5070_v12 = vpop.f32.mrf.mxu0  ;;  %5081 = vmatprep.subr.bf16.mxu1 %v5254_v43 }
 0x4de   :  { %v3290_v44 = vpack.c.bf16 %v5070_v12, %v5069_v39  ;;  %v2465_v12 = vadd.f32 %v2464_v16, %v6074_v10 }
 0x4df   :  { %v3261_v25 = vpop.f32.mrf.mxu0 }
 0x4e0   :  { %v3289_v36 = vpack.c.bf16 %v3261_v25, %v3258_v63  ;;  %5082 = vmatpush3.bf16.msra.mxu1 %v5254_v43 }
 0x4e1   :  { %v5073_v46 = vpop.f32.mrf.mxu0  ;;  %5107 = vmatprep.subr.bf16.mxu1 %v5255_v14 }
 0x4e2   :  { %5083 = vmatprep.mubr.msk.bf16.mxu1 %vm70_vm0, %v3289_v36 }
 0x4e3   :  { %v3274_v22 = vpop.f32.mrf.mxu0  ;;  %5084 = vmatmul.mubr.msk.bf16.vlgmr.msra.gmra.mxu1 %vm70_vm0, %v3290_v44 }
 0x4e4   :  { %5108 = vmatpush3.bf16.msra.mxu1 %v5255_v14 }
 0x4e5   :  { %v5074_v42 = vpop.f32.mrf.mxu0  ;;  %5109 = vmatprep.subr.bf16.mxu1 %v5256_v48 }
 0x4e6   :  { %v3292_v28 = vpack.c.bf16 %v5074_v42, %v5073_v46 }
 0x4e7   :  { %v3277_v51 = vpop.f32.mrf.mxu0 }
 0x4e8   :  { %v3291_v26 = vpack.c.bf16 %v3277_v51, %v3274_v22  ;;  %5110 = vmatpush3.bf16.msra.mxu1 %v5256_v48 }
 0x4e9   :  { %v5101_v53 = vpop.f32.mrf.mxu0  ;;  %5111 = vmatprep.subr.bf16.mxu1 %v5257_v49 }
 0x4ea   :  { %5087 = vmatprep.mubr.msk.bf16.mxu1 %vm70_vm0, %v3291_v26 }
 0x4eb   :  { %5088 = vmatmul.mubr.msk.bf16.gmra.mxu1 %vm70_vm0, %v3292_v28  ;;  %v3445_v13 = vpop.f32.mrf.mxu0 }
 0x4ec   :  { %5112 = vmatpush3.bf16.msra.mxu1 %v5257_v49 }
 0x4ed   :  { %v5102_v56 = vpop.f32.mrf.mxu0  ;;  %5113 = vmatprep.subr.bf16.mxu1 %v5258_v55 }
 0x4ee   :  { %v3477_v32 = vpack.c.bf16 %v5102_v56, %v5101_v53 }
 0x4ef   :  { %v3448_v45 = vpop.f32.mrf.mxu0 }
 0x4f0   :  { %v3476_v50 = vpack.c.bf16 %v3448_v45, %v3445_v13  ;;  %5114 = vmatpush3.bf16.msra.mxu1 %v5258_v55 }
 0x4f1   :  { %v5105_v47 = vpop.f32.mrf.mxu0  ;;  %5139 = vmatprep.subr.bf16.mxu1 %v5259_v57 }
 0x4f2   :  { %5115 = vmatprep.mubr.msk.bf16.mxu1 %vm70_vm0, %v3476_v50 }
 0x4f3   :  { %v3461_v59 = vpop.f32.mrf.mxu0  ;;  %5116 = vmatmul.mubr.msk.bf16.vlgmr.msra.gmra.mxu1 %vm70_vm0, %v3477_v32 }
 0x4f4   :  { %5140 = vmatpush3.bf16.msra.mxu1 %v5259_v57 }
 0x4f5   :  { %v5106_v30 = vpop.f32.mrf.mxu0  ;;  %5141 = vmatprep.subr.bf16.mxu1 %v5260_v31 }
 0x4f6   :  { %v3479_v40 = vpack.c.bf16 %v5106_v30, %v5105_v47 }
 0x4f7   :  { %v3464_v35 = vpop.f32.mrf.mxu0 }
 0x4f8   :  { %v3478_v0 = vpack.c.bf16 %v3464_v35, %v3461_v59  ;;  %5142 = vmatpush3.bf16.msra.mxu1 %v5260_v31 }
 0x4f9   :  { %v5133_v27 = vpop.f32.mrf.mxu0  ;;  %5143 = vmatprep.subr.bf16.mxu1 %v5261_v61 }
 0x4fa   :  { %5119 = vmatprep.mubr.msk.bf16.mxu1 %vm70_vm0, %v3478_v0 }
 0x4fb   :  { %5120 = vmatmul.mubr.msk.bf16.gmra.mxu1 %vm70_vm0, %v3479_v40  ;;  %v3632_v21 = vpop.f32.mrf.mxu0 }
 0x4fc   :  { %5144 = vmatpush3.bf16.msra.mxu1 %v5261_v61 }
 0x4fd   :  { %v5134_v1 = vpop.f32.mrf.mxu0  ;;  %5145 = vmatprep.subr.bf16.mxu1 %v5262_v58 }
 0x4fe   :  { %v3664_v38 = vpack.c.bf16 %v5134_v1, %v5133_v27 }
 0x4ff   :  { %v3635_v2 = vpop.f32.mrf.mxu0 }
 0x500   :  { %v3663_v52 = vpack.c.bf16 %v3635_v2, %v3632_v21  ;;  %5146 = vmatpush3.bf16.msra.mxu1 %v5262_v58 }
 0x501   :  { %v5137_v60 = vpop.f32.mrf.mxu0 }
 0x502   :  { %5147 = vmatprep.mubr.msk.bf16.mxu1 %vm70_vm0, %v3663_v52 }
 0x503   :  { %v3648_v6 = vpop.f32.mrf.mxu0  ;;  %5148 = vmatmul.mubr.msk.bf16.vlgmr.msra.gmra.mxu1 %vm70_vm0, %v3664_v38 }
 0x505   :  { %v5138_v7 = vpop.f32.mrf.mxu0 }
 0x506   :  { %v3666_v11 = vpack.c.bf16 %v5138_v7, %v5137_v60 }
 0x507   :  { %v3651_v15 = vpop.f32.mrf.mxu0 }
 0x508   :  { %v3665_v54 = vpack.c.bf16 %v3651_v15, %v3648_v6 }
 0x50a   :  { %5151 = vmatprep.mubr.msk.bf16.mxu1 %vm70_vm0, %v3665_v54 }
 0x50b   :  { %5152 = vmatmul.mubr.msk.bf16.gmra.mxu1 %vm70_vm0, %v3666_v11 }
 0x563   :  { %v4957_v18 = vpop.f32.mrf.mxu1 }
 0x564   :  { %v2657_v19 = vadd.f32 %v4957_v18, %v6060_v41 }
 0x565   :  { %v2624_v37 = vpop.f32.mrf.mxu1 }
 0x566   :  { %v2655_v20 = vadd.f32 %v2624_v37, %v6062_v4 }
 0x567   :  { %v4958_v23 = vpop.f32.mrf.mxu1 }
 0x568   :  { %v2658_v29 = vadd.f32 %v4958_v23, %v6064_v9 }
 0x569   :  { %v2627_v33 = vpop.f32.mrf.mxu1 }
 0x56a   :  { %v2656_v24 = vadd.f32 %v2627_v33, %v6066_v62 }
 0x56b   :  { %v4961_v34 = vpop.f32.mrf.mxu1 }
 0x56c   :  { %v2661_v8 = vadd.f32 %v4961_v34, %v6068_v17 }
 0x56d   :  { %v2640_v39 = vpop.f32.mrf.mxu1 }
 0x56e   :  { %v2659_v43 = vadd.f32 %v2640_v39, %v6070_v3 }
 0x56f   :  { %v4962_v63 = vpop.f32.mrf.mxu1 }
 0x570   :  { %v2662_v41 = vadd.f32 %v4962_v63, %v6072_v5  ;;  %v6188_v63 = vld [vmem:[%s6275_s6] ss:$0 sm:$0xff] }
 0x571   :  { %v2643_v14 = vpop.f32.mrf.mxu1 }
 0x572   :  { %v2660_v25 = vadd.f32 %v2643_v14, %v2465_v12 }
 0x573   :  { %v4989_v4 = vpop.f32.mrf.mxu1 }
 0x574   :  { %v2844_v36 = vadd.f32 %v4989_v4, %v2657_v19 }
 0x575   :  { %v2811_v44 = vpop.f32.mrf.mxu1 }
 0x576   :  { %v2842_v9 = vadd.f32 %v2811_v44, %v2655_v20  ;;  %v6193_v44 = vld [vmem:[%s6276_s7] ss:$0 sm:$0xff] }
 0x577   :  { %v4990_v46 = vpop.f32.mrf.mxu1 }
 0x578   :  { %v2845_v48 = vadd.f32 %v4990_v46, %v2658_v29 }
 0x579   :  { %v2814_v62 = vpop.f32.mrf.mxu1 }
 0x57a   :  { %v2843_v22 = vadd.f32 %v2814_v62, %v2656_v24 }
 0x57b   :  { %v4993_v42 = vpop.f32.mrf.mxu1 }
 0x57c   :  { %v2848_v17 = vadd.f32 %v4993_v42, %v2661_v8 }
 0x57d   :  { %v2827_v49 = vpop.f32.mrf.mxu1 }
 0x57e   :  { %v2846_v51 = vadd.f32 %v2827_v49, %v2659_v43 }
 0x57f   :  { %v4994_v3 = vpop.f32.mrf.mxu1 }
 0x580   :  { %v2849_v26 = vadd.f32 %v4994_v3, %v2662_v41 }
 0x581   :  { %v2830_v28 = vpop.f32.mrf.mxu1 }
 0x582   :  { %v6181_v10 = vadd.f32 %v2830_v28, %v2660_v25 }
 0x583   :  { %v5021_v5 = vpop.f32.mrf.mxu1 }
 0x584   :  { %v3031_v11 = vadd.f32 %v5021_v5, %v2844_v36 }
 0x585   :  { %v2998_v53 = vpop.f32.mrf.mxu1 }
 0x586   :  { %v3029_v18 = vadd.f32 %v2998_v53, %v2842_v9 }
 0x587   :  { %v5022_v55 = vpop.f32.mrf.mxu1 }
 0x588   :  { %v3032_v20 = vadd.f32 %v5022_v55, %v2845_v48 }
 0x589   :  { %v3001_v13 = vpop.f32.mrf.mxu1 }
 0x58a   :  { %v3030_v24 = vadd.f32 %v3001_v13, %v2843_v22 }
 0x58b   :  { %v5025_v56 = vpop.f32.mrf.mxu1 }
 0x58c   :  { %v3035_v4 = vadd.f32 %v5025_v56, %v2848_v17 }
 0x58d   :  { %v3014_v57 = vpop.f32.mrf.mxu1 }
 0x58e   :  { %v3033_v36 = vadd.f32 %v3014_v57, %v2846_v51 }
 0x58f   :  { %v5026_v45 = vpop.f32.mrf.mxu1 }
 0x590   :  { %v3036_v42 = vadd.f32 %v5026_v45, %v2849_v26 }
 0x591   :  { %v3017_v50 = vpop.f32.mrf.mxu1 }
 0x592   :  { %v3034_v55 = vadd.f32 %v3017_v50, %v6181_v10  ;;  %v5299_v50 = vld [vmem:[%s6269_s0] sm:$0xff] }
 0x593   :  { %v5053_v32 = vpop.f32.mrf.mxu1 }
 0x594   :  { %v3218_v19 = vadd.f32 %v5053_v32, %v3031_v11 }
 0x595   :  { %v3185_v47 = vpop.f32.mrf.mxu1 }
 0x596   :  { %v3216_v23 = vadd.f32 %v3185_v47, %v3029_v18  ;;  %v5298_v47 = vld [vmem:[%s6269_s0 + $0x10] sm:$0xff] }
 0x597   :  { %v5054_v31 = vpop.f32.mrf.mxu1 }
 0x598   :  { %v3219_v34 = vadd.f32 %v5054_v31, %v3032_v20 }
 0x599   :  { %v3188_v59 = vpop.f32.mrf.mxu1 }
 0x59a   :  { %v3217_v12 = vadd.f32 %v3188_v59, %v3030_v24 }
 0x59b   :  { %v5057_v30 = vpop.f32.mrf.mxu1 }
 0x59c   :  { %v3222_v49 = vadd.f32 %v5057_v30, %v3035_v4 }
 0x59d   :  { %v3201_v61 = vpop.f32.mrf.mxu1 }
 0x59e   :  { %v3220_v3 = vadd.f32 %v3201_v61, %v3033_v36 }
 0x59f   :  { %v5058_v35 = vpop.f32.mrf.mxu1 }
 0x5a0   :  { %v3223_v13 = vadd.f32 %v5058_v35, %v3036_v42  ;;  %v5305_v42 = vld [vmem:[%s6269_s0 + $0x28] sm:$0xff] }
 0x5a1   :  { %v3204_v0 = vpop.f32.mrf.mxu1 }
 0x5a2   :  { %v3221_v30 = vadd.f32 %v3204_v0, %v3034_v55 }
 0x5a3   :  { %v5085_v40 = vpop.f32.mrf.mxu1 }
 0x5a4   :  { %v3405_v29 = vadd.f32 %v5085_v40, %v3218_v19 }
 0x5a5   :  { %v3372_v27 = vpop.f32.mrf.mxu1 }
 0x5a6   :  { %v3403_v8 = vadd.f32 %v3372_v27, %v3216_v23 }
 0x5a7   :  { %v5086_v58 = vpop.f32.mrf.mxu1 }
 0x5a8   :  { %v3406_v41 = vadd.f32 %v5086_v58, %v3219_v34 }
 0x5a9   :  { %v3375_v21 = vpop.f32.mrf.mxu1 }
 0x5aa   :  { %v3404_v46 = vadd.f32 %v3375_v21, %v3217_v12  ;;  %v5302_v12 = vld [vmem:[%s6269_s0 + $0x30] sm:$0xff] }
 0x5ab   :  { %v5089_v1 = vpop.f32.mrf.mxu1 }
 0x5ac   :  { %v3409_v56 = vadd.f32 %v5089_v1, %v3222_v49 }
 0x5ad   :  { %v3388_v2 = vpop.f32.mrf.mxu1 }
 0x5ae   :  { %v3407_v57 = vadd.f32 %v3388_v2, %v3220_v3 }
 0x5af   :  { %v5090_v52 = vpop.f32.mrf.mxu1 }
 0x5b0   :  { %v3410_v61 = vadd.f32 %v5090_v52, %v3223_v13  ;;  %v5300_v52 = vld [vmem:[%s6269_s0 + $0x18] sm:$0xff] }
 0x5b1   :  { %v6183_v38 = vpop.f32.mrf.mxu1 }
 0x5b2   :  { %v3408_v2 = vadd.f32 %v6183_v38, %v3221_v30 }
 0x5b3   :  { %v5117_v60 = vpop.f32.mrf.mxu1 }
 0x5b4   :  { %v3592_v39 = vadd.f32 %v5117_v60, %v3405_v29 }
 0x5b5   :  { %v3559_v6 = vpop.f32.mrf.mxu1 }
 0x5b6   :  { %v3590_v14 = vadd.f32 %v3559_v6, %v3403_v8 }
 0x5b7   :  { %v5118_v7 = vpop.f32.mrf.mxu1 }
 0x5b8   :  { %v3593_v48 = vadd.f32 %v5118_v7, %v3406_v41 }
 0x5b9   :  { %v3562_v15 = vpop.f32.mrf.mxu1 }
 0x5ba   :  { %v3591_v5 = vadd.f32 %v3562_v15, %v3404_v46 }
 0x5bb   :  { %v5121_v54 = vpop.f32.mrf.mxu1 }
 0x5bc   :  { %v3596_v40 = vadd.f32 %v5121_v54, %v3409_v56 }
 0x5bd   :  { %v3575_v16 = vpop.f32.mrf.mxu1 }
 0x5be   :  { %v3594_v27 = vadd.f32 %v3575_v16, %v3407_v57 }
 0x5bf   :  { %v5122_v37 = vpop.f32.mrf.mxu1 }
 0x5c0   :  { %v3597_v60 = vadd.f32 %v5122_v37, %v3410_v61  ;;  %v5301_v37 = vld [vmem:[%s6269_s0 + $0x8] sm:$0xff] }
 0x5c1   :  { %v3578_v33 = vpop.f32.mrf.mxu1 }
 0x5c2   :  { %v3595_v16 = vadd.f32 %v3578_v33, %v3408_v2 }
 0x5c3   :  { %v5149_v43 = vpop.f32.mrf.mxu1 }
 0x5c4   :  { %v3779_v25 = vadd.f32 %v5149_v43, %v3592_v39 }
 0x5c5   :  { %v3746_v9 = vpop.f32.mrf.mxu1 }
 0x5c6   :  { %v3794_v62 = vmul.f32 %v6188_v63, %v3779_v25  ;;  %v3777_v22 = vadd.f32 %v3746_v9, %v3590_v14  ;;  %v5303_v14 = vld [vmem:[%s6269_s0 + $0x20] sm:$0xff] }
 0x5c7   :  { %v5150_v28 = vpop.f32.mrf.mxu1 }
 0x5c8   :  { %v3809_v53 = vadd.f32 %v6193_v44, %v3794_v62  ;;  %v3792_v17 = vmul.f32 %v6188_v63, %v3777_v22  ;;  %v3780_v51 = vadd.f32 %v5150_v28, %v3593_v48  ;;  %v5304_v48 = vld [vmem:[%s6269_s0 + $0x38] sm:$0xff] }
 0x5c9   :  { %v3749_v32 = vpop.f32.mrf.mxu1 }
 0x5ca   :  { %v3817_v26 = vadd.f32 %v5298_v47, %v3809_v53  ;;  %v3807_v45 = vadd.f32 %v6193_v44, %v3792_v17  ;;  %v3795_v31 = vmul.f32 %v6188_v63, %v3780_v51  ;;  %v3778_v59 = vadd.f32 %v3749_v32, %v3591_v5 }
 0x5cb   :  { %v5153_v58 = vpop.f32.mrf.mxu1 }
 0x5cc   :  { %v3825_v10 = vmax.f32 %v3817_v26, 0.0  ;;  %v3815_v35 = vadd.f32 %v5299_v50, %v3807_v45  ;;  %v3810_v21 = vadd.f32 %v6193_v44, %v3795_v31  ;;  %v3793_v1 = vmul.f32 %v6188_v63, %v3778_v59 }
 0x5cd   :  { %v3783_v6 = vadd.f32 %v5153_v58, %v3596_v40  ;;  %v3762_v7 = vpop.f32.mrf.mxu1 }
 0x5ce   :  { %3833 = vst.msk [vmem:[%s6277_s8 + $0x10] sm:$0xff] %vm70_vm0, %v3825_v10  ;;  %v3823_v0 = vmax.f32 %v3815_v35, 0.0  ;;  %v3818_v15 = vadd.f32 %v5300_v52, %v3810_v21  ;;  %v3808_v54 = vadd.f32 %v6193_v44, %v3793_v1  ;;  %v3781_v11 = vadd.f32 %v3762_v7, %v3594_v27 }
 0x5cf   :  { %v3798_v38 = vmul.f32 %v6188_v63, %v3783_v6  ;;  %v5154_v18 = vpop.f32.mrf.mxu1 }
 0x5d0   :  { %3831 = vst.msk [vmem:[%s6277_s8] sm:$0xff] %vm70_vm0, %v3823_v0  ;;  %v3826_v19 = vmax.f32 %v3818_v15, 0.0  ;;  %v3816_v20 = vadd.f32 %v5301_v37, %v3808_v54  ;;  %v3796_v23 = vmul.f32 %v6188_v63, %v3781_v11  ;;  %v3784_v29 = vadd.f32 %v5154_v18, %v3597_v60 }
 0x5d1   :  { %v3813_v24 = vadd.f32 %v6193_v44, %v3798_v38  ;;  %v3765_v33 = vpop.f32.mrf.mxu1 }
 0x5d2   :  { %3834 = vst.msk [vmem:[%s6277_s8 + $0x18] sm:$0xff] %vm70_vm0, %v3826_v19  ;;  %v3824_v34 = vmax.f32 %v3816_v20, 0.0  ;;  %v3811_v8 = vadd.f32 %v6193_v44, %v3796_v23  ;;  %v3799_v39 = vmul.f32 %v6188_v63, %v3784_v29  ;;  %v3782_v43 = vadd.f32 %v3765_v33, %v3595_v16 }
 0x5d3   :  { %v3821_v41 = vadd.f32 %v5302_v12, %v3813_v24 }
 0x5d4   :  { %3832 = vst.msk [vmem:[%s6277_s8 + $0x8] sm:$0xff] %vm70_vm0, %v3824_v34  ;;  %v3819_v25 = vadd.f32 %v5303_v14, %v3811_v8  ;;  %v3814_v4 = vadd.f32 %v6193_v44, %v3799_v39  ;;  %v3797_v36 = vmul.f32 %v6188_v63, %v3782_v43 }
 0x5d5   :  { %v3829_v9 = vmax.f32 %v3821_v41, 0.0 }
 0x5d6   :  { %v3827_v46 = vmax.f32 %v3819_v25, 0.0  ;;  %v3822_v62 = vadd.f32 %v5304_v48, %v3814_v4  ;;  %v3812_v22 = vadd.f32 %v6193_v44, %v3797_v36 }
 0x5d7   :  { %3837 = vst.msk [vmem:[%s6277_s8 + $0x30] sm:$0xff] %vm70_vm0, %v3829_v9 }
 0x5d8   :  { %3835 = vst.msk [vmem:[%s6277_s8 + $0x20] sm:$0xff] %vm70_vm0, %v3827_v46  ;;  %v3830_v63 = vmax.f32 %v3822_v62, 0.0  ;;  %v3820_v49 = vadd.f32 %v5305_v42, %v3812_v22 }
 0x5da   :  { %3838 = vst.msk [vmem:[%s6277_s8 + $0x38] sm:$0xff] %vm70_vm0, %v3830_v63  ;;  %v3828_v44 = vmax.f32 %v3820_v49, 0.0 }
 0x5dc   :  { %3836 = vst.msk [vmem:[%s6277_s8 + $0x28] sm:$0xff] %vm70_vm0, %v3828_v44 }

// kernel: catted_generator_forward.10
= control target key start
LH: loop header
LB: loop body
LE: loop exit
PB: predicated region body
PF: predicated region fallthrough
CT: control target
= control target key end

     0   :  { %vm50_vm0 = vcmask 261120   ;;  %s5538_s0 = inlined_call_operand.vmem [shape: f32[32,128], index: 0, kind: input, shape index: {}]   ;;  %s5539_s1 = inlined_call_operand.vmem [shape: bf16[9,32,32], index: 1, kind: input, shape index: {}]   ;;  %s5540_s2 = inlined_call_operand.vmem [shape: bf16[9,128,128], index: 2, kind: input, shape index: {}]   ;;  %s5541_s5 = inlined_call_operand.vmem [shape: bf16[9,128,128], index: 5, kind: input, shape index: {}]   ;;  %s5542_s3 = inlined_call_operand.vmem [shape: f32[1,128], index: 3, kind: input, shape index: {}]   ;;  %s5543_s4 = inlined_call_operand.vmem [shape: f32[1,128], index: 4, kind: input, shape index: {}]   ;;  %s5544_s6 = inlined_call_operand.vmem [shape: f32[1,128], index: 6, kind: input, shape index: {}]   ;;  %s5545_s7 = inlined_call_operand.vmem [shape: f32[1,128], index: 7, kind: input, shape index: {}]   ;;  %s5546_s8 = inlined_call_operand.vmem [shape: f32[32,128], index: 8, kind: output, shape index: {}]  }
   0x1   :  { %v32_v0 = vld [vmem:[%s5538_s0 + $0x10] sm:$0xff]  ;;  %v33_v1 = vld [vmem:[%s5538_s0 + $0x18] sm:$0xff]  ;;  %v30_v2 = vld [vmem:[%s5538_s0] sm:$0xff] }
   0x2   :  { %v4795_v3 = vpack.c.bf16 %v33_v1, %v32_v0  ;;  %v31_v4 = vld [vmem:[%s5538_s0 + $0x8] sm:$0xff]  ;;  %v4557_v6 = vld [vmem:[%s5539_s1] sm:$0xff]   ;;  %v4559_v8 = vld [vmem:[%s5539_s1 + $0x10] sm:$0xff]  }
   0x3   :  { %v4800_v5 = vpack.c.bf16 %v31_v4, %v30_v2  ;;  %4057 = vmatprep.mubr.msk.bf16.mxu1 %vm50_vm0, %v4557_v6  ;;  %v4558_v7 = vld [vmem:[%s5539_s1 + $0x8] sm:$0xff]   ;;  %v4563_v9 = vld [vmem:[%s5540_s2 + $0x78] sm:$0xff]   ;;  %v4565_v10 = vld [vmem:[%s5540_s2 + $0x70] sm:$0xff]  }
   0x4   :  { %4053 = vmatprep.subr.bf16.mxu1 %v4795_v3  ;;  %4069 = vmatprep.subr.bf16.mxu0 %v4563_v9  ;;  %v4567_v11 = vld [vmem:[%s5540_s2 + $0x68] sm:$0xff]   ;;  %v4561_v12 = vld [vmem:[%s5540_s2 + $0x38] sm:$0xff]   ;;  %v4562_v14 = vld [vmem:[%s5540_s2 + $0x30] sm:$0xff]  }
   0x5   :  { %4054 = vmatpush3.bf16.msra.mxu1 %v4795_v3  ;;  %4070 = vmatpush3.bf16.msra.mxu0 %v4563_v9  ;;  %v4560_v13 = vld [vmem:[%s5539_s1 + $0x18] sm:$0xff]   ;;  %v4569_v15 = vld [vmem:[%s5540_s2 + $0x60] sm:$0xff]   ;;  %v4564_v16 = vld [vmem:[%s5540_s2 + $0x28] sm:$0xff]  }
   0x6   :  { %4055 = vmatprep.subr.bf16.mxu1 %v4800_v5  ;;  %4071 = vmatprep.subr.bf16.mxu0 %v4565_v10  ;;  %v4566_v17 = vld [vmem:[%s5540_s2 + $0x20] sm:$0xff]   ;;  %v4568_v18 = vld [vmem:[%s5540_s2 + $0x18] sm:$0xff]   ;;  %v4570_v19 = vld [vmem:[%s5540_s2 + $0x10] sm:$0xff]  }
   0x7   :  { %v4571_v20 = vld [vmem:[%s5540_s2 + $0x58] sm:$0xff]   ;;  %v4572_v21 = vld [vmem:[%s5540_s2 + $0x8] sm:$0xff]   ;;  %v4573_v22 = vld [vmem:[%s5540_s2 + $0x50] sm:$0xff]  }
   0x8   :  { %v4574_v23 = vld [vmem:[%s5540_s2] sm:$0xff]   ;;  %v4575_v24 = vld [vmem:[%s5540_s2 + $0x48] sm:$0xff]   ;;  %v4581_v36 = vld [vmem:[%s5540_s2 + $0xb8] sm:$0xff]  }
   0x9   :  { %4056 = vmatpush3.bf16.msra.mxu1 %v4800_v5  ;;  %4072 = vmatpush3.bf16.msra.mxu0 %v4565_v10  ;;  %v4576_v25 = vld [vmem:[%s5540_s2 + $0x40] sm:$0xff]   ;;  %v4578_v39 = vld [vmem:[%s5539_s1 + $0x28] sm:$0xff]   ;;  %v4579_v41 = vld [vmem:[%s5539_s1 + $0x30] sm:$0xff]  }
   0xa   :  { %4061 = vmatprep.subr.bf16.mxu1 %v4795_v3  ;;  %4073 = vmatprep.subr.bf16.mxu0 %v4567_v11  ;;  %v4577_v31 = vld [vmem:[%s5539_s1 + $0x20] sm:$0xff]   ;;  %v4582_v42 = vld [vmem:[%s5540_s2 + $0xb0] sm:$0xff]   ;;  %v4584_v43 = vld [vmem:[%s5540_s2 + $0xf8] sm:$0xff]  }
   0xb   :  { %v4583_v44 = vld [vmem:[%s5540_s2 + $0xa8] sm:$0xff]   ;;  %v4580_v45 = vld [vmem:[%s5539_s1 + $0x38] sm:$0xff]   ;;  %v4586_v46 = vld [vmem:[%s5540_s2 + $0xf0] sm:$0xff]  }
   0xc   :  { %4058 = vmatmul.mubr.msk.bf16.vlgmr.msra.gmra.mxu1 %vm50_vm0, %v4558_v7  ;;  %v4585_v47 = vld [vmem:[%s5540_s2 + $0xa0] sm:$0xff]   ;;  %v4587_v48 = vld [vmem:[%s5540_s2 + $0x98] sm:$0xff]   ;;  %v4588_v49 = vld [vmem:[%s5540_s2 + $0xe8] sm:$0xff]  }
   0xd   :  { %4062 = vmatpush3.bf16.msra.mxu1 %v4795_v3  ;;  %4065 = vmatprep.mubr.msk.bf16.mxu1 %vm50_vm0, %v4559_v8  ;;  %v4589_v50 = vld [vmem:[%s5540_s2 + $0x90] sm:$0xff]   ;;  %v4590_v51 = vld [vmem:[%s5540_s2 + $0xe0] sm:$0xff]   ;;  %v4591_v52 = vld [vmem:[%s5540_s2 + $0x88] sm:$0xff]  }
   0xe   :  { %4063 = vmatprep.subr.bf16.mxu1 %v4800_v5  ;;  %4074 = vmatpush3.bf16.msra.mxu0 %v4567_v11  ;;  %v4592_v53 = vld [vmem:[%s5540_s2 + $0xd8] sm:$0xff]   ;;  %v4593_v54 = vld [vmem:[%s5540_s2 + $0x80] sm:$0xff]   ;;  %v4594_v55 = vld [vmem:[%s5540_s2 + $0xd0] sm:$0xff]  }
   0xf   :  { %4075 = vmatprep.subr.bf16.mxu0 %v4569_v15  ;;  %v4595_v56 = vld [vmem:[%s5540_s2 + $0xc8] sm:$0xff]   ;;  %v4596_v57 = vld [vmem:[%s5540_s2 + $0xc0] sm:$0xff]  }
  0x11   :  { %4064 = vmatpush3.bf16.msra.mxu1 %v4800_v5 }
  0x12   :  { %4089 = vmatprep.subr.bf16.mxu1 %v4561_v12  ;;  %4076 = vmatpush3.bf16.msra.mxu0 %v4569_v15 }
  0x13   :  { %4077 = vmatprep.subr.bf16.mxu0 %v4571_v20 }
  0x14   :  { %4066 = vmatmul.mubr.msk.bf16.vlgmr.msra.gmra.mxu1 %vm50_vm0, %v4560_v13  ;;  %v4597_v13 = vld [vmem:[%s5539_s1 + $0x40] sm:$0xff]  }
  0x15   :  { %4090 = vmatpush3.bf16.msra.mxu1 %v4561_v12 }
  0x16   :  { %4091 = vmatprep.subr.bf16.mxu1 %v4562_v14  ;;  %4078 = vmatpush3.bf16.msra.mxu0 %v4571_v20 }
  0x17   :  { %4079 = vmatprep.subr.bf16.mxu0 %v4573_v22 }
  0x19   :  { %4092 = vmatpush3.bf16.msra.mxu1 %v4562_v14 }
  0x1a   :  { %4093 = vmatprep.subr.bf16.mxu1 %v4564_v16  ;;  %4080 = vmatpush3.bf16.msra.mxu0 %v4573_v22 }
  0x1b   :  { %4081 = vmatprep.subr.bf16.mxu0 %v4575_v24 }
  0x1d   :  { %4094 = vmatpush3.bf16.msra.mxu1 %v4564_v16 }
  0x1e   :  { %4095 = vmatprep.subr.bf16.mxu1 %v4566_v17  ;;  %4082 = vmatpush3.bf16.msra.mxu0 %v4575_v24  ;;  %v4602_v24 = vld [vmem:[%s5540_s2 + $0x130] sm:$0xff]  }
  0x1f   :  { %4083 = vmatprep.subr.bf16.mxu0 %v4576_v25 }
  0x21   :  { %4096 = vmatpush3.bf16.msra.mxu1 %v4566_v17 }
  0x22   :  { %4097 = vmatprep.subr.bf16.mxu1 %v4568_v18  ;;  %4084 = vmatpush3.bf16.msra.mxu0 %v4576_v25  ;;  %v4604_v25 = vld [vmem:[%s5540_s2 + $0x178] sm:$0xff]  }
  0x23   :  { %4137 = vmatprep.subr.bf16.mxu0 %v4795_v3 }
  0x25   :  { %4098 = vmatpush3.bf16.msra.mxu1 %v4568_v18  ;;  %v4601_v18 = vld [vmem:[%s5540_s2 + $0x138] sm:$0xff]  }
  0x26   :  { %4099 = vmatprep.subr.bf16.mxu1 %v4570_v19 }
  0x29   :  { %4100 = vmatpush3.bf16.msra.mxu1 %v4570_v19 }
  0x2a   :  { %4101 = vmatprep.subr.bf16.mxu1 %v4572_v21 }
  0x2d   :  { %4102 = vmatpush3.bf16.msra.mxu1 %v4572_v21  ;;  %v4598_v21 = vld [vmem:[%s5539_s1 + $0x48] sm:$0xff]  }
  0x2e   :  { %4103 = vmatprep.subr.bf16.mxu1 %v4574_v23 }
  0x31   :  { %4104 = vmatpush3.bf16.msra.mxu1 %v4574_v23  ;;  %v4599_v23 = vld [vmem:[%s5539_s1 + $0x50] sm:$0xff]  }
  0x32   :  { %4109 = vmatprep.subr.bf16.mxu1 %v4795_v3 }
  0xcc   :  { %v4059_v26 = vpop.f32.mrf.mxu1 }
  0xce   :  { %v91_v27 = vpop.f32.mrf.mxu1 }
  0xd0   :  { %v4060_v28 = vpop.f32.mrf.mxu1 }
  0xd1   :  { %v107_v32 = vpack.c.bf16 %v4060_v28, %v4059_v26  ;;  %v4603_v26 = vld [vmem:[%s5540_s2 + $0x128] sm:$0xff]   ;;  %v4606_v28 = vld [vmem:[%s5540_s2 + $0x170] sm:$0xff]  }
  0xd2   :  { %v94_v29 = vpop.f32.mrf.mxu1 }
  0xd3   :  { %v106_v30 = vpack.c.bf16 %v94_v29, %v91_v27  ;;  %v4600_v27 = vld [vmem:[%s5539_s1 + $0x58] sm:$0xff]   ;;  %v4605_v29 = vld [vmem:[%s5540_s2 + $0x120] sm:$0xff]  }
  0xd4   :  { %v4067_v33 = vpop.f32.mrf.mxu1 }
  0xd5   :  { %4105 = vmatprep.mubr.bf16.mxu1 %v106_v30  ;;  %v4607_v30 = vld [vmem:[%s5540_s2 + $0x118] sm:$0xff]  }
  0xd6   :  { %v179_v34 = vpop.f32.mrf.mxu1  ;;  %4106 = vmatmul.mubr.bf16.vlgmr.msra.gmra.mxu1 %v107_v32  ;;  %v4609_v32 = vld [vmem:[%s5540_s2 + $0x110] sm:$0xff]  }
  0xd7   :  { %4110 = vmatpush3.bf16.msra.mxu1 %v4795_v3  ;;  %4113 = vmatprep.mubr.msk.bf16.mxu1 %vm50_vm0, %v4577_v31  ;;  %v4608_v31 = vld [vmem:[%s5540_s2 + $0x168] sm:$0xff]  }
  0xd8   :  { %v4068_v35 = vpop.f32.mrf.mxu1  ;;  %4111 = vmatprep.subr.bf16.mxu1 %v4800_v5 }
  0xd9   :  { %v195_v37 = vpack.c.bf16 %v4068_v35, %v4067_v33  ;;  %v4610_v33 = vld [vmem:[%s5540_s2 + $0x160] sm:$0xff]   ;;  %v4612_v35 = vld [vmem:[%s5540_s2 + $0x158] sm:$0xff]  }
  0xda   :  { %v182_v38 = vpop.f32.mrf.mxu1 }
  0xdb   :  { %4112 = vmatpush3.bf16.msra.mxu1 %v4800_v5  ;;  %v194_v40 = vpack.c.bf16 %v182_v38, %v179_v34  ;;  %v4611_v34 = vld [vmem:[%s5540_s2 + $0x108] sm:$0xff]  }
  0xdc   :  { %4117 = vmatprep.subr.bf16.mxu1 %v4581_v36  ;;  %v4615_v38 = vld [vmem:[%s5540_s2 + $0x148] sm:$0xff]  }
  0xdd   :  { %4085 = vmatprep.mubr.bf16.mxu0 %v194_v40 }
  0xde   :  { %4086 = vmatmul.mubr.bf16.vlgmr.msra.gmra.mxu0 %v195_v37  ;;  %4114 = vmatmul.mubr.msk.bf16.vlgmr.msra.gmra.mxu1 %vm50_vm0, %v4578_v39  ;;  %v4614_v37 = vld [vmem:[%s5540_s2 + $0x150] sm:$0xff]   ;;  %v4616_v39 = vld [vmem:[%s5540_s2 + $0x140] sm:$0xff]  }
  0xdf   :  { %4138 = vmatpush3.bf16.msra.mxu0 %v4795_v3  ;;  %4141 = vmatprep.mubr.msk.bf16.mxu0 %vm50_vm0, %v4579_v41 }
  0xe0   :  { %4139 = vmatprep.subr.bf16.mxu0 %v4800_v5  ;;  %4118 = vmatpush3.bf16.msra.mxu1 %v4581_v36  ;;  %v4613_v36 = vld [vmem:[%s5540_s2 + $0x100] sm:$0xff]  }
  0xe1   :  { %4119 = vmatprep.subr.bf16.mxu1 %v4582_v42 }
  0xe3   :  { %4140 = vmatpush3.bf16.msra.mxu0 %v4800_v5 }
  0xe4   :  { %4120 = vmatpush3.bf16.msra.mxu1 %v4582_v42  ;;  %4145 = vmatprep.subr.bf16.mxu0 %v4584_v43 }
  0xe5   :  { %4121 = vmatprep.subr.bf16.mxu1 %v4583_v44 }
  0xe6   :  { %4142 = vmatmul.mubr.msk.bf16.vlgmr.msra.gmra.mxu0 %vm50_vm0, %v4580_v45 }
  0xe7   :  { %4146 = vmatpush3.bf16.msra.mxu0 %v4584_v43 }
  0xe8   :  { %4122 = vmatpush3.bf16.msra.mxu1 %v4583_v44  ;;  %4147 = vmatprep.subr.bf16.mxu0 %v4586_v46 }
  0xe9   :  { %4123 = vmatprep.subr.bf16.mxu1 %v4585_v47 }
  0xeb   :  { %4148 = vmatpush3.bf16.msra.mxu0 %v4586_v46 }
  0xec   :  { %4124 = vmatpush3.bf16.msra.mxu1 %v4585_v47  ;;  %4149 = vmatprep.subr.bf16.mxu0 %v4588_v49 }
  0xed   :  { %4125 = vmatprep.subr.bf16.mxu1 %v4587_v48 }
  0xef   :  { %4150 = vmatpush3.bf16.msra.mxu0 %v4588_v49 }
  0xf0   :  { %4126 = vmatpush3.bf16.msra.mxu1 %v4587_v48  ;;  %4151 = vmatprep.subr.bf16.mxu0 %v4590_v51 }
  0xf1   :  { %4127 = vmatprep.subr.bf16.mxu1 %v4589_v50 }
  0xf3   :  { %4152 = vmatpush3.bf16.msra.mxu0 %v4590_v51 }
  0xf4   :  { %4128 = vmatpush3.bf16.msra.mxu1 %v4589_v50  ;;  %4153 = vmatprep.subr.bf16.mxu0 %v4592_v53 }
  0xf5   :  { %4129 = vmatprep.subr.bf16.mxu1 %v4591_v52 }
  0xf7   :  { %4154 = vmatpush3.bf16.msra.mxu0 %v4592_v53 }
  0xf8   :  { %4130 = vmatpush3.bf16.msra.mxu1 %v4591_v52  ;;  %4155 = vmatprep.subr.bf16.mxu0 %v4594_v55 }
  0xf9   :  { %4131 = vmatprep.subr.bf16.mxu1 %v4593_v54 }
  0xfb   :  { %4156 = vmatpush3.bf16.msra.mxu0 %v4594_v55 }
  0xfc   :  { %4132 = vmatpush3.bf16.msra.mxu1 %v4593_v54  ;;  %4157 = vmatprep.subr.bf16.mxu0 %v4595_v56 }
  0xfd   :  { %4165 = vmatprep.subr.bf16.mxu1 %v4795_v3 }
  0xff   :  { %4158 = vmatpush3.bf16.msra.mxu0 %v4595_v56 }
 0x100   :  { %4159 = vmatprep.subr.bf16.mxu0 %v4596_v57 }
 0x103   :  { %4160 = vmatpush3.bf16.msra.mxu0 %v4596_v57 }
 0x104   :  { %4193 = vmatprep.subr.bf16.mxu0 %v4795_v3 }
 0x196   :  { %v4107_v58 = vpop.f32.mrf.mxu1 }
 0x198   :  { %v392_v59 = vpop.f32.mrf.mxu1 }
 0x19a   :  { %v4108_v60 = vpop.f32.mrf.mxu1 }
 0x19c   :  { %v395_v61 = vpop.f32.mrf.mxu1 }
 0x19e   :  { %v4087_v62 = vpop.f32.mrf.mxu0  ;;  %v4115_v63 = vpop.f32.mrf.mxu1 }
 0x19f   :  { %v4948_v0 = vadd.f32 %v4107_v58, %v4087_v62 }
 0x1a0   :  { %v295_v1 = vpop.f32.mrf.mxu0  ;;  %v462_v2 = vpop.f32.mrf.mxu1 }
 0x1a1   :  { %v4950_v4 = vadd.f32 %v392_v59, %v295_v1 }
 0x1a2   :  { %v4088_v6 = vpop.f32.mrf.mxu0  ;;  %v4116_v7 = vpop.f32.mrf.mxu1 }
 0x1a3   :  { %v4952_v8 = vadd.f32 %v4108_v60, %v4088_v6  ;;  %v478_v14 = vpack.c.bf16 %v4116_v7, %v4115_v63  ;;  %v4618_v7 = vld [vmem:[%s5539_s1 + $0x68] sm:$0xff]  }
 0x1a4   :  { %v298_v9 = vpop.f32.mrf.mxu0  ;;  %v465_v10 = vpop.f32.mrf.mxu1 }
 0x1a5   :  { %v4954_v11 = vadd.f32 %v395_v61, %v298_v9  ;;  %v477_v12 = vpack.c.bf16 %v465_v10, %v462_v2  ;;  %v4617_v61 = vld [vmem:[%s5539_s1 + $0x60] sm:$0xff]   ;;  %v4621_v2 = vld [vmem:[%s5540_s2 + $0x1b8] sm:$0xff]   ;;  %v4619_v9 = vld [vmem:[%s5539_s1 + $0x70] sm:$0xff]  }
 0x1a6   :  { %v4143_v15 = vpop.f32.mrf.mxu0  ;;  %v4622_v10 = vld [vmem:[%s5540_s2 + $0x1b0] sm:$0xff]  }
 0x1a7   :  { %4133 = vmatprep.mubr.bf16.mxu1 %v477_v12  ;;  %v4623_v12 = vld [vmem:[%s5540_s2 + $0x1a8] sm:$0xff]  }
 0x1a8   :  { %4134 = vmatmul.mubr.bf16.vlgmr.msra.gmra.mxu1 %v478_v14  ;;  %v652_v16 = vpop.f32.mrf.mxu0  ;;  %v4626_v14 = vld [vmem:[%s5540_s2 + $0x1f0] sm:$0xff]  }
 0x1a9   :  { %4166 = vmatpush3.bf16.msra.mxu1 %v4795_v3  ;;  %4169 = vmatprep.mubr.msk.bf16.mxu1 %vm50_vm0, %v4597_v13  ;;  %v4620_v13 = vld [vmem:[%s5539_s1 + $0x78] sm:$0xff]  }
 0x1aa   :  { %v4144_v17 = vpop.f32.mrf.mxu0  ;;  %4167 = vmatprep.subr.bf16.mxu1 %v4800_v5 }
 0x1ab   :  { %v668_v19 = vpack.c.bf16 %v4144_v17, %v4143_v15  ;;  %v4625_v15 = vld [vmem:[%s5540_s2 + $0x1a0] sm:$0xff]   ;;  %v4628_v17 = vld [vmem:[%s5540_s2 + $0x1e8] sm:$0xff]  }
 0x1ac   :  { %v655_v20 = vpop.f32.mrf.mxu0 }
 0x1ad   :  { %v667_v22 = vpack.c.bf16 %v655_v20, %v652_v16  ;;  %4168 = vmatpush3.bf16.msra.mxu1 %v4800_v5  ;;  %v4627_v16 = vld [vmem:[%s5540_s2 + $0x198] sm:$0xff]   ;;  %v4631_v20 = vld [vmem:[%s5540_s2 + $0x188] sm:$0xff]  }
 0x1ae   :  { %4173 = vmatprep.subr.bf16.mxu1 %v4601_v18 }
 0x1af   :  { %4161 = vmatprep.mubr.bf16.mxu0 %v667_v22  ;;  %v4633_v22 = vld [vmem:[%s5540_s2 + $0x180] sm:$0xff]  }
 0x1b0   :  { %4162 = vmatmul.mubr.bf16.vlgmr.msra.gmra.mxu0 %v668_v19  ;;  %4170 = vmatmul.mubr.msk.bf16.vlgmr.msra.gmra.mxu1 %vm50_vm0, %v4598_v21  ;;  %v4630_v19 = vld [vmem:[%s5540_s2 + $0x1e0] sm:$0xff]   ;;  %v4632_v21 = vld [vmem:[%s5540_s2 + $0x1d8] sm:$0xff]  }
 0x1b1   :  { %4194 = vmatpush3.bf16.msra.mxu0 %v4795_v3  ;;  %4197 = vmatprep.mubr.msk.bf16.mxu0 %vm50_vm0, %v4599_v23  ;;  %v4634_v23 = vld [vmem:[%s5540_s2 + $0x1d0] sm:$0xff]  }
 0x1b2   :  { %4195 = vmatprep.subr.bf16.mxu0 %v4800_v5  ;;  %4174 = vmatpush3.bf16.msra.mxu1 %v4601_v18  ;;  %v4629_v18 = vld [vmem:[%s5540_s2 + $0x190] sm:$0xff]  }
 0x1b3   :  { %4175 = vmatprep.subr.bf16.mxu1 %v4602_v24 }
 0x1b5   :  { %4196 = vmatpush3.bf16.msra.mxu0 %v4800_v5 }
 0x1b6   :  { %4176 = vmatpush3.bf16.msra.mxu1 %v4602_v24  ;;  %4201 = vmatprep.subr.bf16.mxu0 %v4604_v25  ;;  %v4635_v24 = vld [vmem:[%s5540_s2 + $0x1c8] sm:$0xff]  }
 0x1b7   :  { %4177 = vmatprep.subr.bf16.mxu1 %v4603_v26 }
 0x1b8   :  { %4198 = vmatmul.mubr.msk.bf16.vlgmr.msra.gmra.mxu0 %vm50_vm0, %v4600_v27 }
 0x1b9   :  { %4202 = vmatpush3.bf16.msra.mxu0 %v4604_v25  ;;  %v4636_v25 = vld [vmem:[%s5540_s2 + $0x1c0] sm:$0xff]  }
 0x1ba   :  { %4178 = vmatpush3.bf16.msra.mxu1 %v4603_v26  ;;  %4203 = vmatprep.subr.bf16.mxu0 %v4606_v28 }
 0x1bb   :  { %4179 = vmatprep.subr.bf16.mxu1 %v4605_v29 }
 0x1bd   :  { %4204 = vmatpush3.bf16.msra.mxu0 %v4606_v28 }
 0x1be   :  { %4180 = vmatpush3.bf16.msra.mxu1 %v4605_v29  ;;  %4205 = vmatprep.subr.bf16.mxu0 %v4608_v31 }
 0x1bf   :  { %4181 = vmatprep.subr.bf16.mxu1 %v4607_v30 }
 0x1c1   :  { %4206 = vmatpush3.bf16.msra.mxu0 %v4608_v31 }
 0x1c2   :  { %4182 = vmatpush3.bf16.msra.mxu1 %v4607_v30  ;;  %4207 = vmatprep.subr.bf16.mxu0 %v4610_v33 }
 0x1c3   :  { %4183 = vmatprep.subr.bf16.mxu1 %v4609_v32 }
 0x1c5   :  { %4208 = vmatpush3.bf16.msra.mxu0 %v4610_v33 }
 0x1c6   :  { %4184 = vmatpush3.bf16.msra.mxu1 %v4609_v32  ;;  %4209 = vmatprep.subr.bf16.mxu0 %v4612_v35 }
 0x1c7   :  { %4185 = vmatprep.subr.bf16.mxu1 %v4611_v34 }
 0x1c9   :  { %4210 = vmatpush3.bf16.msra.mxu0 %v4612_v35 }
 0x1ca   :  { %4186 = vmatpush3.bf16.msra.mxu1 %v4611_v34  ;;  %4211 = vmatprep.subr.bf16.mxu0 %v4614_v37 }
 0x1cb   :  { %4187 = vmatprep.subr.bf16.mxu1 %v4613_v36 }
 0x1cd   :  { %4212 = vmatpush3.bf16.msra.mxu0 %v4614_v37 }
 0x1ce   :  { %4188 = vmatpush3.bf16.msra.mxu1 %v4613_v36  ;;  %4213 = vmatprep.subr.bf16.mxu0 %v4615_v38 }
 0x1cf   :  { %4221 = vmatprep.subr.bf16.mxu1 %v4795_v3 }
 0x1d1   :  { %4214 = vmatpush3.bf16.msra.mxu0 %v4615_v38 }
 0x1d2   :  { %4215 = vmatprep.subr.bf16.mxu0 %v4616_v39 }
 0x1d5   :  { %4216 = vmatpush3.bf16.msra.mxu0 %v4616_v39 }
 0x1d6   :  { %4249 = vmatprep.subr.bf16.mxu0 %v4795_v3 }
 0x268   :  { %v4135_v40 = vpop.f32.mrf.mxu1 }
 0x269   :  { %v595_v41 = vadd.f32 %v4135_v40, %v4948_v0 }
 0x26a   :  { %v578_v42 = vpop.f32.mrf.mxu1 }
 0x26b   :  { %v593_v43 = vadd.f32 %v578_v42, %v4950_v4 }
 0x26c   :  { %v4136_v44 = vpop.f32.mrf.mxu1 }
 0x26d   :  { %v596_v45 = vadd.f32 %v4136_v44, %v4952_v8 }
 0x26e   :  { %v581_v46 = vpop.f32.mrf.mxu1 }
 0x26f   :  { %v594_v47 = vadd.f32 %v581_v46, %v4954_v11  ;;  %v4624_v11 = vld [vmem:[%s5540_s2 + $0x1f8] sm:$0xff]  }
 0x270   :  { %v4163_v48 = vpop.f32.mrf.mxu0  ;;  %v4171_v49 = vpop.f32.mrf.mxu1 }
 0x271   :  { %v5032_v50 = vadd.f32 %v4163_v48, %v595_v41 }
 0x272   :  { %v768_v51 = vpop.f32.mrf.mxu0  ;;  %v842_v52 = vpop.f32.mrf.mxu1 }
 0x273   :  { %v5034_v53 = vadd.f32 %v768_v51, %v593_v43 }
 0x274   :  { %v4164_v54 = vpop.f32.mrf.mxu0  ;;  %v4172_v55 = vpop.f32.mrf.mxu1 }
 0x275   :  { %v5036_v56 = vadd.f32 %v4164_v54, %v596_v45  ;;  %v858_v62 = vpack.c.bf16 %v4172_v55, %v4171_v49  ;;  %v4638_v55 = vld [vmem:[%s5539_s1 + $0x88] sm:$0xff]  }
 0x276   :  { %v771_v57 = vpop.f32.mrf.mxu0  ;;  %v845_v58 = vpop.f32.mrf.mxu1 }
 0x277   :  { %v5038_v59 = vadd.f32 %v771_v57, %v594_v47  ;;  %v857_v60 = vpack.c.bf16 %v845_v58, %v842_v52  ;;  %v4637_v47 = vld [vmem:[%s5539_s1 + $0x80] sm:$0xff]   ;;  %v4639_v52 = vld [vmem:[%s5540_s2 + $0x238] sm:$0xff]  }
 0x278   :  { %v4199_v63 = vpop.f32.mrf.mxu0  ;;  %v4719_v57 = vld [vmem:[%s5539_s1] sm:$0xff]  }
 0x279   :  { %4189 = vmatprep.mubr.bf16.mxu1 %v857_v60  ;;  %v4642_v58 = vld [vmem:[%s5540_s2 + $0x220] sm:$0xff]   ;;  %v4644_v60 = vld [vmem:[%s5540_s2 + $0x210] sm:$0xff]  }
 0x27a   :  { %4190 = vmatmul.mubr.bf16.vlgmr.msra.gmra.mxu1 %v858_v62  ;;  %v1032_v0 = vpop.f32.mrf.mxu0  ;;  %v4646_v62 = vld [vmem:[%s5540_s2 + $0x200] sm:$0xff]  }
 0x27b   :  { %4222 = vmatpush3.bf16.msra.mxu1 %v4795_v3  ;;  %4225 = vmatprep.mubr.msk.bf16.mxu1 %vm50_vm0, %v4617_v61  ;;  %v4645_v61 = vld [vmem:[%s5540_s2 + $0x208] sm:$0xff]  }
 0x27c   :  { %v4200_v1 = vpop.f32.mrf.mxu0  ;;  %4223 = vmatprep.subr.bf16.mxu1 %v4800_v5 }
 0x27d   :  { %v1048_v4 = vpack.c.bf16 %v4200_v1, %v4199_v63  ;;  %v4647_v63 = vld [vmem:[%s5541_s5 + $0x38] sm:$0xff]  }
 0x27e   :  { %v1035_v6 = vpop.f32.mrf.mxu0 }
 0x27f   :  { %v1047_v8 = vpack.c.bf16 %v1035_v6, %v1032_v0  ;;  %4224 = vmatpush3.bf16.msra.mxu1 %v4800_v5 }
 0x280   :  { %4229 = vmatprep.subr.bf16.mxu1 %v4621_v2 }
 0x281   :  { %4217 = vmatprep.mubr.bf16.mxu0 %v1047_v8 }
 0x282   :  { %4218 = vmatmul.mubr.bf16.vlgmr.msra.gmra.mxu0 %v1048_v4  ;;  %4226 = vmatmul.mubr.msk.bf16.vlgmr.msra.gmra.mxu1 %vm50_vm0, %v4618_v7 }
 0x283   :  { %4250 = vmatpush3.bf16.msra.mxu0 %v4795_v3  ;;  %4253 = vmatprep.mubr.msk.bf16.mxu0 %vm50_vm0, %v4619_v9 }
 0x284   :  { %4251 = vmatprep.subr.bf16.mxu0 %v4800_v5  ;;  %4230 = vmatpush3.bf16.msra.mxu1 %v4621_v2 }
 0x285   :  { %4231 = vmatprep.subr.bf16.mxu1 %v4622_v10 }
 0x287   :  { %4252 = vmatpush3.bf16.msra.mxu0 %v4800_v5 }
 0x288   :  { %4232 = vmatpush3.bf16.msra.mxu1 %v4622_v10  ;;  %4257 = vmatprep.subr.bf16.mxu0 %v4624_v11 }
 0x289   :  { %4233 = vmatprep.subr.bf16.mxu1 %v4623_v12 }
 0x28a   :  { %4254 = vmatmul.mubr.msk.bf16.vlgmr.msra.gmra.mxu0 %vm50_vm0, %v4620_v13 }
 0x28b   :  { %4258 = vmatpush3.bf16.msra.mxu0 %v4624_v11 }
 0x28c   :  { %4234 = vmatpush3.bf16.msra.mxu1 %v4623_v12  ;;  %4259 = vmatprep.subr.bf16.mxu0 %v4626_v14 }
 0x28d   :  { %4235 = vmatprep.subr.bf16.mxu1 %v4625_v15 }
 0x28f   :  { %4260 = vmatpush3.bf16.msra.mxu0 %v4626_v14 }
 0x290   :  { %4236 = vmatpush3.bf16.msra.mxu1 %v4625_v15  ;;  %4261 = vmatprep.subr.bf16.mxu0 %v4628_v17 }
 0x291   :  { %4237 = vmatprep.subr.bf16.mxu1 %v4627_v16 }
 0x293   :  { %4262 = vmatpush3.bf16.msra.mxu0 %v4628_v17  ;;  %v4649_v17 = vld [vmem:[%s5541_s5 + $0x28] sm:$0xff]  }
 0x294   :  { %4238 = vmatpush3.bf16.msra.mxu1 %v4627_v16  ;;  %4263 = vmatprep.subr.bf16.mxu0 %v4630_v19  ;;  %v4648_v16 = vld [vmem:[%s5541_s5 + $0x30] sm:$0xff]  }
 0x295   :  { %4239 = vmatprep.subr.bf16.mxu1 %v4629_v18 }
 0x297   :  { %4264 = vmatpush3.bf16.msra.mxu0 %v4630_v19  ;;  %v4651_v19 = vld [vmem:[%s5541_s5 + $0x18] sm:$0xff]  }
 0x298   :  { %4240 = vmatpush3.bf16.msra.mxu1 %v4629_v18  ;;  %4265 = vmatprep.subr.bf16.mxu0 %v4632_v21  ;;  %v4650_v18 = vld [vmem:[%s5541_s5 + $0x20] sm:$0xff]  }
 0x299   :  { %4241 = vmatprep.subr.bf16.mxu1 %v4631_v20 }
 0x29b   :  { %4266 = vmatpush3.bf16.msra.mxu0 %v4632_v21  ;;  %v4653_v21 = vld [vmem:[%s5541_s5 + $0x8] sm:$0xff]  }
 0x29c   :  { %4242 = vmatpush3.bf16.msra.mxu1 %v4631_v20  ;;  %4267 = vmatprep.subr.bf16.mxu0 %v4634_v23  ;;  %v4652_v20 = vld [vmem:[%s5541_s5 + $0x10] sm:$0xff]  }
 0x29d   :  { %4243 = vmatprep.subr.bf16.mxu1 %v4633_v22 }
 0x29f   :  { %4268 = vmatpush3.bf16.msra.mxu0 %v4634_v23 }
 0x2a0   :  { %4244 = vmatpush3.bf16.msra.mxu1 %v4633_v22  ;;  %4269 = vmatprep.subr.bf16.mxu0 %v4635_v24  ;;  %v4654_v22 = vld [vmem:[%s5541_s5] sm:$0xff]  }
 0x2a1   :  { %4277 = vmatprep.subr.bf16.mxu1 %v4795_v3 }
 0x2a3   :  { %4270 = vmatpush3.bf16.msra.mxu0 %v4635_v24 }
 0x2a4   :  { %4271 = vmatprep.subr.bf16.mxu0 %v4636_v25 }
 0x2a7   :  { %4272 = vmatpush3.bf16.msra.mxu0 %v4636_v25 }
 0x33a   :  { %v4191_v26 = vpop.f32.mrf.mxu1 }
 0x33b   :  { %v975_v27 = vadd.f32 %v4191_v26, %v5032_v50 }
 0x33c   :  { %v958_v28 = vpop.f32.mrf.mxu1 }
 0x33d   :  { %v973_v29 = vadd.f32 %v958_v28, %v5034_v53  ;;  %v3579_v28 = vld [vmem:[%s5542_s3] ss:$0 sm:$0xff] }
 0x33e   :  { %v4192_v30 = vpop.f32.mrf.mxu1 }
 0x33f   :  { %v976_v31 = vadd.f32 %v4192_v30, %v5036_v56 }
 0x340   :  { %v961_v32 = vpop.f32.mrf.mxu1 }
 0x341   :  { %v974_v33 = vadd.f32 %v961_v32, %v5038_v59  ;;  %v4643_v59 = vld [vmem:[%s5540_s2 + $0x218] sm:$0xff]  }
 0x342   :  { %v4219_v34 = vpop.f32.mrf.mxu0  ;;  %v4227_v35 = vpop.f32.mrf.mxu1 }
 0x343   :  { %v1165_v36 = vadd.f32 %v4219_v34, %v975_v27 }
 0x344   :  { %v1148_v37 = vpop.f32.mrf.mxu0  ;;  %v1222_v38 = vpop.f32.mrf.mxu1 }
 0x345   :  { %v1163_v39 = vadd.f32 %v1148_v37, %v973_v29 }
 0x346   :  { %v4220_v40 = vpop.f32.mrf.mxu0  ;;  %v4228_v41 = vpop.f32.mrf.mxu1 }
 0x347   :  { %v1166_v42 = vadd.f32 %v4220_v40, %v976_v31  ;;  %v1238_v48 = vpack.c.bf16 %v4228_v41, %v4227_v35 }
 0x348   :  { %v1151_v43 = vpop.f32.mrf.mxu0  ;;  %v1225_v44 = vpop.f32.mrf.mxu1 }
 0x349   :  { %v1164_v45 = vadd.f32 %v1151_v43, %v974_v33  ;;  %v1237_v46 = vpack.c.bf16 %v1225_v44, %v1222_v38 }
 0x34a   :  { %v4255_v49 = vpop.f32.mrf.mxu0 }
 0x34b   :  { %4245 = vmatprep.mubr.bf16.mxu1 %v1237_v46 }
 0x34c   :  { %4246 = vmatmul.mubr.bf16.vlgmr.msra.gmra.mxu1 %v1238_v48  ;;  %v1412_v50 = vpop.f32.mrf.mxu0 }
 0x34d   :  { %4278 = vmatpush3.bf16.msra.mxu1 %v4795_v3  ;;  %4281 = vmatprep.mubr.msk.bf16.mxu1 %vm50_vm0, %v4637_v47  ;;  %v4640_v3 = vld [vmem:[%s5540_s2 + $0x230] sm:$0xff]  }
 0x34e   :  { %v4256_v51 = vpop.f32.mrf.mxu0  ;;  %4279 = vmatprep.subr.bf16.mxu1 %v4800_v5 }
 0x34f   :  { %v1428_v53 = vpack.c.bf16 %v4256_v51, %v4255_v49 }
 0x350   :  { %v1415_v54 = vpop.f32.mrf.mxu0 }
 0x351   :  { %v1427_v56 = vpack.c.bf16 %v1415_v54, %v1412_v50  ;;  %4280 = vmatpush3.bf16.msra.mxu1 %v4800_v5  ;;  %v4641_v5 = vld [vmem:[%s5540_s2 + $0x228] sm:$0xff]  }
 0x352   :  { %4285 = vmatprep.subr.bf16.mxu1 %v4639_v52 }
 0x353   :  { %4273 = vmatprep.mubr.bf16.mxu0 %v1427_v56  ;;  %v4721_v56 = vld [vmem:[%s5539_s1 + $0x10] sm:$0xff]  }
 0x354   :  { %4274 = vmatmul.mubr.bf16.vlgmr.msra.gmra.mxu0 %v1428_v53  ;;  %4282 = vmatmul.mubr.msk.bf16.vlgmr.msra.gmra.mxu1 %vm50_vm0, %v4638_v55  ;;  %v4720_v55 = vld [vmem:[%s5539_s1 + $0x8] sm:$0xff]  }
 0x355   :  { %4286 = vmatpush3.bf16.msra.mxu1 %v4639_v52  ;;  %4309 = vmatprep.mubr.msk.bf16.mxu0 %vm50_vm0, %v4719_v57  ;;  %v4656_v57 = vld [vmem:[%s5541_s5 + $0x70] sm:$0xff]  }
 0x356   :  { %4287 = vmatprep.subr.bf16.mxu1 %v4640_v3 }
 0x359   :  { %4288 = vmatpush3.bf16.msra.mxu1 %v4640_v3  ;;  %v4655_v3 = vld [vmem:[%s5541_s5 + $0x78] sm:$0xff]  }
 0x35a   :  { %4289 = vmatprep.subr.bf16.mxu1 %v4641_v5 }
 0x35d   :  { %4290 = vmatpush3.bf16.msra.mxu1 %v4641_v5  ;;  %v4722_v5 = vld [vmem:[%s5539_s1 + $0x18] sm:$0xff]  }
 0x35e   :  { %4291 = vmatprep.subr.bf16.mxu1 %v4642_v58 }
 0x361   :  { %4292 = vmatpush3.bf16.msra.mxu1 %v4642_v58  ;;  %v4657_v58 = vld [vmem:[%s5541_s5 + $0x68] sm:$0xff]  }
 0x362   :  { %4293 = vmatprep.subr.bf16.mxu1 %v4643_v59 }
 0x365   :  { %4294 = vmatpush3.bf16.msra.mxu1 %v4643_v59  ;;  %v4658_v59 = vld [vmem:[%s5541_s5 + $0x60] sm:$0xff]  }
 0x366   :  { %4295 = vmatprep.subr.bf16.mxu1 %v4644_v60 }
 0x369   :  { %4296 = vmatpush3.bf16.msra.mxu1 %v4644_v60  ;;  %v4659_v60 = vld [vmem:[%s5541_s5 + $0x58] sm:$0xff]  }
 0x36a   :  { %4297 = vmatprep.subr.bf16.mxu1 %v4645_v61 }
 0x36d   :  { %4298 = vmatpush3.bf16.msra.mxu1 %v4645_v61  ;;  %v4660_v61 = vld [vmem:[%s5541_s5 + $0x50] sm:$0xff]  }
 0x36e   :  { %4299 = vmatprep.subr.bf16.mxu1 %v4646_v62 }
 0x371   :  { %4300 = vmatpush3.bf16.msra.mxu1 %v4646_v62  ;;  %v4661_v62 = vld [vmem:[%s5541_s5 + $0x48] sm:$0xff]  }
 0x372   :  { %4341 = vmatprep.subr.bf16.mxu1 %v4647_v63 }
 0x40c   :  { %v4247_v0 = vpop.f32.mrf.mxu1 }
 0x40d   :  { %v1355_v1 = vadd.f32 %v4247_v0, %v1165_v36  ;;  %v3580_v36 = vld [vmem:[%s5543_s4] ss:$0 sm:$0xff] }
 0x40e   :  { %v1338_v2 = vpop.f32.mrf.mxu1 }
 0x40f   :  { %v1353_v4 = vadd.f32 %v1338_v2, %v1163_v39 }
 0x410   :  { %v4248_v6 = vpop.f32.mrf.mxu1 }
 0x411   :  { %v1356_v7 = vadd.f32 %v4248_v6, %v1166_v42 }
 0x412   :  { %v1341_v8 = vpop.f32.mrf.mxu1 }
 0x413   :  { %v1354_v9 = vadd.f32 %v1341_v8, %v1164_v45 }
 0x414   :  { %v4283_v10 = vpop.f32.mrf.mxu1  ;;  %v4275_v23 = vpop.f32.mrf.mxu0 }
 0x415   :  { %v1545_v26 = vadd.f32 %v4275_v23, %v1355_v1  ;;  %v4726_v23 = vld [vmem:[%s5539_s1 + $0x28] sm:$0xff]  }
 0x416   :  { %v1602_v11 = vpop.f32.mrf.mxu1  ;;  %v1528_v24 = vpop.f32.mrf.mxu0 }
 0x417   :  { %v1543_v29 = vadd.f32 %v1528_v24, %v1353_v4  ;;  %v4669_v24 = vld [vmem:[%s5541_s5 + $0xa8] sm:$0xff]  }
 0x418   :  { %v4284_v12 = vpop.f32.mrf.mxu1  ;;  %v4276_v25 = vpop.f32.mrf.mxu0 }
 0x419   :  { %v1618_v15 = vpack.c.bf16 %v4284_v12, %v4283_v10  ;;  %v1546_v33 = vadd.f32 %v4276_v25, %v1356_v7  ;;  %v4723_v10 = vld [vmem:[%s5539_s1 + $0x30] sm:$0xff]   ;;  %v4663_v12 = vld [vmem:[%s5541_s5 + $0xf8] sm:$0xff]  }
 0x41a   :  { %v1605_v13 = vpop.f32.mrf.mxu1  ;;  %v1531_v31 = vpop.f32.mrf.mxu0  ;;  %v4670_v25 = vld [vmem:[%s5541_s5 + $0xd8] sm:$0xff]  }
 0x41b   :  { %v1617_v14 = vpack.c.bf16 %v1605_v13, %v1602_v11  ;;  %v1544_v38 = vadd.f32 %v1531_v31, %v1354_v9  ;;  %v4676_v31 = vld [vmem:[%s5541_s5 + $0xc0] sm:$0xff]  }
 0x41d   :  { %4301 = vmatprep.mubr.bf16.mxu1 %v1617_v14 }
 0x41e   :  { %4302 = vmatmul.mubr.bf16.vlgmr.msra.gmra.mxu1 %v1618_v15 }
 0x41f   :  { %4342 = vmatpush3.bf16.msra.mxu1 %v4647_v63  ;;  %v4662_v63 = vld [vmem:[%s5541_s5 + $0x40] sm:$0xff]  }
 0x420   :  { %4343 = vmatprep.subr.bf16.mxu1 %v4648_v16 }
 0x423   :  { %4344 = vmatpush3.bf16.msra.mxu1 %v4648_v16  ;;  %v4664_v16 = vld [vmem:[%s5541_s5 + $0xf0] sm:$0xff]  }
 0x424   :  { %4345 = vmatprep.subr.bf16.mxu1 %v4649_v17 }
 0x427   :  { %4346 = vmatpush3.bf16.msra.mxu1 %v4649_v17  ;;  %v4724_v17 = vld [vmem:[%s5539_s1 + $0x38] sm:$0xff]  }
 0x428   :  { %4347 = vmatprep.subr.bf16.mxu1 %v4650_v18 }
 0x42b   :  { %4348 = vmatpush3.bf16.msra.mxu1 %v4650_v18  ;;  %v4665_v18 = vld [vmem:[%s5541_s5 + $0xb8] sm:$0xff]  }
 0x42c   :  { %4349 = vmatprep.subr.bf16.mxu1 %v4651_v19 }
 0x42f   :  { %4350 = vmatpush3.bf16.msra.mxu1 %v4651_v19  ;;  %v4666_v19 = vld [vmem:[%s5541_s5 + $0xe8] sm:$0xff]  }
 0x430   :  { %4351 = vmatprep.subr.bf16.mxu1 %v4652_v20 }
 0x433   :  { %4352 = vmatpush3.bf16.msra.mxu1 %v4652_v20  ;;  %v4725_v20 = vld [vmem:[%s5539_s1 + $0x20] sm:$0xff]  }
 0x434   :  { %4353 = vmatprep.subr.bf16.mxu1 %v4653_v21 }
 0x437   :  { %4354 = vmatpush3.bf16.msra.mxu1 %v4653_v21  ;;  %v4667_v21 = vld [vmem:[%s5541_s5 + $0xb0] sm:$0xff]  }
 0x438   :  { %4355 = vmatprep.subr.bf16.mxu1 %v4654_v22 }
 0x43b   :  { %4356 = vmatpush3.bf16.msra.mxu1 %v4654_v22  ;;  %v4668_v22 = vld [vmem:[%s5541_s5 + $0xe0] sm:$0xff]  }
 0x4de   :  { %v4303_v27 = vpop.f32.mrf.mxu1 }
 0x4df   :  { %v1735_v30 = vadd.f32 %v4303_v27, %v1545_v26  ;;  %v4671_v26 = vld [vmem:[%s5541_s5 + $0xa0] sm:$0xff]   ;;  %v4672_v27 = vld [vmem:[%s5541_s5 + $0xd0] sm:$0xff]  }
 0x4e0   :  { %v1718_v32 = vpop.f32.mrf.mxu1 }
 0x4e1   :  { %v1746_v34 = vmul.f32 %v3579_v28, %v1735_v30  ;;  %v1733_v35 = vadd.f32 %v1718_v32, %v1543_v29  ;;  %v4674_v29 = vld [vmem:[%s5541_s5 + $0xc8] sm:$0xff]   ;;  %v4675_v30 = vld [vmem:[%s5541_s5 + $0x90] sm:$0xff]  }
 0x4e2   :  { %v4304_v37 = vpop.f32.mrf.mxu1  ;;  %v4677_v32 = vld [vmem:[%s5541_s5 + $0x88] sm:$0xff]  }
 0x4e3   :  { %v1744_v39 = vmul.f32 %v3579_v28, %v1733_v35  ;;  %v1736_v40 = vadd.f32 %v4304_v37, %v1546_v33  ;;  %v1757_v42 = vadd.f32 %v3580_v36, %v1746_v34  ;;  %v4678_v33 = vld [vmem:[%s5541_s5 + $0x80] sm:$0xff]  }
 0x4e4   :  { %v1721_v41 = vpop.f32.mrf.mxu1 }
 0x4e5   :  { %v1747_v43 = vmul.f32 %v3579_v28, %v1736_v40  ;;  %v1734_v44 = vadd.f32 %v1721_v41, %v1544_v38  ;;  %v1755_v45 = vadd.f32 %v3580_v36, %v1744_v39  ;;  %v1761_v48 = vmax.f32 %v1757_v42, 0.0 }
 0x4e7   :  { %v1758_v46 = vadd.f32 %v3580_v36, %v1747_v43  ;;  %v1745_v47 = vmul.f32 %v3579_v28, %v1734_v44  ;;  %v1759_v51 = vmax.f32 %v1755_v45, 0.0  ;;  %v4673_v28 = vld [vmem:[%s5541_s5 + $0x98] sm:$0xff]  }
 0x4e9   :  { %v1762_v49 = vmax.f32 %v1758_v46, 0.0  ;;  %v1756_v50 = vadd.f32 %v3580_v36, %v1745_v47 }
 0x4eb   :  { %v5184_v52 = vpack.c.bf16 %v1762_v49, %v1761_v48  ;;  %v1760_v53 = vmax.f32 %v1756_v50, 0.0 }
 0x4ed   :  { %v5186_v54 = vpack.c.bf16 %v1760_v53, %v1759_v51  ;;  %4305 = vmatprep.subr.bf16.mxu0 %v5184_v52  ;;  %4389 = vmatprep.subr.bf16.mxu1 %v5184_v52 }
 0x4ee   :  { %4306 = vmatpush3.bf16.msra.mxu0 %v5184_v52 }
 0x4ef   :  { %4307 = vmatprep.subr.bf16.mxu0 %v5186_v54 }
 0x4f2   :  { %4308 = vmatpush3.bf16.msra.mxu0 %v5186_v54 }
 0x4f3   :  { %4313 = vmatprep.subr.bf16.mxu0 %v5184_v52 }
 0x4f5   :  { %4310 = vmatmul.mubr.msk.bf16.vlgmr.msra.gmra.mxu0 %vm50_vm0, %v4720_v55 }
 0x4f6   :  { %4314 = vmatpush3.bf16.msra.mxu0 %v5184_v52  ;;  %4317 = vmatprep.mubr.msk.bf16.mxu0 %vm50_vm0, %v4721_v56  ;;  %v4727_v56 = vld [vmem:[%s5539_s1 + $0x50] sm:$0xff]  }
 0x4f7   :  { %4315 = vmatprep.subr.bf16.mxu0 %v5186_v54 }
 0x4fa   :  { %4316 = vmatpush3.bf16.msra.mxu0 %v5186_v54 }
 0x4fb   :  { %4321 = vmatprep.subr.bf16.mxu0 %v4655_v3 }
 0x4fd   :  { %4318 = vmatmul.mubr.msk.bf16.vlgmr.msra.gmra.mxu0 %vm50_vm0, %v4722_v5 }
 0x4fe   :  { %4322 = vmatpush3.bf16.msra.mxu0 %v4655_v3 }
 0x4ff   :  { %4323 = vmatprep.subr.bf16.mxu0 %v4656_v57 }
 0x502   :  { %4324 = vmatpush3.bf16.msra.mxu0 %v4656_v57  ;;  %v4679_v57 = vld [vmem:[%s5541_s5 + $0x178] sm:$0xff]  }
 0x503   :  { %4325 = vmatprep.subr.bf16.mxu0 %v4657_v58 }
 0x506   :  { %4326 = vmatpush3.bf16.msra.mxu0 %v4657_v58 }
 0x507   :  { %4327 = vmatprep.subr.bf16.mxu0 %v4658_v59 }
 0x50a   :  { %4328 = vmatpush3.bf16.msra.mxu0 %v4658_v59 }
 0x50b   :  { %4329 = vmatprep.subr.bf16.mxu0 %v4659_v60 }
 0x50e   :  { %4330 = vmatpush3.bf16.msra.mxu0 %v4659_v60  ;;  %v4680_v60 = vld [vmem:[%s5541_s5 + $0x170] sm:$0xff]  }
 0x50f   :  { %4331 = vmatprep.subr.bf16.mxu0 %v4660_v61 }
 0x512   :  { %4332 = vmatpush3.bf16.msra.mxu0 %v4660_v61  ;;  %v4728_v61 = vld [vmem:[%s5539_s1 + $0x58] sm:$0xff]  }
 0x513   :  { %4333 = vmatprep.subr.bf16.mxu0 %v4661_v62 }
 0x516   :  { %4334 = vmatpush3.bf16.msra.mxu0 %v4661_v62  ;;  %v4681_v62 = vld [vmem:[%s5541_s5 + $0x138] sm:$0xff]  }
 0x517   :  { %4335 = vmatprep.subr.bf16.mxu0 %v4662_v63 }
 0x51a   :  { %4336 = vmatpush3.bf16.msra.mxu0 %v4662_v63  ;;  %v4682_v63 = vld [vmem:[%s5541_s5 + $0x168] sm:$0xff]  }
 0x51b   :  { %4361 = vmatprep.subr.bf16.mxu0 %v5184_v52 }
 0x5b5   :  { %v4311_v0 = vpop.f32.mrf.mxu0 }
 0x5b7   :  { %v1799_v1 = vpop.f32.mrf.mxu0 }
 0x5b9   :  { %v4312_v2 = vpop.f32.mrf.mxu0 }
 0x5ba   :  { %v1815_v7 = vpack.c.bf16 %v4312_v2, %v4311_v0  ;;  %v4729_v0 = vld [vmem:[%s5539_s1 + $0x40] sm:$0xff]  }
 0x5bb   :  { %v1802_v4 = vpop.f32.mrf.mxu0  ;;  %v4684_v2 = vld [vmem:[%s5541_s5 + $0x160] sm:$0xff]  }
 0x5bc   :  { %v1814_v6 = vpack.c.bf16 %v1802_v4, %v1799_v1  ;;  %v4683_v1 = vld [vmem:[%s5541_s5 + $0x130] sm:$0xff]   ;;  %v4730_v4 = vld [vmem:[%s5539_s1 + $0x48] sm:$0xff]  }
 0x5bd   :  { %v4319_v8 = vpop.f32.mrf.mxu0 }
 0x5be   :  { %4357 = vmatprep.mubr.bf16.mxu1 %v1814_v6  ;;  %v4685_v6 = vld [vmem:[%s5541_s5 + $0x128] sm:$0xff]  }
 0x5bf   :  { %v1866_v9 = vpop.f32.mrf.mxu0  ;;  %4358 = vmatmul.mubr.bf16.vlgmr.msra.gmra.mxu1 %v1815_v7  ;;  %v4686_v7 = vld [vmem:[%s5541_s5 + $0x158] sm:$0xff]  }
 0x5c0   :  { %4390 = vmatpush3.bf16.msra.mxu1 %v5184_v52  ;;  %4393 = vmatprep.mubr.msk.bf16.mxu1 %vm50_vm0, %v4723_v10  ;;  %v4689_v10 = vld [vmem:[%s5541_s5 + $0x118] sm:$0xff]  }
 0x5c1   :  { %4391 = vmatprep.subr.bf16.mxu1 %v5186_v54  ;;  %v4320_v11 = vpop.f32.mrf.mxu0 }
 0x5c2   :  { %v1882_v15 = vpack.c.bf16 %v4320_v11, %v4319_v8  ;;  %v4687_v8 = vld [vmem:[%s5541_s5 + $0x120] sm:$0xff]   ;;  %v4690_v11 = vld [vmem:[%s5541_s5 + $0x148] sm:$0xff]  }
 0x5c3   :  { %v1869_v13 = vpop.f32.mrf.mxu0 }
 0x5c4   :  { %v1881_v14 = vpack.c.bf16 %v1869_v13, %v1866_v9  ;;  %4392 = vmatpush3.bf16.msra.mxu1 %v5186_v54  ;;  %v4688_v9 = vld [vmem:[%s5541_s5 + $0x150] sm:$0xff]   ;;  %v4692_v13 = vld [vmem:[%s5541_s5 + $0x140] sm:$0xff]  }
 0x5c5   :  { %4397 = vmatprep.subr.bf16.mxu1 %v4663_v12 }
 0x5c6   :  { %4337 = vmatprep.mubr.bf16.mxu0 %v1881_v14  ;;  %v4693_v14 = vld [vmem:[%s5541_s5 + $0x108] sm:$0xff]  }
 0x5c7   :  { %4338 = vmatmul.mubr.bf16.vlgmr.msra.gmra.mxu0 %v1882_v15  ;;  %4394 = vmatmul.mubr.msk.bf16.vlgmr.msra.gmra.mxu1 %vm50_vm0, %v4724_v17  ;;  %v4694_v15 = vld [vmem:[%s5541_s5 + $0x100] sm:$0xff]  }
 0x5c8   :  { %4362 = vmatpush3.bf16.msra.mxu0 %v5184_v52  ;;  %4398 = vmatpush3.bf16.msra.mxu1 %v4663_v12  ;;  %v4691_v12 = vld [vmem:[%s5541_s5 + $0x110] sm:$0xff]  }
 0x5c9   :  { %4363 = vmatprep.subr.bf16.mxu0 %v5186_v54  ;;  %4399 = vmatprep.subr.bf16.mxu1 %v4664_v16 }
 0x5ca   :  { %4365 = vmatprep.mubr.msk.bf16.mxu0 %vm50_vm0, %v4725_v20 }
 0x5cc   :  { %4364 = vmatpush3.bf16.msra.mxu0 %v5186_v54  ;;  %4400 = vmatpush3.bf16.msra.mxu1 %v4664_v16 }
 0x5cd   :  { %4369 = vmatprep.subr.bf16.mxu0 %v4665_v18  ;;  %4401 = vmatprep.subr.bf16.mxu1 %v4666_v19 }
 0x5cf   :  { %4366 = vmatmul.mubr.msk.bf16.vlgmr.msra.gmra.mxu0 %vm50_vm0, %v4726_v23 }
 0x5d0   :  { %4370 = vmatpush3.bf16.msra.mxu0 %v4665_v18  ;;  %4402 = vmatpush3.bf16.msra.mxu1 %v4666_v19 }
 0x5d1   :  { %4371 = vmatprep.subr.bf16.mxu0 %v4667_v21  ;;  %4403 = vmatprep.subr.bf16.mxu1 %v4668_v22 }
 0x5d4   :  { %4372 = vmatpush3.bf16.msra.mxu0 %v4667_v21  ;;  %4404 = vmatpush3.bf16.msra.mxu1 %v4668_v22 }
 0x5d5   :  { %4373 = vmatprep.subr.bf16.mxu0 %v4669_v24  ;;  %4405 = vmatprep.subr.bf16.mxu1 %v4670_v25 }
 0x5d8   :  { %4374 = vmatpush3.bf16.msra.mxu0 %v4669_v24  ;;  %4406 = vmatpush3.bf16.msra.mxu1 %v4670_v25 }
 0x5d9   :  { %4375 = vmatprep.subr.bf16.mxu0 %v4671_v26  ;;  %4407 = vmatprep.subr.bf16.mxu1 %v4672_v27 }
 0x5dc   :  { %4376 = vmatpush3.bf16.msra.mxu0 %v4671_v26  ;;  %4408 = vmatpush3.bf16.msra.mxu1 %v4672_v27 }
 0x5dd   :  { %4377 = vmatprep.subr.bf16.mxu0 %v4673_v28  ;;  %4409 = vmatprep.subr.bf16.mxu1 %v4674_v29 }
 0x5e0   :  { %4378 = vmatpush3.bf16.msra.mxu0 %v4673_v28  ;;  %4410 = vmatpush3.bf16.msra.mxu1 %v4674_v29 }
 0x5e1   :  { %4379 = vmatprep.subr.bf16.mxu0 %v4675_v30  ;;  %4411 = vmatprep.subr.bf16.mxu1 %v4676_v31 }
 0x5e4   :  { %4380 = vmatpush3.bf16.msra.mxu0 %v4675_v30  ;;  %4412 = vmatpush3.bf16.msra.mxu1 %v4676_v31 }
 0x5e5   :  { %4445 = vmatprep.subr.bf16.mxu1 %v5184_v52  ;;  %4381 = vmatprep.subr.bf16.mxu0 %v4677_v32 }
 0x5e8   :  { %4382 = vmatpush3.bf16.msra.mxu0 %v4677_v32 }
 0x5e9   :  { %4383 = vmatprep.subr.bf16.mxu0 %v4678_v33 }
 0x5ec   :  { %4384 = vmatpush3.bf16.msra.mxu0 %v4678_v33 }
 0x5ed   :  { %4417 = vmatprep.subr.bf16.mxu0 %v5184_v52 }
 0x67f   :  { %v4359_v34 = vpop.f32.mrf.mxu1 }
 0x681   :  { %v2079_v35 = vpop.f32.mrf.mxu1 }
 0x683   :  { %v4360_v36 = vpop.f32.mrf.mxu1 }
 0x685   :  { %v2082_v37 = vpop.f32.mrf.mxu1 }
 0x687   :  { %v4339_v38 = vpop.f32.mrf.mxu0  ;;  %v4395_v39 = vpop.f32.mrf.mxu1 }
 0x688   :  { %v5306_v40 = vadd.f32 %v4359_v34, %v4339_v38 }
 0x689   :  { %v1982_v41 = vpop.f32.mrf.mxu0  ;;  %v2297_v42 = vpop.f32.mrf.mxu1 }
 0x68a   :  { %v5308_v43 = vadd.f32 %v2079_v35, %v1982_v41 }
 0x68b   :  { %v4340_v44 = vpop.f32.mrf.mxu0  ;;  %v4396_v45 = vpop.f32.mrf.mxu1 }
 0x68c   :  { %v5310_v46 = vadd.f32 %v4360_v36, %v4340_v44  ;;  %v2313_v47 = vpack.c.bf16 %v4396_v45, %v4395_v39 }
 0x68d   :  { %v1985_v48 = vpop.f32.mrf.mxu0  ;;  %v2300_v49 = vpop.f32.mrf.mxu1 }
 0x68e   :  { %v5312_v50 = vadd.f32 %v2082_v37, %v1985_v48  ;;  %v2312_v51 = vpack.c.bf16 %v2300_v49, %v2297_v42  ;;  %v4703_v42 = vld [vmem:[%s5541_s5 + $0x1f8] sm:$0xff]   ;;  %v4733_v48 = vld [vmem:[%s5539_s1 + $0x60] sm:$0xff]  }
 0x68f   :  { %v4367_v53 = vpop.f32.mrf.mxu0  ;;  %v4695_v49 = vld [vmem:[%s5541_s5 + $0x1b8] sm:$0xff]  }
 0x690   :  { %4413 = vmatprep.mubr.bf16.mxu1 %v2312_v51  ;;  %v4696_v51 = vld [vmem:[%s5541_s5 + $0x1b0] sm:$0xff]  }
 0x691   :  { %v2128_v55 = vpop.f32.mrf.mxu0  ;;  %4414 = vmatmul.mubr.bf16.vlgmr.msra.gmra.mxu1 %v2313_v47  ;;  %v4732_v47 = vld [vmem:[%s5539_s1 + $0x78] sm:$0xff]  }
 0x692   :  { %4446 = vmatpush3.bf16.msra.mxu1 %v5184_v52  ;;  %4449 = vmatprep.mubr.msk.bf16.mxu1 %vm50_vm0, %v4727_v56  ;;  %v4698_v56 = vld [vmem:[%s5541_s5 + $0x1a0] sm:$0xff]  }
 0x693   :  { %4447 = vmatprep.subr.bf16.mxu1 %v5186_v54  ;;  %v4368_v3 = vpop.f32.mrf.mxu0 }
 0x694   :  { %v2144_v59 = vpack.c.bf16 %v4368_v3, %v4367_v53  ;;  %v4734_v53 = vld [vmem:[%s5539_s1 + $0x68] sm:$0xff]   ;;  %v4699_v3 = vld [vmem:[%s5541_s5 + $0x198] sm:$0xff]  }
 0x695   :  { %v2131_v5 = vpop.f32.mrf.mxu0 }
 0x696   :  { %v2143_v58 = vpack.c.bf16 %v2131_v5, %v2128_v55  ;;  %4448 = vmatpush3.bf16.msra.mxu1 %v5186_v54  ;;  %v4697_v55 = vld [vmem:[%s5541_s5 + $0x1a8] sm:$0xff]  }
 0x697   :  { %4453 = vmatprep.subr.bf16.mxu1 %v4679_v57  ;;  %v4701_v5 = vld [vmem:[%s5541_s5 + $0x188] sm:$0xff]  }
 0x698   :  { %4385 = vmatprep.mubr.bf16.mxu0 %v2143_v58  ;;  %v4702_v58 = vld [vmem:[%s5541_s5 + $0x180] sm:$0xff]  }
 0x699   :  { %4386 = vmatmul.mubr.bf16.vlgmr.msra.gmra.mxu0 %v2144_v59  ;;  %4450 = vmatmul.mubr.msk.bf16.vlgmr.msra.gmra.mxu1 %vm50_vm0, %v4728_v61  ;;  %v4706_v59 = vld [vmem:[%s5541_s5 + $0x1e0] sm:$0xff]   ;;  %v4708_v61 = vld [vmem:[%s5541_s5 + $0x1d0] sm:$0xff]  }
 0x69a   :  { %4418 = vmatpush3.bf16.msra.mxu0 %v5184_v52  ;;  %4454 = vmatpush3.bf16.msra.mxu1 %v4679_v57  ;;  %v4700_v57 = vld [vmem:[%s5541_s5 + $0x190] sm:$0xff]  }
 0x69b   :  { %4419 = vmatprep.subr.bf16.mxu0 %v5186_v54  ;;  %4455 = vmatprep.subr.bf16.mxu1 %v4680_v60 }
 0x69c   :  { %4421 = vmatprep.mubr.msk.bf16.mxu0 %vm50_vm0, %v4729_v0 }
 0x69e   :  { %4420 = vmatpush3.bf16.msra.mxu0 %v5186_v54  ;;  %4456 = vmatpush3.bf16.msra.mxu1 %v4680_v60  ;;  %v4707_v60 = vld [vmem:[%s5541_s5 + $0x1d8] sm:$0xff]  }
 0x69f   :  { %4425 = vmatprep.subr.bf16.mxu0 %v4681_v62  ;;  %4457 = vmatprep.subr.bf16.mxu1 %v4682_v63 }
 0x6a1   :  { %4422 = vmatmul.mubr.msk.bf16.vlgmr.msra.gmra.mxu0 %vm50_vm0, %v4730_v4 }
 0x6a2   :  { %4426 = vmatpush3.bf16.msra.mxu0 %v4681_v62  ;;  %4458 = vmatpush3.bf16.msra.mxu1 %v4682_v63  ;;  %v4709_v62 = vld [vmem:[%s5541_s5 + $0x1c8] sm:$0xff]   ;;  %v4710_v63 = vld [vmem:[%s5541_s5 + $0x1c0] sm:$0xff]  }
 0x6a3   :  { %4427 = vmatprep.subr.bf16.mxu0 %v4683_v1  ;;  %4459 = vmatprep.subr.bf16.mxu1 %v4684_v2 }
 0x6a6   :  { %4428 = vmatpush3.bf16.msra.mxu0 %v4683_v1  ;;  %4460 = vmatpush3.bf16.msra.mxu1 %v4684_v2 }
 0x6a7   :  { %4429 = vmatprep.subr.bf16.mxu0 %v4685_v6  ;;  %4461 = vmatprep.subr.bf16.mxu1 %v4686_v7 }
 0x6aa   :  { %4430 = vmatpush3.bf16.msra.mxu0 %v4685_v6  ;;  %4462 = vmatpush3.bf16.msra.mxu1 %v4686_v7 }
 0x6ab   :  { %4431 = vmatprep.subr.bf16.mxu0 %v4687_v8  ;;  %4463 = vmatprep.subr.bf16.mxu1 %v4688_v9 }
 0x6ae   :  { %4432 = vmatpush3.bf16.msra.mxu0 %v4687_v8  ;;  %4464 = vmatpush3.bf16.msra.mxu1 %v4688_v9 }
 0x6af   :  { %4433 = vmatprep.subr.bf16.mxu0 %v4689_v10  ;;  %4465 = vmatprep.subr.bf16.mxu1 %v4690_v11 }
 0x6b2   :  { %4434 = vmatpush3.bf16.msra.mxu0 %v4689_v10  ;;  %4466 = vmatpush3.bf16.msra.mxu1 %v4690_v11 }
 0x6b3   :  { %4435 = vmatprep.subr.bf16.mxu0 %v4691_v12  ;;  %4467 = vmatprep.subr.bf16.mxu1 %v4692_v13 }
 0x6b6   :  { %4436 = vmatpush3.bf16.msra.mxu0 %v4691_v12  ;;  %4468 = vmatpush3.bf16.msra.mxu1 %v4692_v13 }
 0x6b7   :  { %4501 = vmatprep.subr.bf16.mxu1 %v5184_v52  ;;  %4437 = vmatprep.subr.bf16.mxu0 %v4693_v14 }
 0x6ba   :  { %4438 = vmatpush3.bf16.msra.mxu0 %v4693_v14 }
 0x6bb   :  { %4439 = vmatprep.subr.bf16.mxu0 %v4694_v15 }
 0x6be   :  { %4440 = vmatpush3.bf16.msra.mxu0 %v4694_v15 }
 0x6bf   :  { %4473 = vmatprep.subr.bf16.mxu0 %v5184_v52 }
 0x751   :  { %v4415_v16 = vpop.f32.mrf.mxu1 }
 0x753   :  { %v2413_v17 = vpop.f32.mrf.mxu1 }
 0x755   :  { %v4416_v18 = vpop.f32.mrf.mxu1 }
 0x757   :  { %v2416_v19 = vpop.f32.mrf.mxu1 }
 0x759   :  { %v4387_v20 = vpop.f32.mrf.mxu0  ;;  %v4451_v21 = vpop.f32.mrf.mxu1 }
 0x75a   :  { %v2261_v22 = vadd.f32 %v4387_v20, %v5306_v40  ;;  %v4731_v40 = vld [vmem:[%s5539_s1 + $0x70] sm:$0xff]  }
 0x75b   :  { %v2244_v23 = vpop.f32.mrf.mxu0  ;;  %v2635_v24 = vpop.f32.mrf.mxu1 }
 0x75c   :  { %v2259_v25 = vadd.f32 %v2244_v23, %v5308_v43  ;;  %v5388_v26 = vadd.f32 %v4415_v16, %v2261_v22 }
 0x75d   :  { %v4388_v27 = vpop.f32.mrf.mxu0  ;;  %v4452_v28 = vpop.f32.mrf.mxu1 }
 0x75e   :  { %v2262_v29 = vadd.f32 %v4388_v27, %v5310_v46  ;;  %v5391_v30 = vadd.f32 %v2413_v17, %v2259_v25  ;;  %v2651_v31 = vpack.c.bf16 %v4452_v28, %v4451_v21  ;;  %v4704_v46 = vld [vmem:[%s5541_s5 + $0x1f0] sm:$0xff]  }
 0x75f   :  { %v2247_v32 = vpop.f32.mrf.mxu0  ;;  %v2638_v33 = vpop.f32.mrf.mxu1 }
 0x760   :  { %v2260_v34 = vadd.f32 %v2247_v32, %v5312_v50  ;;  %v2650_v35 = vpack.c.bf16 %v2638_v33, %v2635_v24  ;;  %v5394_v36 = vadd.f32 %v4416_v18, %v2262_v29  ;;  %v4705_v50 = vld [vmem:[%s5541_s5 + $0x1e8] sm:$0xff]   ;;  %v4712_v32 = vld [vmem:[%s5541_s5 + $0x230] sm:$0xff]  }
 0x761   :  { %v4423_v37 = vpop.f32.mrf.mxu0  ;;  %v4713_v33 = vld [vmem:[%s5541_s5 + $0x228] sm:$0xff]  }
 0x762   :  { %4469 = vmatprep.mubr.bf16.mxu1 %v2650_v35  ;;  %v5396_v38 = vadd.f32 %v2416_v19, %v2260_v34  ;;  %v4715_v34 = vld [vmem:[%s5541_s5 + $0x218] sm:$0xff]   ;;  %v4716_v35 = vld [vmem:[%s5541_s5 + $0x210] sm:$0xff]  }
 0x763   :  { %v2466_v39 = vpop.f32.mrf.mxu0  ;;  %4470 = vmatmul.mubr.bf16.vlgmr.msra.gmra.mxu1 %v2651_v31  ;;  %v4711_v31 = vld [vmem:[%s5541_s5 + $0x238] sm:$0xff]  }
 0x764   :  { %4502 = vmatpush3.bf16.msra.mxu1 %v5184_v52  ;;  %4505 = vmatprep.mubr.msk.bf16.mxu1 %vm50_vm0, %v4731_v40 }
 0x765   :  { %4503 = vmatprep.subr.bf16.mxu1 %v5186_v54  ;;  %v4424_v41 = vpop.f32.mrf.mxu0 }
 0x766   :  { %v2482_v45 = vpack.c.bf16 %v4424_v41, %v4423_v37  ;;  %v4718_v37 = vld [vmem:[%s5541_s5 + $0x200] sm:$0xff]  }
 0x767   :  { %v2469_v43 = vpop.f32.mrf.mxu0 }
 0x768   :  { %v2481_v44 = vpack.c.bf16 %v2469_v43, %v2466_v39  ;;  %4504 = vmatpush3.bf16.msra.mxu1 %v5186_v54 }
 0x769   :  { %4509 = vmatprep.subr.bf16.mxu1 %v4703_v42 }
 0x76a   :  { %4441 = vmatprep.mubr.bf16.mxu0 %v2481_v44 }
 0x76b   :  { %4442 = vmatmul.mubr.bf16.vlgmr.msra.gmra.mxu0 %v2482_v45  ;;  %4506 = vmatmul.mubr.msk.bf16.vlgmr.msra.gmra.mxu1 %vm50_vm0, %v4732_v47 }
 0x76c   :  { %4474 = vmatpush3.bf16.msra.mxu0 %v5184_v52  ;;  %4477 = vmatprep.mubr.msk.bf16.mxu0 %vm50_vm0, %v4733_v48 }
 0x76d   :  { %4475 = vmatprep.subr.bf16.mxu0 %v5186_v54  ;;  %4510 = vmatpush3.bf16.msra.mxu1 %v4703_v42 }
 0x76e   :  { %4511 = vmatprep.subr.bf16.mxu1 %v4704_v46 }
 0x770   :  { %4476 = vmatpush3.bf16.msra.mxu0 %v5186_v54 }
 0x771   :  { %4481 = vmatprep.subr.bf16.mxu0 %v4695_v49  ;;  %4512 = vmatpush3.bf16.msra.mxu1 %v4704_v46 }
 0x772   :  { %4513 = vmatprep.subr.bf16.mxu1 %v4705_v50 }
 0x773   :  { %4478 = vmatmul.mubr.msk.bf16.vlgmr.msra.gmra.mxu0 %vm50_vm0, %v4734_v53 }
 0x774   :  { %4482 = vmatpush3.bf16.msra.mxu0 %v4695_v49 }
 0x775   :  { %4483 = vmatprep.subr.bf16.mxu0 %v4696_v51  ;;  %4514 = vmatpush3.bf16.msra.mxu1 %v4705_v50 }
 0x776   :  { %4515 = vmatprep.subr.bf16.mxu1 %v4706_v59 }
 0x778   :  { %4484 = vmatpush3.bf16.msra.mxu0 %v4696_v51 }
 0x779   :  { %4485 = vmatprep.subr.bf16.mxu0 %v4697_v55  ;;  %4516 = vmatpush3.bf16.msra.mxu1 %v4706_v59 }
 0x77a   :  { %4517 = vmatprep.subr.bf16.mxu1 %v4707_v60 }
 0x77c   :  { %4486 = vmatpush3.bf16.msra.mxu0 %v4697_v55 }
 0x77d   :  { %4487 = vmatprep.subr.bf16.mxu0 %v4698_v56  ;;  %4518 = vmatpush3.bf16.msra.mxu1 %v4707_v60 }
 0x77e   :  { %4519 = vmatprep.subr.bf16.mxu1 %v4708_v61 }
 0x780   :  { %4488 = vmatpush3.bf16.msra.mxu0 %v4698_v56 }
 0x781   :  { %4489 = vmatprep.subr.bf16.mxu0 %v4699_v3  ;;  %4520 = vmatpush3.bf16.msra.mxu1 %v4708_v61  ;;  %v3800_v61 = vld [vmem:[%s5545_s7] ss:$0 sm:$0xff] }
 0x782   :  { %4521 = vmatprep.subr.bf16.mxu1 %v4709_v62 }
 0x784   :  { %4490 = vmatpush3.bf16.msra.mxu0 %v4699_v3 }
 0x785   :  { %4491 = vmatprep.subr.bf16.mxu0 %v4700_v57  ;;  %4522 = vmatpush3.bf16.msra.mxu1 %v4709_v62 }
 0x786   :  { %4523 = vmatprep.subr.bf16.mxu1 %v4710_v63 }
 0x788   :  { %4492 = vmatpush3.bf16.msra.mxu0 %v4700_v57 }
 0x789   :  { %4493 = vmatprep.subr.bf16.mxu0 %v4701_v5  ;;  %4524 = vmatpush3.bf16.msra.mxu1 %v4710_v63 }
 0x78c   :  { %4494 = vmatpush3.bf16.msra.mxu0 %v4701_v5  ;;  %v3799_v5 = vld [vmem:[%s5544_s6] ss:$0 sm:$0xff] }
 0x78d   :  { %4495 = vmatprep.subr.bf16.mxu0 %v4702_v58 }
 0x790   :  { %4496 = vmatpush3.bf16.msra.mxu0 %v4702_v58 }
 0x791   :  { %4529 = vmatprep.subr.bf16.mxu0 %v5184_v52 }
 0x823   :  { %v4471_v0 = vpop.f32.mrf.mxu1 }
 0x825   :  { %v2751_v1 = vpop.f32.mrf.mxu1 }
 0x827   :  { %v4472_v2 = vpop.f32.mrf.mxu1 }
 0x829   :  { %v2754_v4 = vpop.f32.mrf.mxu1 }
 0x82b   :  { %v4443_v6 = vpop.f32.mrf.mxu0  ;;  %v4507_v7 = vpop.f32.mrf.mxu1 }
 0x82c   :  { %v2599_v8 = vadd.f32 %v4443_v6, %v5388_v26 }
 0x82d   :  { %v2582_v9 = vpop.f32.mrf.mxu0  ;;  %v2973_v10 = vpop.f32.mrf.mxu1 }
 0x82e   :  { %v2597_v11 = vadd.f32 %v2582_v9, %v5391_v30  ;;  %v2768_v12 = vadd.f32 %v4471_v0, %v2599_v8  ;;  %v4735_v30 = vld [vmem:[%s5539_s1 + $0x80] sm:$0xff]  }
 0x82f   :  { %v4444_v13 = vpop.f32.mrf.mxu0  ;;  %v4508_v14 = vpop.f32.mrf.mxu1 }
 0x830   :  { %v2600_v15 = vadd.f32 %v4444_v13, %v5394_v36  ;;  %v2766_v16 = vadd.f32 %v2751_v1, %v2597_v11  ;;  %v2989_v18 = vpack.c.bf16 %v4508_v14, %v4507_v7  ;;  %v4717_v36 = vld [vmem:[%s5541_s5 + $0x208] sm:$0xff]  }
 0x831   :  { %v2585_v17 = vpop.f32.mrf.mxu0  ;;  %v2976_v19 = vpop.f32.mrf.mxu1 }
 0x832   :  { %v2598_v20 = vadd.f32 %v2585_v17, %v5396_v38  ;;  %v2769_v21 = vadd.f32 %v4472_v2, %v2600_v15  ;;  %v2988_v22 = vpack.c.bf16 %v2976_v19, %v2973_v10  ;;  %v4737_v10 = vld [vmem:[%s5538_s0 + $0x10] sm:$0xff]  ;;  %v4738_v15 = vld [vmem:[%s5538_s0] sm:$0xff]  ;;  %v4739_v19 = vld [vmem:[%s5538_s0 + $0x18] sm:$0xff] }
 0x833   :  { %v4479_v23 = vpop.f32.mrf.mxu0 }
 0x834   :  { %v2767_v24 = vadd.f32 %v2754_v4, %v2598_v20  ;;  %4525 = vmatprep.mubr.bf16.mxu1 %v2988_v22  ;;  %v4740_v22 = vld [vmem:[%s5538_s0 + $0x8] sm:$0xff] }
 0x835   :  { %v2804_v25 = vpop.f32.mrf.mxu0  ;;  %4526 = vmatmul.mubr.bf16.vlgmr.msra.gmra.mxu1 %v2989_v18 }
 0x837   :  { %v4480_v26 = vpop.f32.mrf.mxu0 }
 0x838   :  { %v2820_v29 = vpack.c.bf16 %v4480_v26, %v4479_v23 }
 0x839   :  { %v2807_v27 = vpop.f32.mrf.mxu0 }
 0x83a   :  { %v2819_v28 = vpack.c.bf16 %v2807_v27, %v2804_v25 }
 0x83c   :  { %4497 = vmatprep.mubr.bf16.mxu0 %v2819_v28 }
 0x83d   :  { %4498 = vmatmul.mubr.bf16.vlgmr.msra.gmra.mxu0 %v2820_v29 }
 0x83e   :  { %4530 = vmatpush3.bf16.msra.mxu0 %v5184_v52  ;;  %4533 = vmatprep.mubr.msk.bf16.mxu0 %vm50_vm0, %v4735_v30  ;;  %v4736_v52 = vld [vmem:[%s5539_s1 + $0x88] sm:$0xff]  }
 0x83f   :  { %4531 = vmatprep.subr.bf16.mxu0 %v5186_v54 }
 0x842   :  { %4532 = vmatpush3.bf16.msra.mxu0 %v5186_v54  ;;  %v4714_v54 = vld [vmem:[%s5541_s5 + $0x220] sm:$0xff]  }
 0x843   :  { %4537 = vmatprep.subr.bf16.mxu0 %v4711_v31 }
 0x845   :  { %4534 = vmatmul.mubr.msk.bf16.vlgmr.msra.gmra.mxu0 %vm50_vm0, %v4736_v52 }
 0x846   :  { %4538 = vmatpush3.bf16.msra.mxu0 %v4711_v31 }
 0x847   :  { %4539 = vmatprep.subr.bf16.mxu0 %v4712_v32 }
 0x84a   :  { %4540 = vmatpush3.bf16.msra.mxu0 %v4712_v32 }
 0x84b   :  { %4541 = vmatprep.subr.bf16.mxu0 %v4713_v33 }
 0x84e   :  { %4542 = vmatpush3.bf16.msra.mxu0 %v4713_v33 }
 0x84f   :  { %4543 = vmatprep.subr.bf16.mxu0 %v4714_v54 }
 0x852   :  { %4544 = vmatpush3.bf16.msra.mxu0 %v4714_v54 }
 0x853   :  { %4545 = vmatprep.subr.bf16.mxu0 %v4715_v34 }
 0x856   :  { %4546 = vmatpush3.bf16.msra.mxu0 %v4715_v34 }
 0x857   :  { %4547 = vmatprep.subr.bf16.mxu0 %v4716_v35 }
 0x85a   :  { %4548 = vmatpush3.bf16.msra.mxu0 %v4716_v35 }
 0x85b   :  { %4549 = vmatprep.subr.bf16.mxu0 %v4717_v36 }
 0x85e   :  { %4550 = vmatpush3.bf16.msra.mxu0 %v4717_v36 }
 0x85f   :  { %4551 = vmatprep.subr.bf16.mxu0 %v4718_v37 }
 0x862   :  { %4552 = vmatpush3.bf16.msra.mxu0 %v4718_v37 }
 0x8f5   :  { %v4527_v53 = vpop.f32.mrf.mxu1 }
 0x8f7   :  { %v3089_v55 = vpop.f32.mrf.mxu1 }
 0x8f9   :  { %v4528_v56 = vpop.f32.mrf.mxu1 }
 0x8fb   :  { %v3092_v60 = vpop.f32.mrf.mxu1 }
 0x8fd   :  { %v4499_v38 = vpop.f32.mrf.mxu0 }
 0x8fe   :  { %v2937_v39 = vadd.f32 %v4499_v38, %v2768_v12 }
 0x8ff   :  { %v2920_v40 = vpop.f32.mrf.mxu0 }
 0x900   :  { %v2935_v41 = vadd.f32 %v2920_v40, %v2766_v16  ;;  %v3106_v3 = vadd.f32 %v4527_v53, %v2937_v39 }
 0x901   :  { %v4500_v42 = vpop.f32.mrf.mxu0 }
 0x902   :  { %v2938_v43 = vadd.f32 %v4500_v42, %v2769_v21  ;;  %v3104_v58 = vadd.f32 %v3089_v55, %v2935_v41 }
 0x903   :  { %v2923_v44 = vpop.f32.mrf.mxu0 }
 0x904   :  { %v2936_v45 = vadd.f32 %v2923_v44, %v2767_v24  ;;  %v3107_v63 = vadd.f32 %v4528_v56, %v2938_v43 }
 0x905   :  { %v4535_v46 = vpop.f32.mrf.mxu0 }
 0x906   :  { %v3105_v4 = vadd.f32 %v3092_v60, %v2936_v45 }
 0x907   :  { %v3142_v47 = vpop.f32.mrf.mxu0 }
 0x909   :  { %v4536_v48 = vpop.f32.mrf.mxu0 }
 0x90a   :  { %v3158_v51 = vpack.c.bf16 %v4536_v48, %v4535_v46 }
 0x90b   :  { %v3145_v49 = vpop.f32.mrf.mxu0 }
 0x90c   :  { %v3157_v50 = vpack.c.bf16 %v3145_v49, %v3142_v47 }
 0x90e   :  { %4553 = vmatprep.mubr.bf16.mxu0 %v3157_v50 }
 0x90f   :  { %4554 = vmatmul.mubr.bf16.vlgmr.msra.gmra.mxu0 %v3158_v51 }
 0x9cf   :  { %v4555_v57 = vpop.f32.mrf.mxu0 }
 0x9d0   :  { %v3275_v59 = vadd.f32 %v4555_v57, %v3106_v3 }
 0x9d1   :  { %v3258_v62 = vpop.f32.mrf.mxu0 }
 0x9d2   :  { %v3286_v0 = vmul.f32 %v3799_v5, %v3275_v59  ;;  %v3273_v1 = vadd.f32 %v3258_v62, %v3104_v58 }
 0x9d3   :  { %v4556_v2 = vpop.f32.mrf.mxu0 }
 0x9d4   :  { %v3297_v6 = vadd.f32 %v3800_v61, %v3286_v0  ;;  %v3284_v7 = vmul.f32 %v3799_v5, %v3273_v1  ;;  %v3276_v8 = vadd.f32 %v4556_v2, %v3107_v63 }
 0x9d5   :  { %v3261_v9 = vpop.f32.mrf.mxu0 }
 0x9d6   :  { %v3301_v11 = vadd.f32 %v4737_v10, %v3297_v6  ;;  %v3295_v12 = vadd.f32 %v3800_v61, %v3284_v7  ;;  %v3287_v13 = vmul.f32 %v3799_v5, %v3276_v8  ;;  %v3274_v14 = vadd.f32 %v3261_v9, %v3105_v4 }
 0x9d8   :  { %3305 = vst [vmem:[%s5546_s8 + $0x10] sm:$0xff] %v3301_v11  ;;  %v3299_v16 = vadd.f32 %v4738_v15, %v3295_v12  ;;  %v3298_v17 = vadd.f32 %v3800_v61, %v3287_v13  ;;  %v3285_v18 = vmul.f32 %v3799_v5, %v3274_v14 }
 0x9da   :  { %3303 = vst [vmem:[%s5546_s8] sm:$0xff] %v3299_v16  ;;  %v3302_v20 = vadd.f32 %v4739_v19, %v3298_v17  ;;  %v3296_v21 = vadd.f32 %v3800_v61, %v3285_v18 }
 0x9dc   :  { %3306 = vst [vmem:[%s5546_s8 + $0x18] sm:$0xff] %v3302_v20  ;;  %v3300_v23 = vadd.f32 %v4740_v22, %v3296_v21 }
 0x9de   :  { %3304 = vst [vmem:[%s5546_s8 + $0x8] sm:$0xff] %v3300_v23 }

// kernel: catted_generator_forward.13
= control target key start
LH: loop header
LB: loop body
LE: loop exit
PB: predicated region body
PF: predicated region fallthrough
CT: control target
= control target key end

     0   :  { %s1644_s15 = smov 0   ;;  %s1646_s16 = smov 0   ;;  %s2093_s0 = inlined_call_operand.vmem [shape: bf16[128,2048], index: 0, kind: input, shape index: {}]   ;;  %s2094_s1 = inlined_call_operand.vmem [shape: bf16[2048,128], index: 1, kind: input, shape index: {}]   ;;  %s2095_s2 = inlined_call_operand.vmem [shape: f32[1,128], index: 2, kind: input, shape index: {}]   ;;  %s2096_s3 = inlined_call_operand.vmem [shape: f32[1,128], index: 3, kind: input, shape index: {}]   ;;  %s2097_s4 = inlined_call_operand.vmem [shape: f32[128,128], index: 4, kind: output, shape index: {}]  }
   0x1   :  { %s1648_s17 = smov 0   ;;  %s1650_s18 = smov 0  }
   0x2   :  { %s1652_s19 = smov 0  }
   0x3 LB: > { %s23_s20 = sadd.s32 1, %s1612_s18  ;;  %p42_p1 = scmp.ne.s32.totalorder %s1604_s16, %s1600_s15  ;;  %s1616_s19 = sphi %s1652_s19, %s14_s19   ;;  %s1612_s18 = sphi %s1650_s18, %s2101_s18   ;;  %s1608_s17 = sphi %s1648_s17, %s2100_s17   ;;  %s1604_s16 = sphi %s1646_s16, %s2099_s16   ;;  %s1600_s15 = sphi %s1644_s15, %s2098_s15  }
   0x4   : > { %p24_p0 = scmp.ge.s32.totalorder %s23_s20, 4  ;;  %p43_p2 = scmp.eq.s32.totalorder %s1616_s19, 0 }
   0x5   : > { %s35_s22 = sadd.s32 1, %s1604_s16  ;;  %p1216_p5 = scmp.ge.s32.totalorder %s1616_s19, 4 }
   0x6   : > { %s2103_s20 = smov (%p24_p0, %s23_s20), 0  ;;  %p44_p3 = por %p43_p2, %p42_p1 }
   0x7   : > { %s31_s21 = ssub.s32 %s1612_s18, %s2103_s20  ;;  %168 = sbr.rel (%p1216_p5) target bundleno = 32 (0x20), region = 24 }
   0x8   : > { %p33_p4 = scmp.eq.s32.totalorder %s31_s21, 0 }
   0xa   : > { %s1679_s23 = scalar_select %p33_p4, %s1604_s16, %s35_s22  }
   0xc   : > { %171 = sbr.rel (!%p44_p3) target bundleno = 32 (0x20), region = 28  ;;  %s173_s24 = sand.u32 (%p44_p3), 1, %s1604_s16  }
   0xd   : > { %s1296_s25 = sshll.u32 (%p44_p3), %s1612_s18, 4  ;;  %s1217_s26 = sshll.u32 (%p44_p3), %s173_s24, 8 }
   0xe   : > { %s1687_s29 = scalar_lea.vmem (%p44_p3), %s2093_s0, %s1296_s25  ;;  %s1692_s30 = scalar_lea.vmem (%p44_p3), [#allocation2], %s1217_s26 }
   0xf   : > { %v194_v0 = vld [vmem:[%s1687_s29] sm:$0xff] (%p44_p3)  ;;  %v196_v1 = vld [vmem:[%s1687_s29 + $0x8] sm:$0xff] (%p44_p3) }
  0x10   : > { %v198_v2 = vld [vmem:[%s1687_s29 + $0x40] sm:$0xff] (%p44_p3)  ;;  %195 = vst [vmem:[%s1692_s30] sm:$0xff] (%p44_p3), %v194_v0  ;;  %197 = vst [vmem:[%s1692_s30 + $0x8] sm:$0xff] (%p44_p3), %v196_v1  ;;  %v200_v3 = vld [vmem:[%s1687_s29 + $0x48] sm:$0xff] (%p44_p3) }
  0x11   : > { %199 = vst [vmem:[%s1692_s30 + $0x10] sm:$0xff] %v198_v2  ;;  %v202_v4 = vld [vmem:[%s1687_s29 + $0x80] sm:$0xff]  ;;  %v204_v5 = vld [vmem:[%s1687_s29 + $0x88] sm:$0xff]  ;;  %201 = vst [vmem:[%s1692_s30 + $0x18] sm:$0xff] %v200_v3 }
  0x12   : > { %203 = vst [vmem:[%s1692_s30 + $0x20] sm:$0xff] %v202_v4  ;;  %205 = vst [vmem:[%s1692_s30 + $0x28] sm:$0xff] %v204_v5  ;;  %v206_v6 = vld [vmem:[%s1687_s29 + $0xc0] sm:$0xff]  ;;  %v208_v7 = vld [vmem:[%s1687_s29 + $0xc8] sm:$0xff] }
  0x13   : > { %v210_v8 = vld [vmem:[%s1687_s29 + $0x100] sm:$0xff]  ;;  %207 = vst [vmem:[%s1692_s30 + $0x30] sm:$0xff] %v206_v6  ;;  %209 = vst [vmem:[%s1692_s30 + $0x38] sm:$0xff] %v208_v7  ;;  %v212_v9 = vld [vmem:[%s1687_s29 + $0x108] sm:$0xff] }
  0x14   : > { %211 = vst [vmem:[%s1692_s30 + $0x40] sm:$0xff] %v210_v8  ;;  %v214_v10 = vld [vmem:[%s1687_s29 + $0x140] sm:$0xff]  ;;  %v216_v11 = vld [vmem:[%s1687_s29 + $0x148] sm:$0xff]  ;;  %213 = vst [vmem:[%s1692_s30 + $0x48] sm:$0xff] %v212_v9 }
  0x15   : > { %215 = vst [vmem:[%s1692_s30 + $0x50] sm:$0xff] %v214_v10  ;;  %217 = vst [vmem:[%s1692_s30 + $0x58] sm:$0xff] %v216_v11  ;;  %v218_v12 = vld [vmem:[%s1687_s29 + $0x180] sm:$0xff]  ;;  %v220_v13 = vld [vmem:[%s1687_s29 + $0x188] sm:$0xff] }
  0x16   : > { %v222_v14 = vld [vmem:[%s1687_s29 + $0x1c0] sm:$0xff]  ;;  %219 = vst [vmem:[%s1692_s30 + $0x60] sm:$0xff] %v218_v12  ;;  %221 = vst [vmem:[%s1692_s30 + $0x68] sm:$0xff] %v220_v13  ;;  %v224_v15 = vld [vmem:[%s1687_s29 + $0x1c8] sm:$0xff] }
  0x17   : > { %223 = vst [vmem:[%s1692_s30 + $0x70] sm:$0xff] %v222_v14  ;;  %v226_v16 = vld [vmem:[%s1687_s29 + $0x200] sm:$0xff]  ;;  %v228_v17 = vld [vmem:[%s1687_s29 + $0x208] sm:$0xff]  ;;  %225 = vst [vmem:[%s1692_s30 + $0x78] sm:$0xff] %v224_v15 }
  0x18   : > { %227 = vst [vmem:[%s1692_s30 + $0x80] sm:$0xff] %v226_v16  ;;  %229 = vst [vmem:[%s1692_s30 + $0x88] sm:$0xff] %v228_v17  ;;  %v230_v18 = vld [vmem:[%s1687_s29 + $0x240] sm:$0xff]  ;;  %v232_v19 = vld [vmem:[%s1687_s29 + $0x248] sm:$0xff] }
  0x19   : > { %v234_v20 = vld [vmem:[%s1687_s29 + $0x280] sm:$0xff]  ;;  %231 = vst [vmem:[%s1692_s30 + $0x90] sm:$0xff] %v230_v18  ;;  %233 = vst [vmem:[%s1692_s30 + $0x98] sm:$0xff] %v232_v19  ;;  %v236_v21 = vld [vmem:[%s1687_s29 + $0x288] sm:$0xff] }
  0x1a   : > { %235 = vst [vmem:[%s1692_s30 + $0xa0] sm:$0xff] %v234_v20  ;;  %v238_v22 = vld [vmem:[%s1687_s29 + $0x2c0] sm:$0xff]  ;;  %v240_v23 = vld [vmem:[%s1687_s29 + $0x2c8] sm:$0xff]  ;;  %237 = vst [vmem:[%s1692_s30 + $0xa8] sm:$0xff] %v236_v21 }
  0x1b   : > { %239 = vst [vmem:[%s1692_s30 + $0xb0] sm:$0xff] %v238_v22  ;;  %241 = vst [vmem:[%s1692_s30 + $0xb8] sm:$0xff] %v240_v23  ;;  %v242_v24 = vld [vmem:[%s1687_s29 + $0x300] sm:$0xff]  ;;  %v244_v25 = vld [vmem:[%s1687_s29 + $0x308] sm:$0xff] }
  0x1c   : > { %v246_v26 = vld [vmem:[%s1687_s29 + $0x340] sm:$0xff]  ;;  %243 = vst [vmem:[%s1692_s30 + $0xc0] sm:$0xff] %v242_v24  ;;  %245 = vst [vmem:[%s1692_s30 + $0xc8] sm:$0xff] %v244_v25  ;;  %v248_v27 = vld [vmem:[%s1687_s29 + $0x348] sm:$0xff] }
  0x1d   : > { %247 = vst [vmem:[%s1692_s30 + $0xd0] sm:$0xff] %v246_v26  ;;  %v250_v28 = vld [vmem:[%s1687_s29 + $0x380] sm:$0xff]  ;;  %v252_v29 = vld [vmem:[%s1687_s29 + $0x388] sm:$0xff]  ;;  %249 = vst [vmem:[%s1692_s30 + $0xd8] sm:$0xff] %v248_v27 }
  0x1e   : > { %251 = vst [vmem:[%s1692_s30 + $0xe0] sm:$0xff] %v250_v28  ;;  %253 = vst [vmem:[%s1692_s30 + $0xe8] sm:$0xff] %v252_v29  ;;  %v254_v30 = vld [vmem:[%s1687_s29 + $0x3c0] sm:$0xff]  ;;  %v256_v31 = vld [vmem:[%s1687_s29 + $0x3c8] sm:$0xff] }
  0x1f   : > { %255 = vst [vmem:[%s1692_s30 + $0xf0] sm:$0xff] %v254_v30  ;;  %257 = vst [vmem:[%s1692_s30 + $0xf8] sm:$0xff] %v256_v31 }
  0x20 PF: > { %p1220_p6 = scmp.ge.s32.totalorder %s1616_s19, 1  ;;  %p271_p7 = scmp.lt.s32.totalorder %s1616_s19, 5 }
  0x22   : > { %p272_p8 = pnand %p1220_p6, %p271_p7 }
  0x23   : > { %s278_s5 = sand.u32 (!%p272_p8), 1, %s1600_s15   ;;  %s1222_s6 = sshll.u32 (!%p272_p8), %s1608_s17, 6 }
  0x24   : > { %275 = sbr.rel (%p272_p8) target bundleno = 388 (0x184), region = 55  ;;  %s1221_s7 = sshll.u32 (!%p272_p8), %s278_s5, 8 }
  0x25   : > { %p311_p9 = scmp.lt.s32.totalorder (!%p272_p8), %s1222_s6, 255  ;;  %s1764_s12 = scalar_lea.vmem (!%p272_p8), [#allocation2], %s1221_s7 }
  0x26   : > { %p1224_p10 = scmp.ne.s32.totalorder (!%p272_p8), %s1608_s17, 0 }
  0x29   : > { %s2105_s6 = smov (!%p311_p9, %s1222_s6), 255  ;;  %326 = sbr.rel (%p1224_p10) target bundleno = 55 (0x37), region = 63 }
  0x2a   : > { %s1223_s8 = sshll.u32 %s2105_s6, 2 }
  0x2b   : > { %s1762_s11 = scalar_lea.vmem %s2094_s1, %s1223_s8 }
  0x2e   : > { %v1618_v32 = vmov 0.0  }
  0x2f   : > { %327 = vst [vmem:[%s2097_s4] sm:$0xff] %v1618_v32  ;;  %328 = vst [vmem:[%s2097_s4 + $0x8] sm:$0xff] %v1618_v32 }
  0x30   : > { %329 = vst [vmem:[%s2097_s4 + $0x10] sm:$0xff] %v1618_v32  ;;  %330 = vst [vmem:[%s2097_s4 + $0x18] sm:$0xff] %v1618_v32 }
  0x31   : > { %331 = vst [vmem:[%s2097_s4 + $0x20] sm:$0xff] %v1618_v32  ;;  %332 = vst [vmem:[%s2097_s4 + $0x28] sm:$0xff] %v1618_v32 }
  0x32   : > { %333 = vst [vmem:[%s2097_s4 + $0x30] sm:$0xff] %v1618_v32  ;;  %334 = vst [vmem:[%s2097_s4 + $0x38] sm:$0xff] %v1618_v32 }
  0x33   : > { %335 = vst [vmem:[%s2097_s4 + $0x40] sm:$0xff] %v1618_v32  ;;  %336 = vst [vmem:[%s2097_s4 + $0x48] sm:$0xff] %v1618_v32 }
  0x34   : > { %337 = vst [vmem:[%s2097_s4 + $0x50] sm:$0xff] %v1618_v32  ;;  %338 = vst [vmem:[%s2097_s4 + $0x58] sm:$0xff] %v1618_v32 }
  0x35   : > { %339 = vst [vmem:[%s2097_s4 + $0x60] sm:$0xff] %v1618_v32  ;;  %340 = vst [vmem:[%s2097_s4 + $0x68] sm:$0xff] %v1618_v32 }
  0x36   : > { %341 = vst [vmem:[%s2097_s4 + $0x70] sm:$0xff] %v1618_v32  ;;  %342 = vst [vmem:[%s2097_s4 + $0x78] sm:$0xff] %v1618_v32 }
  0x37 PF: > { %v1466_v33 = vld [vmem:[%s1762_s11 + $0x78] sm:$0xff]   ;;  %v1470_v37 = vld [vmem:[%s1762_s11 + $0x70] sm:$0xff]   ;;  %v1474_v41 = vld [vmem:[%s1762_s11 + $0x68] sm:$0xff]   ;;  %p1289_p11 = scmp.ne.s32.totalorder %s1608_s17, 3 }
  0x38   : > { %v1467_v34 = vld [vmem:[%s1762_s11 + $0xf8] sm:$0xff]   ;;  %1297 = vmatprep.subr.bf16.mxu0 %v1466_v33  ;;  %v1471_v38 = vld [vmem:[%s1762_s11 + $0xf0] sm:$0xff]   ;;  %v1475_v42 = vld [vmem:[%s1762_s11 + $0xe8] sm:$0xff]  }
  0x39   : > { %v1468_v35 = vld [vmem:[%s1762_s11 + $0x38] sm:$0xff]   ;;  %1361 = vmatprep.subr.bf16.mxu1 %v1467_v34  ;;  %v1472_v39 = vld [vmem:[%s1762_s11 + $0x30] sm:$0xff]   ;;  %v1476_v43 = vld [vmem:[%s1762_s11 + $0x28] sm:$0xff]  }
  0x3a   : > { %v1469_v36 = vld [vmem:[%s1762_s11 + $0xb8] sm:$0xff]   ;;  %1298 = vmatpush3.bf16.msra.mxu0 %v1468_v35  ;;  %v1473_v40 = vld [vmem:[%s1762_s11 + $0xb0] sm:$0xff]   ;;  %v1477_v44 = vld [vmem:[%s1762_s11 + $0xa8] sm:$0xff]  }
  0x3b   : > { %1362 = vmatpush3.bf16.msra.mxu1 %v1469_v36  ;;  %1299 = vmatprep.subr.bf16.mxu0 %v1470_v37  ;;  %v1478_v45 = vld [vmem:[%s1762_s11 + $0x60] sm:$0xff]   ;;  %v1482_v49 = vld [vmem:[%s1762_s11 + $0x58] sm:$0xff]   ;;  %v1486_v53 = vld [vmem:[%s1762_s11 + $0x50] sm:$0xff]  }
  0x3c   : > { %1363 = vmatprep.subr.bf16.mxu1 %v1471_v38  ;;  %v1479_v46 = vld [vmem:[%s1762_s11 + $0xe0] sm:$0xff]   ;;  %v1483_v50 = vld [vmem:[%s1762_s11 + $0xd8] sm:$0xff]   ;;  %v1487_v54 = vld [vmem:[%s1762_s11 + $0xd0] sm:$0xff]  }
  0x3d   : > { %v1480_v47 = vld [vmem:[%s1762_s11 + $0x20] sm:$0xff]   ;;  %v1484_v51 = vld [vmem:[%s1762_s11 + $0x18] sm:$0xff]   ;;  %v1488_v55 = vld [vmem:[%s1762_s11 + $0x10] sm:$0xff]  }
  0x3e   : > { %1300 = vmatpush3.bf16.msra.mxu0 %v1472_v39  ;;  %v1481_v48 = vld [vmem:[%s1762_s11 + $0xa0] sm:$0xff]   ;;  %v1485_v52 = vld [vmem:[%s1762_s11 + $0x98] sm:$0xff]   ;;  %v1489_v56 = vld [vmem:[%s1762_s11 + $0x90] sm:$0xff]  }
  0x3f   : > { %1364 = vmatpush3.bf16.msra.mxu1 %v1473_v40  ;;  %1301 = vmatprep.subr.bf16.mxu0 %v1474_v41  ;;  %v1490_v57 = vld [vmem:[%s1762_s11 + $0x48] sm:$0xff]   ;;  %v1494_v61 = vld [vmem:[%s1762_s11 + $0x40] sm:$0xff]  }
  0x40   : > { %1365 = vmatprep.subr.bf16.mxu1 %v1475_v42  ;;  %v1491_v58 = vld [vmem:[%s1762_s11 + $0xc8] sm:$0xff]   ;;  %v1495_v62 = vld [vmem:[%s1762_s11 + $0xc0] sm:$0xff]  }
  0x41   : > { %v1492_v59 = vld [vmem:[%s1762_s11 + $0x8] sm:$0xff]   ;;  %v1496_v63 = vld [vmem:[%s1762_s11] sm:$0xff]  }
  0x42   : > { %1302 = vmatpush3.bf16.msra.mxu0 %v1476_v43  ;;  %v1493_v60 = vld [vmem:[%s1762_s11 + $0x88] sm:$0xff]   ;;  %v1497_v0 = vld [vmem:[%s1762_s11 + $0x80] sm:$0xff]  }
  0x43   : > { %1366 = vmatpush3.bf16.msra.mxu1 %v1477_v44  ;;  %1303 = vmatprep.subr.bf16.mxu0 %v1478_v45  ;;  %v1498_v1 = vld [vmem:[%s1764_s12] ss:$16 sps:$4 sm:$0xff]   ;;  %v1500_v2 = vld [vmem:[%s1764_s12 + $0x4] ss:$16 sps:$4 sm:$0xff]   ;;  %v1501_v3 = vld [vmem:[%s1764_s12 + $0x8] ss:$16 sps:$4 sm:$0xff]  }
  0x44   : > { %1367 = vmatprep.subr.bf16.mxu1 %v1479_v46  ;;  %v1503_v4 = vld [vmem:[%s1764_s12 + $0xc] ss:$16 sps:$4 sm:$0xff]   ;;  %839 = vmatprep.mubr.bf16.mxu0 %v1500_v2  ;;  %v1504_v5 = vld [vmem:[%s1764_s12 + $0x24] ss:$16 sps:$4 sm:$0xff]   ;;  %v1508_v7 = vld [vmem:[%s1764_s12 + $0x20] ss:$16 sps:$4 sm:$0xff]  }
  0x45   : > { %936 = vmatprep.mubr.bf16.mxu1 %v1503_v4  ;;  %v1506_v6 = vld [vmem:[%s1764_s12 + $0x2c] ss:$16 sps:$4 sm:$0xff]   ;;  %v1509_v8 = vld [vmem:[%s1764_s12 + $0x28] ss:$16 sps:$4 sm:$0xff]   ;;  %v1510_v9 = vld [vmem:[%s1764_s12 + $0x44] ss:$16 sps:$4 sm:$0xff]  }
  0x46   : > { %1304 = vmatpush3.bf16.msra.mxu0 %v1480_v47  ;;  %v1512_v10 = vld [vmem:[%s1764_s12 + $0x4c] ss:$16 sps:$4 sm:$0xff]   ;;  %v1514_v11 = vld [vmem:[%s1764_s12 + $0x40] ss:$16 sps:$4 sm:$0xff]   ;;  %v1515_v12 = vld [vmem:[%s1764_s12 + $0x48] ss:$16 sps:$4 sm:$0xff]  }
  0x47   : > { %1368 = vmatpush3.bf16.msra.mxu1 %v1481_v48  ;;  %1305 = vmatprep.subr.bf16.mxu0 %v1482_v49  ;;  %v1516_v13 = vld [vmem:[%s1764_s12 + $0x64] ss:$16 sps:$4 sm:$0xff]   ;;  %v1518_v14 = vld [vmem:[%s1764_s12 + $0x6c] ss:$16 sps:$4 sm:$0xff]   ;;  %v1520_v15 = vld [vmem:[%s1764_s12 + $0x60] ss:$16 sps:$4 sm:$0xff]  }
  0x48   : > { %1369 = vmatprep.subr.bf16.mxu1 %v1483_v50  ;;  %v1521_v16 = vld [vmem:[%s1764_s12 + $0x68] ss:$16 sps:$4 sm:$0xff]   ;;  %v1522_v17 = vld [vmem:[%s1764_s12 + $0x84] ss:$16 sps:$4 sm:$0xff]   ;;  %v1524_v18 = vld [vmem:[%s1764_s12 + $0x8c] ss:$16 sps:$4 sm:$0xff]  }
  0x49   : > { %v1526_v19 = vld [vmem:[%s1764_s12 + $0x80] ss:$16 sps:$4 sm:$0xff]   ;;  %v1527_v20 = vld [vmem:[%s1764_s12 + $0x88] ss:$16 sps:$4 sm:$0xff]   ;;  %v1528_v21 = vld [vmem:[%s1764_s12 + $0xa4] ss:$16 sps:$4 sm:$0xff]  }
  0x4a   : > { %1306 = vmatpush3.bf16.msra.mxu0 %v1484_v51  ;;  %v1530_v22 = vld [vmem:[%s1764_s12 + $0xac] ss:$16 sps:$4 sm:$0xff]   ;;  %v1532_v23 = vld [vmem:[%s1764_s12 + $0xa0] ss:$16 sps:$4 sm:$0xff]   ;;  %v1533_v24 = vld [vmem:[%s1764_s12 + $0xa8] ss:$16 sps:$4 sm:$0xff]  }
  0x4b   : > { %1370 = vmatpush3.bf16.msra.mxu1 %v1485_v52  ;;  %1307 = vmatprep.subr.bf16.mxu0 %v1486_v53  ;;  %v1534_v25 = vld [vmem:[%s1764_s12 + $0xc4] ss:$16 sps:$4 sm:$0xff]   ;;  %v1536_v26 = vld [vmem:[%s1764_s12 + $0xcc] ss:$16 sps:$4 sm:$0xff]   ;;  %v1538_v27 = vld [vmem:[%s1764_s12 + $0xc0] ss:$16 sps:$4 sm:$0xff]  }
  0x4c   : > { %1371 = vmatprep.subr.bf16.mxu1 %v1487_v54  ;;  %v1539_v28 = vld [vmem:[%s1764_s12 + $0xc8] ss:$16 sps:$4 sm:$0xff]   ;;  %v1540_v29 = vld [vmem:[%s1764_s12 + $0xe4] ss:$16 sps:$4 sm:$0xff]   ;;  %v1542_v30 = vld [vmem:[%s1764_s12 + $0xec] ss:$16 sps:$4 sm:$0xff]  }
  0x4d   : > { %v1544_v31 = vld [vmem:[%s1764_s12 + $0xe0] ss:$16 sps:$4 sm:$0xff]   ;;  %v1545_v32 = vld [vmem:[%s1764_s12 + $0xe8] ss:$16 sps:$4 sm:$0xff]  }
  0x4e   : > { %1308 = vmatpush3.bf16.msra.mxu0 %v1488_v55  ;;  %v343_v40 = vld [vmem:[%s2097_s4] sm:$0xff]  ;;  %v344_v49 = vld [vmem:[%s2097_s4 + $0x8] sm:$0xff] }
  0x4f   : > { %1372 = vmatpush3.bf16.msra.mxu1 %v1489_v56  ;;  %1309 = vmatprep.subr.bf16.mxu0 %v1490_v57 }
  0x50   : > { %1373 = vmatprep.subr.bf16.mxu1 %v1491_v58  ;;  %v345_v58 = vld [vmem:[%s2097_s4 + $0x10] sm:$0xff] }
  0x52   : > { %1310 = vmatpush3.bf16.msra.mxu0 %v1492_v59 }
  0x53   : > { %1374 = vmatpush3.bf16.msra.mxu1 %v1493_v60  ;;  %1311 = vmatprep.subr.bf16.mxu0 %v1494_v61 }
  0x54   : > { %1375 = vmatprep.subr.bf16.mxu1 %v1495_v62 }
  0x56   : > { %1312 = vmatpush3.bf16.msra.mxu0 %v1496_v63 }
  0x57   : > { %1376 = vmatpush3.bf16.msra.mxu1 %v1497_v0 }
  0x59   : > { %840 = vmatmul.mubr.bf16.vlgmr.msra.gmra.mxu0 %v1498_v1 }
  0x5a   : > { %937 = vmatmul.mubr.bf16.vlgmr.msra.gmra.mxu1 %v1501_v3  ;;  %847 = vmatprep.mubr.bf16.mxu0 %v1504_v5  ;;  %v346_v3 = vld [vmem:[%s2097_s4 + $0x18] sm:$0xff] }
  0x5b   : > { %944 = vmatprep.mubr.bf16.mxu1 %v1506_v6 }
  0x61   : > { %848 = vmatmul.mubr.bf16.gmra.mxu0 %v1508_v7 }
  0x62   : > { %945 = vmatmul.mubr.bf16.gmra.mxu1 %v1509_v8  ;;  %855 = vmatprep.mubr.bf16.mxu0 %v1510_v9 }
  0x63   : > { %952 = vmatprep.mubr.bf16.mxu1 %v1512_v10 }
  0x69   : > { %856 = vmatmul.mubr.bf16.gmra.mxu0 %v1514_v11 }
  0x6a   : > { %953 = vmatmul.mubr.bf16.gmra.mxu1 %v1515_v12  ;;  %863 = vmatprep.mubr.bf16.mxu0 %v1516_v13  ;;  %v347_v12 = vld [vmem:[%s2097_s4 + $0x20] sm:$0xff] }
  0x6b   : > { %960 = vmatprep.mubr.bf16.mxu1 %v1518_v14 }
  0x71   : > { %864 = vmatmul.mubr.bf16.gmra.mxu0 %v1520_v15 }
  0x72   : > { %961 = vmatmul.mubr.bf16.gmra.mxu1 %v1521_v16  ;;  %871 = vmatprep.mubr.bf16.mxu0 %v1522_v17 }
  0x73   : > { %968 = vmatprep.mubr.bf16.mxu1 %v1524_v18 }
  0x79   : > { %872 = vmatmul.mubr.bf16.gmra.mxu0 %v1526_v19 }
  0x7a   : > { %969 = vmatmul.mubr.bf16.gmra.mxu1 %v1527_v20  ;;  %879 = vmatprep.mubr.bf16.mxu0 %v1528_v21  ;;  %v348_v21 = vld [vmem:[%s2097_s4 + $0x28] sm:$0xff] }
  0x7b   : > { %976 = vmatprep.mubr.bf16.mxu1 %v1530_v22 }
  0x81   : > { %880 = vmatmul.mubr.bf16.gmra.mxu0 %v1532_v23 }
  0x82   : > { %977 = vmatmul.mubr.bf16.gmra.mxu1 %v1533_v24  ;;  %887 = vmatprep.mubr.bf16.mxu0 %v1534_v25 }
  0x83   : > { %984 = vmatprep.mubr.bf16.mxu1 %v1536_v26 }
  0x89   : > { %888 = vmatmul.mubr.bf16.gmra.mxu0 %v1538_v27 }
  0x8a   : > { %985 = vmatmul.mubr.bf16.gmra.mxu1 %v1539_v28  ;;  %895 = vmatprep.mubr.bf16.mxu0 %v1540_v29 }
  0x8b   : > { %992 = vmatprep.mubr.bf16.mxu1 %v1542_v30  ;;  %v349_v30 = vld [vmem:[%s2097_s4 + $0x30] sm:$0xff] }
  0x91   : > { %896 = vmatmul.mubr.bf16.gmra.mxu0 %v1544_v31 }
  0x92   : > { %993 = vmatmul.mubr.bf16.gmra.mxu1 %v1545_v32 }
 0x119   : > { %v1313_v33 = vpop.f32.mrf.mxu0 }
 0x11a   : > { %v1377_v34 = vpop.f32.mrf.mxu1 }
 0x11b   : > { %v1314_v35 = vpop.f32.mrf.mxu0 }
 0x11c   : > { %v1315_v36 = vadd.f32 %v1314_v35, %v1313_v33  ;;  %v1378_v37 = vpop.f32.mrf.mxu1 }
 0x11d   : > { %v1379_v38 = vadd.f32 %v1378_v37, %v1377_v34  ;;  %v1316_v39 = vpop.f32.mrf.mxu0 }
 0x11e   : > { %v1380_v41 = vpop.f32.mrf.mxu1 }
 0x11f   : > { %v939_v42 = vadd.f32 %v1379_v38, %v1315_v36  ;;  %v1317_v43 = vpop.f32.mrf.mxu0 }
 0x120   : > { %v1318_v44 = vadd.f32 %v1317_v43, %v1316_v39  ;;  %v1381_v45 = vpop.f32.mrf.mxu1  ;;  %v350_v39 = vld [vmem:[%s2097_s4 + $0x38] sm:$0xff] }
 0x121   : > { %v1001_v46 = vadd.f32 %v939_v42, %v343_v40  ;;  %v1382_v47 = vadd.f32 %v1381_v45, %v1380_v41  ;;  %v1319_v48 = vpop.f32.mrf.mxu0 }
 0x122   : > { %v1383_v50 = vpop.f32.mrf.mxu1 }
 0x123   : > { %1017 = vst [vmem:[%s2097_s4] sm:$0xff] %v1001_v46  ;;  %v942_v51 = vadd.f32 %v1382_v47, %v1318_v44  ;;  %v1320_v52 = vpop.f32.mrf.mxu0 }
 0x124   : > { %v1321_v53 = vadd.f32 %v1320_v52, %v1319_v48  ;;  %v1384_v54 = vpop.f32.mrf.mxu1  ;;  %v351_v48 = vld [vmem:[%s2097_s4 + $0x40] sm:$0xff] }
 0x125   : > { %v1002_v55 = vadd.f32 %v942_v51, %v344_v49  ;;  %v1385_v56 = vadd.f32 %v1384_v54, %v1383_v50  ;;  %v1322_v57 = vpop.f32.mrf.mxu0 }
 0x126   : > { %v1386_v59 = vpop.f32.mrf.mxu1 }
 0x127   : > { %1018 = vst [vmem:[%s2097_s4 + $0x8] sm:$0xff] %v1002_v55  ;;  %v947_v60 = vadd.f32 %v1385_v56, %v1321_v53  ;;  %v1323_v61 = vpop.f32.mrf.mxu0 }
 0x128   : > { %v1324_v62 = vadd.f32 %v1323_v61, %v1322_v57  ;;  %v1387_v63 = vpop.f32.mrf.mxu1  ;;  %v352_v57 = vld [vmem:[%s2097_s4 + $0x48] sm:$0xff] }
 0x129   : > { %v1003_v0 = vadd.f32 %v947_v60, %v345_v58  ;;  %v1388_v1 = vadd.f32 %v1387_v63, %v1386_v59  ;;  %v1325_v2 = vpop.f32.mrf.mxu0 }
 0x12a   : > { %v1389_v4 = vpop.f32.mrf.mxu1 }
 0x12b   : > { %1019 = vst [vmem:[%s2097_s4 + $0x10] sm:$0xff] %v1003_v0  ;;  %v950_v5 = vadd.f32 %v1388_v1, %v1324_v62  ;;  %v1326_v6 = vpop.f32.mrf.mxu0 }
 0x12c   : > { %v1327_v7 = vadd.f32 %v1326_v6, %v1325_v2  ;;  %v1390_v8 = vpop.f32.mrf.mxu1  ;;  %v353_v2 = vld [vmem:[%s2097_s4 + $0x50] sm:$0xff] }
 0x12d   : > { %v1004_v9 = vadd.f32 %v950_v5, %v346_v3  ;;  %v1391_v10 = vadd.f32 %v1390_v8, %v1389_v4  ;;  %v1328_v11 = vpop.f32.mrf.mxu0 }
 0x12e   : > { %v1392_v13 = vpop.f32.mrf.mxu1 }
 0x12f   : > { %1020 = vst [vmem:[%s2097_s4 + $0x18] sm:$0xff] %v1004_v9  ;;  %v955_v14 = vadd.f32 %v1391_v10, %v1327_v7  ;;  %v1329_v15 = vpop.f32.mrf.mxu0 }
 0x130   : > { %v1330_v16 = vadd.f32 %v1329_v15, %v1328_v11  ;;  %v1393_v17 = vpop.f32.mrf.mxu1  ;;  %v354_v11 = vld [vmem:[%s2097_s4 + $0x58] sm:$0xff] }
 0x131   : > { %v1005_v18 = vadd.f32 %v955_v14, %v347_v12  ;;  %v1394_v19 = vadd.f32 %v1393_v17, %v1392_v13  ;;  %v1331_v20 = vpop.f32.mrf.mxu0 }
 0x132   : > { %v1395_v22 = vpop.f32.mrf.mxu1 }
 0x133   : > { %1021 = vst [vmem:[%s2097_s4 + $0x20] sm:$0xff] %v1005_v18  ;;  %v958_v23 = vadd.f32 %v1394_v19, %v1330_v16  ;;  %v1332_v24 = vpop.f32.mrf.mxu0 }
 0x134   : > { %v1333_v25 = vadd.f32 %v1332_v24, %v1331_v20  ;;  %v1396_v26 = vpop.f32.mrf.mxu1  ;;  %v355_v20 = vld [vmem:[%s2097_s4 + $0x60] sm:$0xff] }
 0x135   : > { %v1006_v27 = vadd.f32 %v958_v23, %v348_v21  ;;  %v1397_v28 = vadd.f32 %v1396_v26, %v1395_v22  ;;  %v1334_v29 = vpop.f32.mrf.mxu0 }
 0x136   : > { %v1398_v31 = vpop.f32.mrf.mxu1 }
 0x137   : > { %1022 = vst [vmem:[%s2097_s4 + $0x28] sm:$0xff] %v1006_v27  ;;  %v963_v32 = vadd.f32 %v1397_v28, %v1333_v25  ;;  %v1335_v33 = vpop.f32.mrf.mxu0 }
 0x138   : > { %v1336_v34 = vadd.f32 %v1335_v33, %v1334_v29  ;;  %v1399_v35 = vpop.f32.mrf.mxu1  ;;  %v356_v29 = vld [vmem:[%s2097_s4 + $0x68] sm:$0xff] }
 0x139   : > { %v1007_v36 = vadd.f32 %v963_v32, %v349_v30  ;;  %v1400_v37 = vadd.f32 %v1399_v35, %v1398_v31  ;;  %v1337_v38 = vpop.f32.mrf.mxu0 }
 0x13a   : > { %v1401_v40 = vpop.f32.mrf.mxu1 }
 0x13b   : > { %1023 = vst [vmem:[%s2097_s4 + $0x30] sm:$0xff] %v1007_v36  ;;  %v966_v41 = vadd.f32 %v1400_v37, %v1336_v34  ;;  %v1338_v42 = vpop.f32.mrf.mxu0 }
 0x13c   : > { %v1339_v43 = vadd.f32 %v1338_v42, %v1337_v38  ;;  %v1402_v44 = vpop.f32.mrf.mxu1  ;;  %v357_v38 = vld [vmem:[%s2097_s4 + $0x70] sm:$0xff] }
 0x13d   : > { %v1008_v45 = vadd.f32 %v966_v41, %v350_v39  ;;  %v1403_v46 = vadd.f32 %v1402_v44, %v1401_v40  ;;  %v1340_v47 = vpop.f32.mrf.mxu0 }
 0x13e   : > { %v1404_v49 = vpop.f32.mrf.mxu1 }
 0x13f   : > { %1024 = vst [vmem:[%s2097_s4 + $0x38] sm:$0xff] %v1008_v45  ;;  %v971_v50 = vadd.f32 %v1403_v46, %v1339_v43  ;;  %v1341_v51 = vpop.f32.mrf.mxu0  ;;  %v358_v46 = vld [vmem:[%s2097_s4 + $0x78] sm:$0xff] }
 0x140   : > { %v1342_v52 = vadd.f32 %v1341_v51, %v1340_v47  ;;  %v1405_v53 = vpop.f32.mrf.mxu1 }
 0x141   : > { %v1009_v54 = vadd.f32 %v971_v50, %v351_v48  ;;  %v1406_v55 = vadd.f32 %v1405_v53, %v1404_v49  ;;  %v1343_v56 = vpop.f32.mrf.mxu0 }
 0x142   : > { %v1407_v58 = vpop.f32.mrf.mxu1 }
 0x143   : > { %1025 = vst [vmem:[%s2097_s4 + $0x40] sm:$0xff] %v1009_v54  ;;  %v974_v59 = vadd.f32 %v1406_v55, %v1342_v52  ;;  %v1344_v60 = vpop.f32.mrf.mxu0 }
 0x144   : > { %v1345_v61 = vadd.f32 %v1344_v60, %v1343_v56  ;;  %v1408_v62 = vpop.f32.mrf.mxu1 }
 0x145   : > { %v1010_v63 = vadd.f32 %v974_v59, %v352_v57  ;;  %v1409_v0 = vadd.f32 %v1408_v62, %v1407_v58  ;;  %v1346_v1 = vpop.f32.mrf.mxu0 }
 0x146   : > { %v1410_v3 = vpop.f32.mrf.mxu1 }
 0x147   : > { %1026 = vst [vmem:[%s2097_s4 + $0x48] sm:$0xff] %v1010_v63  ;;  %v979_v4 = vadd.f32 %v1409_v0, %v1345_v61  ;;  %v1347_v5 = vpop.f32.mrf.mxu0 }
 0x148   : > { %v1348_v6 = vadd.f32 %v1347_v5, %v1346_v1  ;;  %v1411_v7 = vpop.f32.mrf.mxu1 }
 0x149   : > { %v1011_v8 = vadd.f32 %v979_v4, %v353_v2  ;;  %v1412_v9 = vadd.f32 %v1411_v7, %v1410_v3  ;;  %v1349_v10 = vpop.f32.mrf.mxu0 }
 0x14a   : > { %v1413_v12 = vpop.f32.mrf.mxu1 }
 0x14b   : > { %1027 = vst [vmem:[%s2097_s4 + $0x50] sm:$0xff] %v1011_v8  ;;  %v982_v13 = vadd.f32 %v1412_v9, %v1348_v6  ;;  %v1350_v14 = vpop.f32.mrf.mxu0 }
 0x14c   : > { %v1351_v15 = vadd.f32 %v1350_v14, %v1349_v10  ;;  %v1414_v16 = vpop.f32.mrf.mxu1 }
 0x14d   : > { %v1012_v17 = vadd.f32 %v982_v13, %v354_v11  ;;  %v1415_v18 = vadd.f32 %v1414_v16, %v1413_v12  ;;  %v1352_v19 = vpop.f32.mrf.mxu0 }
 0x14e   : > { %v1416_v21 = vpop.f32.mrf.mxu1 }
 0x14f   : > { %1028 = vst [vmem:[%s2097_s4 + $0x58] sm:$0xff] %v1012_v17  ;;  %v987_v22 = vadd.f32 %v1415_v18, %v1351_v15  ;;  %v1353_v23 = vpop.f32.mrf.mxu0 }
 0x150   : > { %v1354_v24 = vadd.f32 %v1353_v23, %v1352_v19  ;;  %v1417_v25 = vpop.f32.mrf.mxu1 }
 0x151   : > { %v1013_v26 = vadd.f32 %v987_v22, %v355_v20  ;;  %v1418_v27 = vadd.f32 %v1417_v25, %v1416_v21  ;;  %v1355_v28 = vpop.f32.mrf.mxu0 }
 0x152   : > { %v1419_v30 = vpop.f32.mrf.mxu1 }
 0x153   : > { %1029 = vst [vmem:[%s2097_s4 + $0x60] sm:$0xff] %v1013_v26  ;;  %v990_v31 = vadd.f32 %v1418_v27, %v1354_v24  ;;  %v1356_v32 = vpop.f32.mrf.mxu0 }
 0x154   : > { %v1357_v33 = vadd.f32 %v1356_v32, %v1355_v28  ;;  %v1420_v34 = vpop.f32.mrf.mxu1 }
 0x155   : > { %v1014_v35 = vadd.f32 %v990_v31, %v356_v29  ;;  %v1421_v36 = vadd.f32 %v1420_v34, %v1419_v30  ;;  %v1358_v37 = vpop.f32.mrf.mxu0 }
 0x156   : > { %v1422_v39 = vpop.f32.mrf.mxu1 }
 0x157   : > { %1030 = vst [vmem:[%s2097_s4 + $0x68] sm:$0xff] %v1014_v35  ;;  %v995_v40 = vadd.f32 %v1421_v36, %v1357_v33  ;;  %v1359_v41 = vpop.f32.mrf.mxu0 }
 0x158   : > { %v1360_v42 = vadd.f32 %v1359_v41, %v1358_v37  ;;  %v1423_v43 = vpop.f32.mrf.mxu1 }
 0x159   : > { %v1015_v44 = vadd.f32 %v995_v40, %v357_v38  ;;  %v1424_v45 = vadd.f32 %v1423_v43, %v1422_v39 }
 0x15b   : > { %1031 = vst [vmem:[%s2097_s4 + $0x70] sm:$0xff] %v1015_v44  ;;  %v998_v47 = vadd.f32 %v1424_v45, %v1360_v42  ;;  %1036 = sbr.rel (%p1289_p11) target bundleno = 388 (0x184), region = 67 }
 0x15d   : > { %v1016_v48 = vadd.f32 %v998_v47, %v358_v46 }
 0x15f   : > { %1032 = vst [vmem:[%s2097_s4 + $0x78] sm:$0xff] %v1016_v48 }
 0x160   : > { %v1037_v49 = vld [vmem:[%s2097_s4] sm:$0xff]  ;;  %v1038_v53 = vld [vmem:[%s2097_s4 + $0x8] sm:$0xff]  ;;  %v1039_v54 = vld [vmem:[%s2097_s4 + $0x10] sm:$0xff] }
 0x161   : > { %v1290_v50 = vld [vmem:[%s2095_s2] ss:$0 sm:$0xff]  ;;  %v1040_v55 = vld [vmem:[%s2097_s4 + $0x18] sm:$0xff]  ;;  %v1042_v60 = vld [vmem:[%s2097_s4 + $0x28] sm:$0xff] }
 0x162   : > { %v1291_v51 = vld [vmem:[%s2096_s3] ss:$0 sm:$0xff]  ;;  %v1060_v52 = vmul.f32 %v1290_v50, %v1037_v49  ;;  %v1061_v56 = vmul.f32 %v1290_v50, %v1038_v53  ;;  %v1062_v57 = vmul.f32 %v1290_v50, %v1039_v54  ;;  %v1063_v58 = vmul.f32 %v1290_v50, %v1040_v55  ;;  %v1043_v61 = vld [vmem:[%s2097_s4 + $0x30] sm:$0xff]  ;;  %v1044_v2 = vld [vmem:[%s2097_s4 + $0x38] sm:$0xff] }
 0x163   : > { %v1041_v59 = vld [vmem:[%s2097_s4 + $0x20] sm:$0xff]  ;;  %v1065_v0 = vmul.f32 %v1290_v50, %v1042_v60  ;;  %v1066_v1 = vmul.f32 %v1290_v50, %v1043_v61  ;;  %v1046_v4 = vld [vmem:[%s2097_s4 + $0x48] sm:$0xff]  ;;  %v1067_v8 = vmul.f32 %v1290_v50, %v1044_v2  ;;  %v1047_v9 = vld [vmem:[%s2097_s4 + $0x50] sm:$0xff] }
 0x164   : > { %v1083_v62 = vadd.f32 %v1291_v51, %v1060_v52  ;;  %v1064_v63 = vmul.f32 %v1290_v50, %v1041_v59  ;;  %v1045_v3 = vld [vmem:[%s2097_s4 + $0x40] sm:$0xff]  ;;  %v1084_v5 = vadd.f32 %v1291_v51, %v1061_v56  ;;  %v1085_v6 = vadd.f32 %v1291_v51, %v1062_v57  ;;  %v1048_v11 = vld [vmem:[%s2097_s4 + $0x58] sm:$0xff]  ;;  %v1050_v18 = vld [vmem:[%s2097_s4 + $0x68] sm:$0xff] }
 0x165   : > { %v1086_v7 = vadd.f32 %v1291_v51, %v1063_v58  ;;  %v1088_v12 = vadd.f32 %v1291_v51, %v1065_v0  ;;  %v1068_v13 = vmul.f32 %v1290_v50, %v1045_v3  ;;  %v1069_v14 = vmul.f32 %v1290_v50, %v1046_v4  ;;  %v1049_v15 = vld [vmem:[%s2097_s4 + $0x60] sm:$0xff]  ;;  %v1051_v21 = vld [vmem:[%s2097_s4 + $0x70] sm:$0xff] }
 0x166   : > { %1546 = vtanh.f32 %v1083_v62  ;;  %v1087_v10 = vadd.f32 %v1291_v51, %v1064_v63  ;;  %v1089_v16 = vadd.f32 %v1291_v51, %v1066_v1  ;;  %v1070_v17 = vmul.f32 %v1290_v50, %v1047_v9  ;;  %v1052_v24 = vld [vmem:[%s2097_s4 + $0x78] sm:$0xff] }
 0x167   : > { %1548 = vtanh.f32 %v1084_v5  ;;  %v1090_v19 = vadd.f32 %v1291_v51, %v1067_v8  ;;  %v1071_v20 = vmul.f32 %v1290_v50, %v1048_v11  ;;  %v1091_v22 = vadd.f32 %v1291_v51, %v1068_v13 }
 0x168   : > { %1550 = vtanh.f32 %v1085_v6  ;;  %v1072_v23 = vmul.f32 %v1290_v50, %v1049_v15  ;;  %v1092_v25 = vadd.f32 %v1291_v51, %v1069_v14  ;;  %v1073_v26 = vmul.f32 %v1290_v50, %v1050_v18 }
 0x169   : > { %1552 = vtanh.f32 %v1086_v7  ;;  %v1093_v27 = vadd.f32 %v1291_v51, %v1070_v17  ;;  %v1074_v28 = vmul.f32 %v1290_v50, %v1051_v21  ;;  %v1094_v29 = vadd.f32 %v1291_v51, %v1071_v20 }
 0x16a   : > { %1554 = vtanh.f32 %v1087_v10  ;;  %v1075_v30 = vmul.f32 %v1290_v50, %v1052_v24  ;;  %v1095_v31 = vadd.f32 %v1291_v51, %v1072_v23  ;;  %v1096_v32 = vadd.f32 %v1291_v51, %v1073_v26 }
 0x16b   : > { %1556 = vtanh.f32 %v1088_v12  ;;  %v1097_v33 = vadd.f32 %v1291_v51, %v1074_v28 }
 0x16c   : > { %1558 = vtanh.f32 %v1089_v16  ;;  %v1098_v34 = vadd.f32 %v1291_v51, %v1075_v30 }
 0x16d   : > { %1560 = vtanh.f32 %v1090_v19 }
 0x16e   : > { %1562 = vtanh.f32 %v1091_v22 }
 0x16f   : > { %1564 = vtanh.f32 %v1092_v25 }
 0x170   : > { %1566 = vtanh.f32 %v1093_v27 }
 0x171   : > { %1568 = vtanh.f32 %v1094_v29 }
 0x172   : > { %1570 = vtanh.f32 %v1095_v31 }
 0x173   : > { %v1547_v35 = vpop.eup %1546  ;;  %1572 = vtanh.f32 %v1096_v32 }
 0x174   : > { %v1549_v36 = vpop.eup %1548  ;;  %1115 = vst [vmem:[%s2097_s4] sm:$0xff] %v1547_v35  ;;  %1574 = vtanh.f32 %v1097_v33 }
 0x175   : > { %v1551_v37 = vpop.eup %1550  ;;  %1116 = vst [vmem:[%s2097_s4 + $0x8] sm:$0xff] %v1549_v36  ;;  %1576 = vtanh.f32 %v1098_v34 }
 0x176   : > { %v1553_v38 = vpop.eup %1552  ;;  %1117 = vst [vmem:[%s2097_s4 + $0x10] sm:$0xff] %v1551_v37 }
 0x177   : > { %v1555_v39 = vpop.eup %1554  ;;  %1118 = vst [vmem:[%s2097_s4 + $0x18] sm:$0xff] %v1553_v38 }
 0x178   : > { %v1557_v40 = vpop.eup %1556  ;;  %1119 = vst [vmem:[%s2097_s4 + $0x20] sm:$0xff] %v1555_v39 }
 0x179   : > { %v1559_v41 = vpop.eup %1558  ;;  %1120 = vst [vmem:[%s2097_s4 + $0x28] sm:$0xff] %v1557_v40 }
 0x17a   : > { %v1561_v42 = vpop.eup %1560  ;;  %1121 = vst [vmem:[%s2097_s4 + $0x30] sm:$0xff] %v1559_v41 }
 0x17b   : > { %v1563_v43 = vpop.eup %1562  ;;  %1122 = vst [vmem:[%s2097_s4 + $0x38] sm:$0xff] %v1561_v42 }
 0x17c   : > { %v1565_v44 = vpop.eup %1564  ;;  %1123 = vst [vmem:[%s2097_s4 + $0x40] sm:$0xff] %v1563_v43 }
 0x17d   : > { %v1567_v45 = vpop.eup %1566  ;;  %1124 = vst [vmem:[%s2097_s4 + $0x48] sm:$0xff] %v1565_v44 }
 0x17e   : > { %v1569_v46 = vpop.eup %1568  ;;  %1125 = vst [vmem:[%s2097_s4 + $0x50] sm:$0xff] %v1567_v45 }
 0x17f   : > { %v1571_v47 = vpop.eup %1570  ;;  %1126 = vst [vmem:[%s2097_s4 + $0x58] sm:$0xff] %v1569_v46 }
 0x180   : > { %v1573_v48 = vpop.eup %1572  ;;  %1127 = vst [vmem:[%s2097_s4 + $0x60] sm:$0xff] %v1571_v47 }
 0x181   : > { %v1575_v49 = vpop.eup %1574  ;;  %1128 = vst [vmem:[%s2097_s4 + $0x68] sm:$0xff] %v1573_v48 }
 0x182   : > { %v1577_v50 = vpop.eup %1576  ;;  %1129 = vst [vmem:[%s2097_s4 + $0x70] sm:$0xff] %v1575_v49 }
 0x183   : > { %1130 = vst [vmem:[%s2097_s4 + $0x78] sm:$0xff] %v1577_v50 }
 0x184 PF: > { %s14_s19 = sadd.s32 1, %s1616_s19   ;;  %s2098_s15 = smov %s1604_s16 }
 0x185   : > { %p11_p12 = scmp.ge.s32.totalorder %s14_s19, 6   ;;  %s2099_s16 = smov %s1679_s23 }
 0x186   : > { %s2100_s17 = smov %s1612_s18  ;;  %s2101_s18 = smov %s2103_s20 }
 0x187   :  { %13 = sbr.rel (!%p11_p12) target bundleno = 3 (0x3), region = 105 }

</bundles_post_ra>
